<compile_context>
chip_gen: v6e
topology: v6e:2x2x1
jax: 0.10.0
libtpu: 0.0.40
codegen_flags: <defaults>
</compile_context>

<pallas_src>
import functools
import math

import jax
import jax.numpy as jnp
from jax import lax
from jax.experimental import pallas as pl
from jax.experimental.pallas import tpu as pltpu

NORMALIZER_GK = 16.0
LN_EPS = 1e-5


def _gla_kernel(q_ref, k_ref, gk_ref, v_ref, o_ref, *, chunk, dk, dv, n_chunks):
    """One grid step: one batch element x one head group, full sequence.

    q_ref/k_ref/gk_ref : (S, G*dk) bf16, packed natural layout
                         (head h occupies columns [h*dk, (h+1)*dk)).
    v_ref/o_ref        : (S, G*dv) bf16.
    The cross-chunk state of head h is carried *transposed* (St_h[e,d] = S_h[d,e])
    as a tuple of (dv, dk) f32 loop-carry values (lives in vregs, not VMEM scratch).
    """
    C = chunk
    gdk = q_ref.shape[-1]
    G = gdk // dk

    # Hoisted constants (JAX does not CSE broadcast_in_dim; keep them out of the loop).
    row = lax.broadcasted_iota(jnp.int32, (C, C), 0)
    col = lax.broadcasted_iota(jnp.int32, (C, C), 1)
    causal = row >= col
    tril = causal.astype(jnp.float32)

    def body(n, st):
        off = pl.multiple_of(n * C, C)
        q = q_ref[pl.ds(off, C), :].astype(jnp.float32)    # (C, G*dk)
        k = k_ref[pl.ds(off, C), :].astype(jnp.float32)
        gk = gk_ref[pl.ds(off, C), :].astype(jnp.float32)
        v = v_ref[pl.ds(off, C), :].astype(jnp.float32)    # (C, G*dv)

        # Normalized log-sigmoid gate; inclusive cumsum over chunk positions via a
        # lower-triangular matmul (MXU).  NOTE: exp(-b_cum) grows with chunk size;
        # with the /16 normalizer this is safe in f32 up to C ~ 256; sub-chunk the
        # intra term if C is raised far beyond that.
        gk_log = jax.nn.log_sigmoid(gk) * (1.0 / NORMALIZER_GK)
        b_cum = jnp.dot(tril, gk_log, preferred_element_type=jnp.float32)  # (C, G*dk)
        b_last = b_cum[C - 1:C, :]                                         # (1, G*dk)

        # Packed (lane-dense) elementwise math in f32; bf16 operands for the MXU.
        q_exp = (q * jnp.exp(b_cum)).astype(jnp.bfloat16)
        k_neg = (k * jnp.exp(-b_cum)).astype(jnp.bfloat16)
        k_red = (k * jnp.exp(b_last - b_cum)).astype(jnp.bfloat16)
        v_b = v.astype(jnp.bfloat16)

        o_heads = []
        st_new = []
        for h in range(G):            # static unroll over the heads of this group
            qh = q_exp[:, h * dk:(h + 1) * dk]             # (C, dk)
            kh = k_neg[:, h * dk:(h + 1) * dk]
            krh = k_red[:, h * dk:(h + 1) * dk]
            vh = v_b[:, h * dv:(h + 1) * dv]               # (C, dv)
            sth = st[h]                                    # (dv, dk) f32

            # inter-chunk: q_exp_h @ S_h   (contract dk; no operand transposes)
            o_inter = lax.dot_general(
                qh, sth.astype(jnp.bfloat16), (((1,), (1,)), ((), ())),
                preferred_element_type=jnp.float32)        # (C, dv)

            # intra-chunk: causal((q_exp_h @ k_neg_h^T)) @ v_h
            a = lax.dot_general(qh, kh, (((1,), (1,)), ((), ())),
                                preferred_element_type=jnp.float32)        # (C, C)
            a = jnp.where(causal, a, 0.0)
            o_h = o_inter + jnp.dot(a.astype(jnp.bfloat16), vh,
                                    preferred_element_type=jnp.float32)    # (C, dv)

            # group_norm == LayerNorm(head_dim, eps=1e-5, elementwise_affine=False)
            mean = jnp.mean(o_h, axis=-1, keepdims=True)
            var = jnp.mean((o_h - mean) ** 2, axis=-1, keepdims=True)
            o_heads.append((o_h - mean) * lax.rsqrt(var + LN_EPS))

            # transposed state update: St_h' = St_h * exp(b_last_h) + (v_h^T k_red_h)^T
            vk = lax.dot_general(vh, krh, (((0,), (0,)), ((), ())),
                                 preferred_element_type=jnp.float32)       # (dv, dk)
            decay = jnp.exp(b_last[:, h * dk:(h + 1) * dk])                # (1, dk)
            st_new.append(sth * decay + vk)

        # Lane-dense packed store: all heads of the group at once, natural layout.
        o_ref[pl.ds(off, C), :] = jnp.concatenate(o_heads, axis=-1).astype(o_ref.dtype)
        return tuple(st_new)

    st0 = tuple(jnp.zeros((dv, dk), jnp.float32) for _ in range(G))
    lax.fori_loop(0, n_chunks, body, st0, unroll=True if n_chunks <= 8 else 1)


def _pick_head_group(n_heads, dk, dv):
    """Heads processed per grid step.  Only split heads into sub-groups when the
    resulting last-dim blocks stay lane-aligned (multiples of 128); otherwise
    process all heads of a batch element per step (block == full last dim)."""
    for g in range(1, n_heads):
        if n_heads % g == 0 and (g * dk) % 128 == 0 and (g * dv) % 128 == 0:
            return g
    return n_heads


def _gla_chunked(q, k, gk, v, *, n_heads, chunk_size):
    """q/k/gk: (B, S, H*dk), v: (B, S, H*dv) -> (B, S, H*dv) bf16, group-normed,
    everything in the natural packed-head layout (no wrapper transposes)."""
    B, S, dq = q.shape
    D = v.shape[-1]
    H = n_heads
    dk = dq // H
    dv = D // H
    assert S % chunk_size == 0
    n_chunks = S // chunk_size
    G = _pick_head_group(H, dk, dv)

    kernel = functools.partial(_gla_kernel, chunk=chunk_size, dk=dk, dv=dv,
                               n_chunks=n_chunks)
    spec_qk = pl.BlockSpec((None, S, G * dk), lambda b, hg: (b, 0, hg))
    spec_v = pl.BlockSpec((None, S, G * dv), lambda b, hg: (b, 0, hg))

    return pl.pallas_call(
        kernel,
        out_shape=jax.ShapeDtypeStruct((B, S, D), jnp.bfloat16),
        grid_spec=pltpu.PrefetchScalarGridSpec(
            num_scalar_prefetch=0,
            grid=(B, H // G),
            in_specs=[spec_qk, spec_qk, spec_qk, spec_v],
            out_specs=spec_v,
        ),
        compiler_params=pltpu.CompilerParams(
            # Both grid axes are independent -> shardable across TensorCores (v7x).
            dimension_semantics=("parallel", "parallel"),
            # Explicit VMEM budget (v7x: 64 MiB physical, 32 MiB default scoped).
            # TODO(synk): for large S*D also block the sequence axis (state carried
            # across an "arbitrary" grid axis) to stay within this budget.
            vmem_limit_bytes=32 * 1024 * 1024,
        ),
    )(q.astype(jnp.bfloat16), k.astype(jnp.bfloat16),
      gk.astype(jnp.bfloat16), v.astype(jnp.bfloat16))


def init_params(key, d_model, n_heads):
    """Deterministic synthetic parameters matching the module's shapes
    (use_gk=True, use_gv=False, factor=1)."""
    ks = jax.random.split(key, 10)
    gain = 2.0 ** (-2.5)

    def xavier(k, out_f, in_f, g):
        bound = g * math.sqrt(6.0 / (in_f + out_f))
        return jax.random.uniform(k, (out_f, in_f), jnp.float32, -bound, bound)

    def default_w(k, out_f, in_f):
        bound = 1.0 / math.sqrt(in_f)
        return jax.random.uniform(k, (out_f, in_f), jnp.float32, -bound, bound)

    def default_b(k, out_f, in_f):
        bound = 1.0 / math.sqrt(in_f)
        return jax.random.uniform(k, (out_f,), jnp.float32, -bound, bound)

    half = d_model // 2
    return {
        "Wq": xavier(ks[0], half, d_model, gain),
        "Wk": xavier(ks[1], half, d_model, gain),
        "Wkg0": xavier(ks[2], 16, d_model, gain),       # k_gate[0], no bias
        "Wkg1": xavier(ks[3], half, 16, gain),          # k_gate[1]
        "bkg1": default_b(ks[4], half, 16),             # k_gate[1] default bias
        "Wv": default_w(ks[5], d_model, d_model),
        "Wg": default_w(ks[6], d_model, d_model),
        "bg": default_b(ks[7], d_model, d_model),
        "Wo": default_w(ks[8], d_model, d_model),
    }


@functools.partial(jax.jit, static_argnames=("n_heads", "chunk_size"))
def gated_linear_attention_forward(x, params, n_heads, chunk_size=16):
    B, S, D = x.shape
    H = n_heads
    assert S % chunk_size == 0  # TODO(synk): torch path pads with torch.randn (non-deterministic); not reproduced.
    key_dim = D // H                   # module's self.key_dim
    scaling = key_dim ** (-0.5)

    # projections (plain-JAX glue)
    q = x @ params["Wq"].T
    k = (x @ params["Wk"].T) * scaling
    k_gate = (x @ params["Wkg0"].T) @ params["Wkg1"].T + params["bkg1"]
    v = x @ params["Wv"].T
    g = x @ params["Wg"].T + params["bg"]

    # The Pallas kernel consumes/produces the natural 'b s (h d)' layout directly;
    # the reference 'b (n c) (h d) -> b h n c d' rearranges are folded into in-kernel
    # head/chunk indexing, avoiding HBM transpose round trips on both sides.
    o = _gla_chunked(q, k, k_gate, v, n_heads=H, chunk_size=chunk_size)

    out = (jax.nn.silu(g) * o.astype(jnp.float32)) @ params["Wo"].T
    return out


if __name__ == "__main__":
    d_model, n_heads, batch, seq, chunk = 64, 4, 2, 64, 16

    key = jax.random.PRNGKey(0)
    k_params, k_x = jax.random.split(key)
    params = init_params(k_params, d_model, n_heads)
    x = jax.random.normal(k_x, (batch, seq, d_model), jnp.float32)

    out = gated_linear_attention_forward(x, params, n_heads=n_heads,
                                         chunk_size=chunk)
    out = jax.block_until_ready(out)
    assert out.shape == (batch, seq, d_model)
    assert bool(jnp.all(jnp.isfinite(out)))
    print("KERNEL_OK")
</pallas_src>

<mosaic_0001>
module attributes {stable_mosaic.version = 11 : i64} {
  func.func @_gla_kernel(%arg0: i32, %arg1: i32, %arg2: memref<1x64x32xbf16, #tpu.memory_space<vmem>>, %arg3: memref<1x64x32xbf16, #tpu.memory_space<vmem>>, %arg4: memref<1x64x32xbf16, #tpu.memory_space<vmem>>, %arg5: memref<1x64x64xbf16, #tpu.memory_space<vmem>>, %arg6: memref<1x64x64xbf16, #tpu.memory_space<vmem>>) attributes {dimension_semantics = [#tpu.dimension_semantics<parallel>, #tpu.dimension_semantics<parallel>], iteration_bounds = array<i64: 2, 1>, scalar_prefetch = 0 : i64, scratch_operands = 0 : i64, tpu.core_type = #tpu.core_type<tc>, window_params = [{transform_indices = @transform_0, window_bounds = array<i64: 1, 64, 32>}, {transform_indices = @transform_1, window_bounds = array<i64: 1, 64, 32>}, {transform_indices = @transform_2, window_bounds = array<i64: 1, 64, 32>}, {transform_indices = @transform_3, window_bounds = array<i64: 1, 64, 64>}, {transform_indices = @transform_4, window_bounds = array<i64: 1, 64, 64>}]} {
    %0 = tpu.iota {dimensions = array<i32: 0>} : vector<16x16xi32>
    %1 = tpu.iota {dimensions = array<i32: 1>} : vector<16x16xi32>
    %2 = arith.cmpi sge, %0, %1 : vector<16x16xi32>
    %3 = arith.extui %2 : vector<16x16xi1> to vector<16x16xi32>
    %4 = arith.sitofp %3 : vector<16x16xi32> to vector<16x16xf32>
    %cst = arith.constant 0.000000e+00 : f32
    %5 = vector.broadcast %cst : f32 to vector<16x8xf32>
    %cst_0 = arith.constant 0.000000e+00 : f32
    %6 = vector.broadcast %cst_0 : f32 to vector<16x8xf32>
    %cst_1 = arith.constant 0.000000e+00 : f32
    %7 = vector.broadcast %cst_1 : f32 to vector<16x8xf32>
    %cst_2 = arith.constant 0.000000e+00 : f32
    %8 = vector.broadcast %cst_2 : f32 to vector<16x8xf32>
    %c0_i32 = arith.constant 0 : i32
    %c16_i32 = arith.constant 16 : i32
    %9 = arith.muli %c0_i32, %c16_i32 : i32
    %10 = tpu.assume_multiple %9, 16 : i32
    %c0 = arith.constant 0 : index
    %11 = arith.index_cast %10 : i32 to index
    %c0_3 = arith.constant 0 : index
    %12 = vector.load %arg2[%c0, %11, %c0_3] : memref<1x64x32xbf16, #tpu.memory_space<vmem>>, vector<1x16x32xbf16>
    %13 = vector.shape_cast %12 : vector<1x16x32xbf16> to vector<16x32xbf16>
    %14 = arith.extf %13 : vector<16x32xbf16> to vector<16x32xf32>
    %c0_4 = arith.constant 0 : index
    %15 = arith.index_cast %10 : i32 to index
    %c0_5 = arith.constant 0 : index
    %16 = vector.load %arg3[%c0_4, %15, %c0_5] : memref<1x64x32xbf16, #tpu.memory_space<vmem>>, vector<1x16x32xbf16>
    %17 = vector.shape_cast %16 : vector<1x16x32xbf16> to vector<16x32xbf16>
    %18 = arith.extf %17 : vector<16x32xbf16> to vector<16x32xf32>
    %c0_6 = arith.constant 0 : index
    %19 = arith.index_cast %10 : i32 to index
    %c0_7 = arith.constant 0 : index
    %20 = vector.load %arg4[%c0_6, %19, %c0_7] : memref<1x64x32xbf16, #tpu.memory_space<vmem>>, vector<1x16x32xbf16>
    %21 = vector.shape_cast %20 : vector<1x16x32xbf16> to vector<16x32xbf16>
    %22 = arith.extf %21 : vector<16x32xbf16> to vector<16x32xf32>
    %c0_8 = arith.constant 0 : index
    %23 = arith.index_cast %10 : i32 to index
    %c0_9 = arith.constant 0 : index
    %24 = vector.load %arg5[%c0_8, %23, %c0_9] : memref<1x64x64xbf16, #tpu.memory_space<vmem>>, vector<1x16x64xbf16>
    %25 = vector.shape_cast %24 : vector<1x16x64xbf16> to vector<16x64xbf16>
    %26 = arith.extf %25 : vector<16x64xbf16> to vector<16x64xf32>
    %cst_10 = arith.constant 0.000000e+00 : f32
    %27 = vector.broadcast %cst_10 : f32 to vector<16x32xf32>
    %28 = arith.subf %27, %22 : vector<16x32xf32>
    %cst_11 = arith.constant 0.000000e+00 : f32
    %29 = vector.broadcast %cst_11 : f32 to vector<16x32xf32>
    %30 = arith.maximumf %28, %29 : vector<16x32xf32>
    %31 = vector.broadcast %cst_11 : f32 to vector<16x32xf32>
    %32 = arith.subf %28, %31 : vector<16x32xf32>
    %33 = arith.cmpf one, %32, %32 : vector<16x32xf32>
    %34 = vector.broadcast %cst_11 : f32 to vector<16x32xf32>
    %35 = arith.addf %28, %34 : vector<16x32xf32>
    %36 = math.absf %32 : vector<16x32xf32>
    %cst_12 = arith.constant 0.000000e+00 : f32
    %37 = vector.broadcast %cst_12 : f32 to vector<16x32xf32>
    %38 = arith.subf %37, %36 : vector<16x32xf32>
    %39 = math.exp %38 : vector<16x32xf32>
    %40 = math.log1p %39 : vector<16x32xf32>
    %41 = arith.addf %30, %40 : vector<16x32xf32>
    %42 = arith.select %33, %35, %41 : vector<16x32xi1>, vector<16x32xf32>
    %cst_13 = arith.constant 0.000000e+00 : f32
    %43 = vector.broadcast %cst_13 : f32 to vector<16x32xf32>
    %44 = arith.subf %43, %42 : vector<16x32xf32>
    %cst_14 = arith.constant 6.250000e-02 : f32
    %45 = vector.broadcast %cst_14 : f32 to vector<16x32xf32>
    %46 = arith.mulf %44, %45 : vector<16x32xf32>
    %cst_15 = arith.constant dense<0.000000e+00> : vector<16x32xf32>
    %47 = tpu.matmul %4, %46, %cst_15 {dimension_numbers = #tpu.dot_dimension_numbers<[1], [0], [0], [1], [0, 0, 1, 1], [], []>} : vector<16x16xf32>, vector<16x32xf32>, vector<16x32xf32> -> vector<16x32xf32>
    %48 = vector.extract_strided_slice %47 {offsets = [15, 0], sizes = [1, 32], strides = [1, 1]} : vector<16x32xf32> to vector<1x32xf32>
    %49 = math.exp %47 : vector<16x32xf32>
    %50 = arith.mulf %14, %49 : vector<16x32xf32>
    %51 = arith.truncf %50 : vector<16x32xf32> to vector<16x32xbf16>
    %cst_16 = arith.constant 0.000000e+00 : f32
    %52 = vector.broadcast %cst_16 : f32 to vector<16x32xf32>
    %53 = arith.subf %52, %47 : vector<16x32xf32>
    %54 = math.exp %53 : vector<16x32xf32>
    %55 = arith.mulf %18, %54 : vector<16x32xf32>
    %56 = arith.truncf %55 : vector<16x32xf32> to vector<16x32xbf16>
    %57 = vector.broadcast %48 : vector<1x32xf32> to vector<16x32xf32>
    %58 = arith.subf %57, %47 : vector<16x32xf32>
    %59 = math.exp %58 : vector<16x32xf32>
    %60 = arith.mulf %18, %59 : vector<16x32xf32>
    %61 = arith.truncf %60 : vector<16x32xf32> to vector<16x32xbf16>
    %62 = arith.truncf %26 : vector<16x64xf32> to vector<16x64xbf16>
    %63 = vector.extract_strided_slice %51 {offsets = [0, 0], sizes = [16, 8], strides = [1, 1]} : vector<16x32xbf16> to vector<16x8xbf16>
    %64 = vector.extract_strided_slice %56 {offsets = [0, 0], sizes = [16, 8], strides = [1, 1]} : vector<16x32xbf16> to vector<16x8xbf16>
    %65 = vector.extract_strided_slice %61 {offsets = [0, 0], sizes = [16, 8], strides = [1, 1]} : vector<16x32xbf16> to vector<16x8xbf16>
    %66 = vector.extract_strided_slice %62 {offsets = [0, 0], sizes = [16, 16], strides = [1, 1]} : vector<16x64xbf16> to vector<16x16xbf16>
    %67 = arith.truncf %5 : vector<16x8xf32> to vector<16x8xbf16>
    %cst_17 = arith.constant dense<0.000000e+00> : vector<16x16xf32>
    %68 = tpu.matmul %63, %67, %cst_17 {dimension_numbers = #tpu.dot_dimension_numbers<[1], [1], [0], [0], [0, 0, 1, 0], [], []>} : vector<16x8xbf16>, vector<16x8xbf16>, vector<16x16xf32> -> vector<16x16xf32>
    %cst_18 = arith.constant dense<0.000000e+00> : vector<16x16xf32>
    %69 = tpu.matmul %63, %64, %cst_18 {dimension_numbers = #tpu.dot_dimension_numbers<[1], [1], [0], [0], [0, 0, 1, 0], [], []>} : vector<16x8xbf16>, vector<16x8xbf16>, vector<16x16xf32> -> vector<16x16xf32>
    %cst_19 = arith.constant 0.000000e+00 : f32
    %70 = vector.broadcast %cst_19 : f32 to vector<16x16xf32>
    %71 = arith.select %2, %69, %70 : vector<16x16xi1>, vector<16x16xf32>
    %72 = arith.truncf %71 : vector<16x16xf32> to vector<16x16xbf16>
    %cst_20 = arith.constant dense<0.000000e+00> : vector<16x16xf32>
    %73 = tpu.matmul %72, %66, %cst_20 {dimension_numbers = #tpu.dot_dimension_numbers<[1], [0], [0], [1], [0, 0, 1, 1], [], []>} : vector<16x16xbf16>, vector<16x16xbf16>, vector<16x16xf32> -> vector<16x16xf32>
    %74 = arith.addf %68, %73 : vector<16x16xf32>
    %cst_21 = arith.constant dense<0.000000e+00> : vector<16xf32>
    %75 = vector.multi_reduction <add>, %74, %cst_21 [1] : vector<16x16xf32> to vector<16xf32>
    %76 = vector.shape_cast %75 : vector<16xf32> to vector<16x1xf32>
    %cst_22 = arith.constant 1.600000e+01 : f32
    %77 = vector.broadcast %cst_22 : f32 to vector<16x1xf32>
    %78 = arith.divf %76, %77 : vector<16x1xf32>
    %79 = vector.broadcast %78 : vector<16x1xf32> to vector<16x16xf32>
    %80 = arith.subf %74, %79 : vector<16x16xf32>
    %81 = arith.mulf %80, %80 : vector<16x16xf32>
    %cst_23 = arith.constant dense<0.000000e+00> : vector<16xf32>
    %82 = vector.multi_reduction <add>, %81, %cst_23 [1] : vector<16x16xf32> to vector<16xf32>
    %83 = vector.shape_cast %82 : vector<16xf32> to vector<16x1xf32>
    %cst_24 = arith.constant 1.600000e+01 : f32
    %84 = vector.broadcast %cst_24 : f32 to vector<16x1xf32>
    %85 = arith.divf %83, %84 : vector<16x1xf32>
    %86 = vector.broadcast %78 : vector<16x1xf32> to vector<16x16xf32>
    %87 = arith.subf %74, %86 : vector<16x16xf32>
    %cst_25 = arith.constant 9.99999974E-6 : f32
    %88 = vector.broadcast %cst_25 : f32 to vector<16x1xf32>
    %89 = arith.addf %85, %88 : vector<16x1xf32>
    %90 = math.rsqrt %89 : vector<16x1xf32>
    %91 = vector.broadcast %90 : vector<16x1xf32> to vector<16x16xf32>
    %92 = arith.mulf %87, %91 : vector<16x16xf32>
    %cst_26 = arith.constant dense<0.000000e+00> : vector<16x8xf32>
    %93 = tpu.matmul %66, %65, %cst_26 {dimension_numbers = #tpu.dot_dimension_numbers<[0], [0], [1], [1], [0, 1, 1, 1], [], []>} : vector<16x16xbf16>, vector<16x8xbf16>, vector<16x8xf32> -> vector<16x8xf32>
    %94 = vector.extract_strided_slice %48 {offsets = [0, 0], sizes = [1, 8], strides = [1, 1]} : vector<1x32xf32> to vector<1x8xf32>
    %95 = math.exp %94 : vector<1x8xf32>
    %96 = vector.broadcast %95 : vector<1x8xf32> to vector<16x8xf32>
    %97 = arith.mulf %5, %96 : vector<16x8xf32>
    %98 = arith.addf %97, %93 : vector<16x8xf32>
    %99 = vector.extract_strided_slice %51 {offsets = [0, 8], sizes = [16, 8], strides = [1, 1]} : vector<16x32xbf16> to vector<16x8xbf16>
    %100 = vector.extract_strided_slice %56 {offsets = [0, 8], sizes = [16, 8], strides = [1, 1]} : vector<16x32xbf16> to vector<16x8xbf16>
    %101 = vector.extract_strided_slice %61 {offsets = [0, 8], sizes = [16, 8], strides = [1, 1]} : vector<16x32xbf16> to vector<16x8xbf16>
    %102 = vector.extract_strided_slice %62 {offsets = [0, 16], sizes = [16, 16], strides = [1, 1]} : vector<16x64xbf16> to vector<16x16xbf16>
    %103 = arith.truncf %6 : vector<16x8xf32> to vector<16x8xbf16>
    %cst_27 = arith.constant dense<0.000000e+00> : vector<16x16xf32>
    %104 = tpu.matmul %99, %103, %cst_27 {dimension_numbers = #tpu.dot_dimension_numbers<[1], [1], [0], [0], [0, 0, 1, 0], [], []>} : vector<16x8xbf16>, vector<16x8xbf16>, vector<16x16xf32> -> vector<16x16xf32>
    %cst_28 = arith.constant dense<0.000000e+00> : vector<16x16xf32>
    %105 = tpu.matmul %99, %100, %cst_28 {dimension_numbers = #tpu.dot_dimension_numbers<[1], [1], [0], [0], [0, 0, 1, 0], [], []>} : vector<16x8xbf16>, vector<16x8xbf16>, vector<16x16xf32> -> vector<16x16xf32>
    %cst_29 = arith.constant 0.000000e+00 : f32
    %106 = vector.broadcast %cst_29 : f32 to vector<16x16xf32>
    %107 = arith.select %2, %105, %106 : vector<16x16xi1>, vector<16x16xf32>
    %108 = arith.truncf %107 : vector<16x16xf32> to vector<16x16xbf16>
    %cst_30 = arith.constant dense<0.000000e+00> : vector<16x16xf32>
    %109 = tpu.matmul %108, %102, %cst_30 {dimension_numbers = #tpu.dot_dimension_numbers<[1], [0], [0], [1], [0, 0, 1, 1], [], []>} : vector<16x16xbf16>, vector<16x16xbf16>, vector<16x16xf32> -> vector<16x16xf32>
    %110 = arith.addf %104, %109 : vector<16x16xf32>
    %cst_31 = arith.constant dense<0.000000e+00> : vector<16xf32>
    %111 = vector.multi_reduction <add>, %110, %cst_31 [1] : vector<16x16xf32> to vector<16xf32>
    %112 = vector.shape_cast %111 : vector<16xf32> to vector<16x1xf32>
    %cst_32 = arith.constant 1.600000e+01 : f32
    %113 = vector.broadcast %cst_32 : f32 to vector<16x1xf32>
    %114 = arith.divf %112, %113 : vector<16x1xf32>
    %115 = vector.broadcast %114 : vector<16x1xf32> to vector<16x16xf32>
    %116 = arith.subf %110, %115 : vector<16x16xf32>
    %117 = arith.mulf %116, %116 : vector<16x16xf32>
    %cst_33 = arith.constant dense<0.000000e+00> : vector<16xf32>
    %118 = vector.multi_reduction <add>, %117, %cst_33 [1] : vector<16x16xf32> to vector<16xf32>
    %119 = vector.shape_cast %118 : vector<16xf32> to vector<16x1xf32>
    %cst_34 = arith.constant 1.600000e+01 : f32
    %120 = vector.broadcast %cst_34 : f32 to vector<16x1xf32>
    %121 = arith.divf %119, %120 : vector<16x1xf32>
    %122 = vector.broadcast %114 : vector<16x1xf32> to vector<16x16xf32>
    %123 = arith.subf %110, %122 : vector<16x16xf32>
    %cst_35 = arith.constant 9.99999974E-6 : f32
    %124 = vector.broadcast %cst_35 : f32 to vector<16x1xf32>
    %125 = arith.addf %121, %124 : vector<16x1xf32>
    %126 = math.rsqrt %125 : vector<16x1xf32>
    %127 = vector.broadcast %126 : vector<16x1xf32> to vector<16x16xf32>
    %128 = arith.mulf %123, %127 : vector<16x16xf32>
    %cst_36 = arith.constant dense<0.000000e+00> : vector<16x8xf32>
    %129 = tpu.matmul %102, %101, %cst_36 {dimension_numbers = #tpu.dot_dimension_numbers<[0], [0], [1], [1], [0, 1, 1, 1], [], []>} : vector<16x16xbf16>, vector<16x8xbf16>, vector<16x8xf32> -> vector<16x8xf32>
    %130 = vector.extract_strided_slice %48 {offsets = [0, 8], sizes = [1, 8], strides = [1, 1]} : vector<1x32xf32> to vector<1x8xf32>
    %131 = math.exp %130 : vector<1x8xf32>
    %132 = vector.broadcast %131 : vector<1x8xf32> to vector<16x8xf32>
    %133 = arith.mulf %6, %132 : vector<16x8xf32>
    %134 = arith.addf %133, %129 : vector<16x8xf32>
    %135 = vector.extract_strided_slice %51 {offsets = [0, 16], sizes = [16, 8], strides = [1, 1]} : vector<16x32xbf16> to vector<16x8xbf16>
    %136 = vector.extract_strided_slice %56 {offsets = [0, 16], sizes = [16, 8], strides = [1, 1]} : vector<16x32xbf16> to vector<16x8xbf16>
    %137 = vector.extract_strided_slice %61 {offsets = [0, 16], sizes = [16, 8], strides = [1, 1]} : vector<16x32xbf16> to vector<16x8xbf16>
    %138 = vector.extract_strided_slice %62 {offsets = [0, 32], sizes = [16, 16], strides = [1, 1]} : vector<16x64xbf16> to vector<16x16xbf16>
    %139 = arith.truncf %7 : vector<16x8xf32> to vector<16x8xbf16>
    %cst_37 = arith.constant dense<0.000000e+00> : vector<16x16xf32>
    %140 = tpu.matmul %135, %139, %cst_37 {dimension_numbers = #tpu.dot_dimension_numbers<[1], [1], [0], [0], [0, 0, 1, 0], [], []>} : vector<16x8xbf16>, vector<16x8xbf16>, vector<16x16xf32> -> vector<16x16xf32>
    %cst_38 = arith.constant dense<0.000000e+00> : vector<16x16xf32>
    %141 = tpu.matmul %135, %136, %cst_38 {dimension_numbers = #tpu.dot_dimension_numbers<[1], [1], [0], [0], [0, 0, 1, 0], [], []>} : vector<16x8xbf16>, vector<16x8xbf16>, vector<16x16xf32> -> vector<16x16xf32>
    %cst_39 = arith.constant 0.000000e+00 : f32
    %142 = vector.broadcast %cst_39 : f32 to vector<16x16xf32>
    %143 = arith.select %2, %141, %142 : vector<16x16xi1>, vector<16x16xf32>
    %144 = arith.truncf %143 : vector<16x16xf32> to vector<16x16xbf16>
    %cst_40 = arith.constant dense<0.000000e+00> : vector<16x16xf32>
    %145 = tpu.matmul %144, %138, %cst_40 {dimension_numbers = #tpu.dot_dimension_numbers<[1], [0], [0], [1], [0, 0, 1, 1], [], []>} : vector<16x16xbf16>, vector<16x16xbf16>, vector<16x16xf32> -> vector<16x16xf32>
    %146 = arith.addf %140, %145 : vector<16x16xf32>
    %cst_41 = arith.constant dense<0.000000e+00> : vector<16xf32>
    %147 = vector.multi_reduction <add>, %146, %cst_41 [1] : vector<16x16xf32> to vector<16xf32>
    %148 = vector.shape_cast %147 : vector<16xf32> to vector<16x1xf32>
    %cst_42 = arith.constant 1.600000e+01 : f32
    %149 = vector.broadcast %cst_42 : f32 to vector<16x1xf32>
    %150 = arith.divf %148, %149 : vector<16x1xf32>
    %151 = vector.broadcast %150 : vector<16x1xf32> to vector<16x16xf32>
    %152 = arith.subf %146, %151 : vector<16x16xf32>
    %153 = arith.mulf %152, %152 : vector<16x16xf32>
    %cst_43 = arith.constant dense<0.000000e+00> : vector<16xf32>
    %154 = vector.multi_reduction <add>, %153, %cst_43 [1] : vector<16x16xf32> to vector<16xf32>
    %155 = vector.shape_cast %154 : vector<16xf32> to vector<16x1xf32>
    %cst_44 = arith.constant 1.600000e+01 : f32
    %156 = vector.broadcast %cst_44 : f32 to vector<16x1xf32>
    %157 = arith.divf %155, %156 : vector<16x1xf32>
    %158 = vector.broadcast %150 : vector<16x1xf32> to vector<16x16xf32>
    %159 = arith.subf %146, %158 : vector<16x16xf32>
    %cst_45 = arith.constant 9.99999974E-6 : f32
    %160 = vector.broadcast %cst_45 : f32 to vector<16x1xf32>
    %161 = arith.addf %157, %160 : vector<16x1xf32>
    %162 = math.rsqrt %161 : vector<16x1xf32>
    %163 = vector.broadcast %162 : vector<16x1xf32> to vector<16x16xf32>
    %164 = arith.mulf %159, %163 : vector<16x16xf32>
    %cst_46 = arith.constant dense<0.000000e+00> : vector<16x8xf32>
    %165 = tpu.matmul %138, %137, %cst_46 {dimension_numbers = #tpu.dot_dimension_numbers<[0], [0], [1], [1], [0, 1, 1, 1], [], []>} : vector<16x16xbf16>, vector<16x8xbf16>, vector<16x8xf32> -> vector<16x8xf32>
    %166 = vector.extract_strided_slice %48 {offsets = [0, 16], sizes = [1, 8], strides = [1, 1]} : vector<1x32xf32> to vector<1x8xf32>
    %167 = math.exp %166 : vector<1x8xf32>
    %168 = vector.broadcast %167 : vector<1x8xf32> to vector<16x8xf32>
    %169 = arith.mulf %7, %168 : vector<16x8xf32>
    %170 = arith.addf %169, %165 : vector<16x8xf32>
    %171 = vector.extract_strided_slice %51 {offsets = [0, 24], sizes = [16, 8], strides = [1, 1]} : vector<16x32xbf16> to vector<16x8xbf16>
    %172 = vector.extract_strided_slice %56 {offsets = [0, 24], sizes = [16, 8], strides = [1, 1]} : vector<16x32xbf16> to vector<16x8xbf16>
    %173 = vector.extract_strided_slice %61 {offsets = [0, 24], sizes = [16, 8], strides = [1, 1]} : vector<16x32xbf16> to vector<16x8xbf16>
    %174 = vector.extract_strided_slice %62 {offsets = [0, 48], sizes = [16, 16], strides = [1, 1]} : vector<16x64xbf16> to vector<16x16xbf16>
    %175 = arith.truncf %8 : vector<16x8xf32> to vector<16x8xbf16>
    %cst_47 = arith.constant dense<0.000000e+00> : vector<16x16xf32>
    %176 = tpu.matmul %171, %175, %cst_47 {dimension_numbers = #tpu.dot_dimension_numbers<[1], [1], [0], [0], [0, 0, 1, 0], [], []>} : vector<16x8xbf16>, vector<16x8xbf16>, vector<16x16xf32> -> vector<16x16xf32>
    %cst_48 = arith.constant dense<0.000000e+00> : vector<16x16xf32>
    %177 = tpu.matmul %171, %172, %cst_48 {dimension_numbers = #tpu.dot_dimension_numbers<[1], [1], [0], [0], [0, 0, 1, 0], [], []>} : vector<16x8xbf16>, vector<16x8xbf16>, vector<16x16xf32> -> vector<16x16xf32>
    %cst_49 = arith.constant 0.000000e+00 : f32
    %178 = vector.broadcast %cst_49 : f32 to vector<16x16xf32>
    %179 = arith.select %2, %177, %178 : vector<16x16xi1>, vector<16x16xf32>
    %180 = arith.truncf %179 : vector<16x16xf32> to vector<16x16xbf16>
    %cst_50 = arith.constant dense<0.000000e+00> : vector<16x16xf32>
    %181 = tpu.matmul %180, %174, %cst_50 {dimension_numbers = #tpu.dot_dimension_numbers<[1], [0], [0], [1], [0, 0, 1, 1], [], []>} : vector<16x16xbf16>, vector<16x16xbf16>, vector<16x16xf32> -> vector<16x16xf32>
    %182 = arith.addf %176, %181 : vector<16x16xf32>
    %cst_51 = arith.constant dense<0.000000e+00> : vector<16xf32>
    %183 = vector.multi_reduction <add>, %182, %cst_51 [1] : vector<16x16xf32> to vector<16xf32>
    %184 = vector.shape_cast %183 : vector<16xf32> to vector<16x1xf32>
    %cst_52 = arith.constant 1.600000e+01 : f32
    %185 = vector.broadcast %cst_52 : f32 to vector<16x1xf32>
    %186 = arith.divf %184, %185 : vector<16x1xf32>
    %187 = vector.broadcast %186 : vector<16x1xf32> to vector<16x16xf32>
    %188 = arith.subf %182, %187 : vector<16x16xf32>
    %189 = arith.mulf %188, %188 : vector<16x16xf32>
    %cst_53 = arith.constant dense<0.000000e+00> : vector<16xf32>
    %190 = vector.multi_reduction <add>, %189, %cst_53 [1] : vector<16x16xf32> to vector<16xf32>
    %191 = vector.shape_cast %190 : vector<16xf32> to vector<16x1xf32>
    %cst_54 = arith.constant 1.600000e+01 : f32
    %192 = vector.broadcast %cst_54 : f32 to vector<16x1xf32>
    %193 = arith.divf %191, %192 : vector<16x1xf32>
    %194 = vector.broadcast %186 : vector<16x1xf32> to vector<16x16xf32>
    %195 = arith.subf %182, %194 : vector<16x16xf32>
    %cst_55 = arith.constant 9.99999974E-6 : f32
    %196 = vector.broadcast %cst_55 : f32 to vector<16x1xf32>
    %197 = arith.addf %193, %196 : vector<16x1xf32>
    %198 = math.rsqrt %197 : vector<16x1xf32>
    %199 = vector.broadcast %198 : vector<16x1xf32> to vector<16x16xf32>
    %200 = arith.mulf %195, %199 : vector<16x16xf32>
    %cst_56 = arith.constant dense<0.000000e+00> : vector<16x8xf32>
    %201 = tpu.matmul %174, %173, %cst_56 {dimension_numbers = #tpu.dot_dimension_numbers<[0], [0], [1], [1], [0, 1, 1, 1], [], []>} : vector<16x16xbf16>, vector<16x8xbf16>, vector<16x8xf32> -> vector<16x8xf32>
    %202 = vector.extract_strided_slice %48 {offsets = [0, 24], sizes = [1, 8], strides = [1, 1]} : vector<1x32xf32> to vector<1x8xf32>
    %203 = math.exp %202 : vector<1x8xf32>
    %204 = vector.broadcast %203 : vector<1x8xf32> to vector<16x8xf32>
    %205 = arith.mulf %8, %204 : vector<16x8xf32>
    %206 = arith.addf %205, %201 : vector<16x8xf32>
    %207 = tpu.concatenate %92, %128, %164, %200 in 1 : vector<16x16xf32>, vector<16x16xf32>, vector<16x16xf32>, vector<16x16xf32> -> vector<16x64xf32>
    %208 = arith.truncf %207 : vector<16x64xf32> to vector<16x64xbf16>
    %c0_57 = arith.constant 0 : index
    %209 = arith.index_cast %10 : i32 to index
    %c0_58 = arith.constant 0 : index
    %210 = vector.load %arg6[%c0_57, %209, %c0_58] : memref<1x64x64xbf16, #tpu.memory_space<vmem>>, vector<1x16x64xbf16>
    %211 = vector.shape_cast %210 : vector<1x16x64xbf16> to vector<16x64xbf16>
    %212 = vector.shape_cast %208 : vector<16x64xbf16> to vector<1x16x64xbf16>
    tpu.vector_store %arg6[%c0_57, %209, %c0_58], %212 {strides = array<i32>} : memref<1x64x64xbf16, #tpu.memory_space<vmem>>, vector<1x16x64xbf16>,
    %c1_i32 = arith.constant 1 : i32
    %c16_i32_59 = arith.constant 16 : i32
    %213 = arith.muli %c1_i32, %c16_i32_59 : i32
    %214 = tpu.assume_multiple %213, 16 : i32
    %c0_60 = arith.constant 0 : index
    %215 = arith.index_cast %214 : i32 to index
    %c0_61 = arith.constant 0 : index
    %216 = vector.load %arg2[%c0_60, %215, %c0_61] : memref<1x64x32xbf16, #tpu.memory_space<vmem>>, vector<1x16x32xbf16>
    %217 = vector.shape_cast %216 : vector<1x16x32xbf16> to vector<16x32xbf16>
    %218 = arith.extf %217 : vector<16x32xbf16> to vector<16x32xf32>
    %c0_62 = arith.constant 0 : index
    %219 = arith.index_cast %214 : i32 to index
    %c0_63 = arith.constant 0 : index
    %220 = vector.load %arg3[%c0_62, %219, %c0_63] : memref<1x64x32xbf16, #tpu.memory_space<vmem>>, vector<1x16x32xbf16>
    %221 = vector.shape_cast %220 : vector<1x16x32xbf16> to vector<16x32xbf16>
    %222 = arith.extf %221 : vector<16x32xbf16> to vector<16x32xf32>
    %c0_64 = arith.constant 0 : index
    %223 = arith.index_cast %214 : i32 to index
    %c0_65 = arith.constant 0 : index
    %224 = vector.load %arg4[%c0_64, %223, %c0_65] : memref<1x64x32xbf16, #tpu.memory_space<vmem>>, vector<1x16x32xbf16>
    %225 = vector.shape_cast %224 : vector<1x16x32xbf16> to vector<16x32xbf16>
    %226 = arith.extf %225 : vector<16x32xbf16> to vector<16x32xf32>
    %c0_66 = arith.constant 0 : index
    %227 = arith.index_cast %214 : i32 to index
    %c0_67 = arith.constant 0 : index
    %228 = vector.load %arg5[%c0_66, %227, %c0_67] : memref<1x64x64xbf16, #tpu.memory_space<vmem>>, vector<1x16x64xbf16>
    %229 = vector.shape_cast %228 : vector<1x16x64xbf16> to vector<16x64xbf16>
    %230 = arith.extf %229 : vector<16x64xbf16> to vector<16x64xf32>
    %cst_68 = arith.constant 0.000000e+00 : f32
    %231 = vector.broadcast %cst_68 : f32 to vector<16x32xf32>
    %232 = arith.subf %231, %226 : vector<16x32xf32>
    %cst_69 = arith.constant 0.000000e+00 : f32
    %233 = vector.broadcast %cst_69 : f32 to vector<16x32xf32>
    %234 = arith.maximumf %232, %233 : vector<16x32xf32>
    %235 = vector.broadcast %cst_69 : f32 to vector<16x32xf32>
    %236 = arith.subf %232, %235 : vector<16x32xf32>
    %237 = arith.cmpf one, %236, %236 : vector<16x32xf32>
    %238 = vector.broadcast %cst_69 : f32 to vector<16x32xf32>
    %239 = arith.addf %232, %238 : vector<16x32xf32>
    %240 = math.absf %236 : vector<16x32xf32>
    %cst_70 = arith.constant 0.000000e+00 : f32
    %241 = vector.broadcast %cst_70 : f32 to vector<16x32xf32>
    %242 = arith.subf %241, %240 : vector<16x32xf32>
    %243 = math.exp %242 : vector<16x32xf32>
    %244 = math.log1p %243 : vector<16x32xf32>
    %245 = arith.addf %234, %244 : vector<16x32xf32>
    %246 = arith.select %237, %239, %245 : vector<16x32xi1>, vector<16x32xf32>
    %cst_71 = arith.constant 0.000000e+00 : f32
    %247 = vector.broadcast %cst_71 : f32 to vector<16x32xf32>
    %248 = arith.subf %247, %246 : vector<16x32xf32>
    %cst_72 = arith.constant 6.250000e-02 : f32
    %249 = vector.broadcast %cst_72 : f32 to vector<16x32xf32>
    %250 = arith.mulf %248, %249 : vector<16x32xf32>
    %cst_73 = arith.constant dense<0.000000e+00> : vector<16x32xf32>
    %251 = tpu.matmul %4, %250, %cst_73 {dimension_numbers = #tpu.dot_dimension_numbers<[1], [0], [0], [1], [0, 0, 1, 1], [], []>} : vector<16x16xf32>, vector<16x32xf32>, vector<16x32xf32> -> vector<16x32xf32>
    %252 = vector.extract_strided_slice %251 {offsets = [15, 0], sizes = [1, 32], strides = [1, 1]} : vector<16x32xf32> to vector<1x32xf32>
    %253 = math.exp %251 : vector<16x32xf32>
    %254 = arith.mulf %218, %253 : vector<16x32xf32>
    %255 = arith.truncf %254 : vector<16x32xf32> to vector<16x32xbf16>
    %cst_74 = arith.constant 0.000000e+00 : f32
    %256 = vector.broadcast %cst_74 : f32 to vector<16x32xf32>
    %257 = arith.subf %256, %251 : vector<16x32xf32>
    %258 = math.exp %257 : vector<16x32xf32>
    %259 = arith.mulf %222, %258 : vector<16x32xf32>
    %260 = arith.truncf %259 : vector<16x32xf32> to vector<16x32xbf16>
    %261 = vector.broadcast %252 : vector<1x32xf32> to vector<16x32xf32>
    %262 = arith.subf %261, %251 : vector<16x32xf32>
    %263 = math.exp %262 : vector<16x32xf32>
    %264 = arith.mulf %222, %263 : vector<16x32xf32>
    %265 = arith.truncf %264 : vector<16x32xf32> to vector<16x32xbf16>
    %266 = arith.truncf %230 : vector<16x64xf32> to vector<16x64xbf16>
    %267 = vector.extract_strided_slice %255 {offsets = [0, 0], sizes = [16, 8], strides = [1, 1]} : vector<16x32xbf16> to vector<16x8xbf16>
    %268 = vector.extract_strided_slice %260 {offsets = [0, 0], sizes = [16, 8], strides = [1, 1]} : vector<16x32xbf16> to vector<16x8xbf16>
    %269 = vector.extract_strided_slice %265 {offsets = [0, 0], sizes = [16, 8], strides = [1, 1]} : vector<16x32xbf16> to vector<16x8xbf16>
    %270 = vector.extract_strided_slice %266 {offsets = [0, 0], sizes = [16, 16], strides = [1, 1]} : vector<16x64xbf16> to vector<16x16xbf16>
    %271 = arith.truncf %98 : vector<16x8xf32> to vector<16x8xbf16>
    %cst_75 = arith.constant dense<0.000000e+00> : vector<16x16xf32>
    %272 = tpu.matmul %267, %271, %cst_75 {dimension_numbers = #tpu.dot_dimension_numbers<[1], [1], [0], [0], [0, 0, 1, 0], [], []>} : vector<16x8xbf16>, vector<16x8xbf16>, vector<16x16xf32> -> vector<16x16xf32>
    %cst_76 = arith.constant dense<0.000000e+00> : vector<16x16xf32>
    %273 = tpu.matmul %267, %268, %cst_76 {dimension_numbers = #tpu.dot_dimension_numbers<[1], [1], [0], [0], [0, 0, 1, 0], [], []>} : vector<16x8xbf16>, vector<16x8xbf16>, vector<16x16xf32> -> vector<16x16xf32>
    %cst_77 = arith.constant 0.000000e+00 : f32
    %274 = vector.broadcast %cst_77 : f32 to vector<16x16xf32>
    %275 = arith.select %2, %273, %274 : vector<16x16xi1>, vector<16x16xf32>
    %276 = arith.truncf %275 : vector<16x16xf32> to vector<16x16xbf16>
    %cst_78 = arith.constant dense<0.000000e+00> : vector<16x16xf32>
    %277 = tpu.matmul %276, %270, %cst_78 {dimension_numbers = #tpu.dot_dimension_numbers<[1], [0], [0], [1], [0, 0, 1, 1], [], []>} : vector<16x16xbf16>, vector<16x16xbf16>, vector<16x16xf32> -> vector<16x16xf32>
    %278 = arith.addf %272, %277 : vector<16x16xf32>
    %cst_79 = arith.constant dense<0.000000e+00> : vector<16xf32>
    %279 = vector.multi_reduction <add>, %278, %cst_79 [1] : vector<16x16xf32> to vector<16xf32>
    %280 = vector.shape_cast %279 : vector<16xf32> to vector<16x1xf32>
    %cst_80 = arith.constant 1.600000e+01 : f32
    %281 = vector.broadcast %cst_80 : f32 to vector<16x1xf32>
    %282 = arith.divf %280, %281 : vector<16x1xf32>
    %283 = vector.broadcast %282 : vector<16x1xf32> to vector<16x16xf32>
    %284 = arith.subf %278, %283 : vector<16x16xf32>
    %285 = arith.mulf %284, %284 : vector<16x16xf32>
    %cst_81 = arith.constant dense<0.000000e+00> : vector<16xf32>
    %286 = vector.multi_reduction <add>, %285, %cst_81 [1] : vector<16x16xf32> to vector<16xf32>
    %287 = vector.shape_cast %286 : vector<16xf32> to vector<16x1xf32>
    %cst_82 = arith.constant 1.600000e+01 : f32
    %288 = vector.broadcast %cst_82 : f32 to vector<16x1xf32>
    %289 = arith.divf %287, %288 : vector<16x1xf32>
    %290 = vector.broadcast %282 : vector<16x1xf32> to vector<16x16xf32>
    %291 = arith.subf %278, %290 : vector<16x16xf32>
    %cst_83 = arith.constant 9.99999974E-6 : f32
    %292 = vector.broadcast %cst_83 : f32 to vector<16x1xf32>
    %293 = arith.addf %289, %292 : vector<16x1xf32>
    %294 = math.rsqrt %293 : vector<16x1xf32>
    %295 = vector.broadcast %294 : vector<16x1xf32> to vector<16x16xf32>
    %296 = arith.mulf %291, %295 : vector<16x16xf32>
    %cst_84 = arith.constant dense<0.000000e+00> : vector<16x8xf32>
    %297 = tpu.matmul %270, %269, %cst_84 {dimension_numbers = #tpu.dot_dimension_numbers<[0], [0], [1], [1], [0, 1, 1, 1], [], []>} : vector<16x16xbf16>, vector<16x8xbf16>, vector<16x8xf32> -> vector<16x8xf32>
    %298 = vector.extract_strided_slice %252 {offsets = [0, 0], sizes = [1, 8], strides = [1, 1]} : vector<1x32xf32> to vector<1x8xf32>
    %299 = math.exp %298 : vector<1x8xf32>
    %300 = vector.broadcast %299 : vector<1x8xf32> to vector<16x8xf32>
    %301 = arith.mulf %98, %300 : vector<16x8xf32>
    %302 = arith.addf %301, %297 : vector<16x8xf32>
    %303 = vector.extract_strided_slice %255 {offsets = [0, 8], sizes = [16, 8], strides = [1, 1]} : vector<16x32xbf16> to vector<16x8xbf16>
    %304 = vector.extract_strided_slice %260 {offsets = [0, 8], sizes = [16, 8], strides = [1, 1]} : vector<16x32xbf16> to vector<16x8xbf16>
    %305 = vector.extract_strided_slice %265 {offsets = [0, 8], sizes = [16, 8], strides = [1, 1]} : vector<16x32xbf16> to vector<16x8xbf16>
    %306 = vector.extract_strided_slice %266 {offsets = [0, 16], sizes = [16, 16], strides = [1, 1]} : vector<16x64xbf16> to vector<16x16xbf16>
    %307 = arith.truncf %134 : vector<16x8xf32> to vector<16x8xbf16>
    %cst_85 = arith.constant dense<0.000000e+00> : vector<16x16xf32>
    %308 = tpu.matmul %303, %307, %cst_85 {dimension_numbers = #tpu.dot_dimension_numbers<[1], [1], [0], [0], [0, 0, 1, 0], [], []>} : vector<16x8xbf16>, vector<16x8xbf16>, vector<16x16xf32> -> vector<16x16xf32>
    %cst_86 = arith.constant dense<0.000000e+00> : vector<16x16xf32>
    %309 = tpu.matmul %303, %304, %cst_86 {dimension_numbers = #tpu.dot_dimension_numbers<[1], [1], [0], [0], [0, 0, 1, 0], [], []>} : vector<16x8xbf16>, vector<16x8xbf16>, vector<16x16xf32> -> vector<16x16xf32>
    %cst_87 = arith.constant 0.000000e+00 : f32
    %310 = vector.broadcast %cst_87 : f32 to vector<16x16xf32>
    %311 = arith.select %2, %309, %310 : vector<16x16xi1>, vector<16x16xf32>
    %312 = arith.truncf %311 : vector<16x16xf32> to vector<16x16xbf16>
    %cst_88 = arith.constant dense<0.000000e+00> : vector<16x16xf32>
    %313 = tpu.matmul %312, %306, %cst_88 {dimension_numbers = #tpu.dot_dimension_numbers<[1], [0], [0], [1], [0, 0, 1, 1], [], []>} : vector<16x16xbf16>, vector<16x16xbf16>, vector<16x16xf32> -> vector<16x16xf32>
    %314 = arith.addf %308, %313 : vector<16x16xf32>
    %cst_89 = arith.constant dense<0.000000e+00> : vector<16xf32>
    %315 = vector.multi_reduction <add>, %314, %cst_89 [1] : vector<16x16xf32> to vector<16xf32>
    %316 = vector.shape_cast %315 : vector<16xf32> to vector<16x1xf32>
    %cst_90 = arith.constant 1.600000e+01 : f32
    %317 = vector.broadcast %cst_90 : f32 to vector<16x1xf32>
    %318 = arith.divf %316, %317 : vector<16x1xf32>
    %319 = vector.broadcast %318 : vector<16x1xf32> to vector<16x16xf32>
    %320 = arith.subf %314, %319 : vector<16x16xf32>
    %321 = arith.mulf %320, %320 : vector<16x16xf32>
    %cst_91 = arith.constant dense<0.000000e+00> : vector<16xf32>
    %322 = vector.multi_reduction <add>, %321, %cst_91 [1] : vector<16x16xf32> to vector<16xf32>
    %323 = vector.shape_cast %322 : vector<16xf32> to vector<16x1xf32>
    %cst_92 = arith.constant 1.600000e+01 : f32
    %324 = vector.broadcast %cst_92 : f32 to vector<16x1xf32>
    %325 = arith.divf %323, %324 : vector<16x1xf32>
    %326 = vector.broadcast %318 : vector<16x1xf32> to vector<16x16xf32>
    %327 = arith.subf %314, %326 : vector<16x16xf32>
    %cst_93 = arith.constant 9.99999974E-6 : f32
    %328 = vector.broadcast %cst_93 : f32 to vector<16x1xf32>
    %329 = arith.addf %325, %328 : vector<16x1xf32>
    %330 = math.rsqrt %329 : vector<16x1xf32>
    %331 = vector.broadcast %330 : vector<16x1xf32> to vector<16x16xf32>
    %332 = arith.mulf %327, %331 : vector<16x16xf32>
    %cst_94 = arith.constant dense<0.000000e+00> : vector<16x8xf32>
    %333 = tpu.matmul %306, %305, %cst_94 {dimension_numbers = #tpu.dot_dimension_numbers<[0], [0], [1], [1], [0, 1, 1, 1], [], []>} : vector<16x16xbf16>, vector<16x8xbf16>, vector<16x8xf32> -> vector<16x8xf32>
    %334 = vector.extract_strided_slice %252 {offsets = [0, 8], sizes = [1, 8], strides = [1, 1]} : vector<1x32xf32> to vector<1x8xf32>
    %335 = math.exp %334 : vector<1x8xf32>
    %336 = vector.broadcast %335 : vector<1x8xf32> to vector<16x8xf32>
    %337 = arith.mulf %134, %336 : vector<16x8xf32>
    %338 = arith.addf %337, %333 : vector<16x8xf32>
    %339 = vector.extract_strided_slice %255 {offsets = [0, 16], sizes = [16, 8], strides = [1, 1]} : vector<16x32xbf16> to vector<16x8xbf16>
    %340 = vector.extract_strided_slice %260 {offsets = [0, 16], sizes = [16, 8], strides = [1, 1]} : vector<16x32xbf16> to vector<16x8xbf16>
    %341 = vector.extract_strided_slice %265 {offsets = [0, 16], sizes = [16, 8], strides = [1, 1]} : vector<16x32xbf16> to vector<16x8xbf16>
    %342 = vector.extract_strided_slice %266 {offsets = [0, 32], sizes = [16, 16], strides = [1, 1]} : vector<16x64xbf16> to vector<16x16xbf16>
    %343 = arith.truncf %170 : vector<16x8xf32> to vector<16x8xbf16>
    %cst_95 = arith.constant dense<0.000000e+00> : vector<16x16xf32>
    %344 = tpu.matmul %339, %343, %cst_95 {dimension_numbers = #tpu.dot_dimension_numbers<[1], [1], [0], [0], [0, 0, 1, 0], [], []>} : vector<16x8xbf16>, vector<16x8xbf16>, vector<16x16xf32> -> vector<16x16xf32>
    %cst_96 = arith.constant dense<0.000000e+00> : vector<16x16xf32>
    %345 = tpu.matmul %339, %340, %cst_96 {dimension_numbers = #tpu.dot_dimension_numbers<[1], [1], [0], [0], [0, 0, 1, 0], [], []>} : vector<16x8xbf16>, vector<16x8xbf16>, vector<16x16xf32> -> vector<16x16xf32>
    %cst_97 = arith.constant 0.000000e+00 : f32
    %346 = vector.broadcast %cst_97 : f32 to vector<16x16xf32>
    %347 = arith.select %2, %345, %346 : vector<16x16xi1>, vector<16x16xf32>
    %348 = arith.truncf %347 : vector<16x16xf32> to vector<16x16xbf16>
    %cst_98 = arith.constant dense<0.000000e+00> : vector<16x16xf32>
    %349 = tpu.matmul %348, %342, %cst_98 {dimension_numbers = #tpu.dot_dimension_numbers<[1], [0], [0], [1], [0, 0, 1, 1], [], []>} : vector<16x16xbf16>, vector<16x16xbf16>, vector<16x16xf32> -> vector<16x16xf32>
    %350 = arith.addf %344, %349 : vector<16x16xf32>
    %cst_99 = arith.constant dense<0.000000e+00> : vector<16xf32>
    %351 = vector.multi_reduction <add>, %350, %cst_99 [1] : vector<16x16xf32> to vector<16xf32>
    %352 = vector.shape_cast %351 : vector<16xf32> to vector<16x1xf32>
    %cst_100 = arith.constant 1.600000e+01 : f32
    %353 = vector.broadcast %cst_100 : f32 to vector<16x1xf32>
    %354 = arith.divf %352, %353 : vector<16x1xf32>
    %355 = vector.broadcast %354 : vector<16x1xf32> to vector<16x16xf32>
    %356 = arith.subf %350, %355 : vector<16x16xf32>
    %357 = arith.mulf %356, %356 : vector<16x16xf32>
    %cst_101 = arith.constant dense<0.000000e+00> : vector<16xf32>
    %358 = vector.multi_reduction <add>, %357, %cst_101 [1] : vector<16x16xf32> to vector<16xf32>
    %359 = vector.shape_cast %358 : vector<16xf32> to vector<16x1xf32>
    %cst_102 = arith.constant 1.600000e+01 : f32
    %360 = vector.broadcast %cst_102 : f32 to vector<16x1xf32>
    %361 = arith.divf %359, %360 : vector<16x1xf32>
    %362 = vector.broadcast %354 : vector<16x1xf32> to vector<16x16xf32>
    %363 = arith.subf %350, %362 : vector<16x16xf32>
    %cst_103 = arith.constant 9.99999974E-6 : f32
    %364 = vector.broadcast %cst_103 : f32 to vector<16x1xf32>
    %365 = arith.addf %361, %364 : vector<16x1xf32>
    %366 = math.rsqrt %365 : vector<16x1xf32>
    %367 = vector.broadcast %366 : vector<16x1xf32> to vector<16x16xf32>
    %368 = arith.mulf %363, %367 : vector<16x16xf32>
    %cst_104 = arith.constant dense<0.000000e+00> : vector<16x8xf32>
    %369 = tpu.matmul %342, %341, %cst_104 {dimension_numbers = #tpu.dot_dimension_numbers<[0], [0], [1], [1], [0, 1, 1, 1], [], []>} : vector<16x16xbf16>, vector<16x8xbf16>, vector<16x8xf32> -> vector<16x8xf32>
    %370 = vector.extract_strided_slice %252 {offsets = [0, 16], sizes = [1, 8], strides = [1, 1]} : vector<1x32xf32> to vector<1x8xf32>
    %371 = math.exp %370 : vector<1x8xf32>
    %372 = vector.broadcast %371 : vector<1x8xf32> to vector<16x8xf32>
    %373 = arith.mulf %170, %372 : vector<16x8xf32>
    %374 = arith.addf %373, %369 : vector<16x8xf32>
    %375 = vector.extract_strided_slice %255 {offsets = [0, 24], sizes = [16, 8], strides = [1, 1]} : vector<16x32xbf16> to vector<16x8xbf16>
    %376 = vector.extract_strided_slice %260 {offsets = [0, 24], sizes = [16, 8], strides = [1, 1]} : vector<16x32xbf16> to vector<16x8xbf16>
    %377 = vector.extract_strided_slice %265 {offsets = [0, 24], sizes = [16, 8], strides = [1, 1]} : vector<16x32xbf16> to vector<16x8xbf16>
    %378 = vector.extract_strided_slice %266 {offsets = [0, 48], sizes = [16, 16], strides = [1, 1]} : vector<16x64xbf16> to vector<16x16xbf16>
    %379 = arith.truncf %206 : vector<16x8xf32> to vector<16x8xbf16>
    %cst_105 = arith.constant dense<0.000000e+00> : vector<16x16xf32>
    %380 = tpu.matmul %375, %379, %cst_105 {dimension_numbers = #tpu.dot_dimension_numbers<[1], [1], [0], [0], [0, 0, 1, 0], [], []>} : vector<16x8xbf16>, vector<16x8xbf16>, vector<16x16xf32> -> vector<16x16xf32>
    %cst_106 = arith.constant dense<0.000000e+00> : vector<16x16xf32>
    %381 = tpu.matmul %375, %376, %cst_106 {dimension_numbers = #tpu.dot_dimension_numbers<[1], [1], [0], [0], [0, 0, 1, 0], [], []>} : vector<16x8xbf16>, vector<16x8xbf16>, vector<16x16xf32> -> vector<16x16xf32>
    %cst_107 = arith.constant 0.000000e+00 : f32
    %382 = vector.broadcast %cst_107 : f32 to vector<16x16xf32>
    %383 = arith.select %2, %381, %382 : vector<16x16xi1>, vector<16x16xf32>
    %384 = arith.truncf %383 : vector<16x16xf32> to vector<16x16xbf16>
    %cst_108 = arith.constant dense<0.000000e+00> : vector<16x16xf32>
    %385 = tpu.matmul %384, %378, %cst_108 {dimension_numbers = #tpu.dot_dimension_numbers<[1], [0], [0], [1], [0, 0, 1, 1], [], []>} : vector<16x16xbf16>, vector<16x16xbf16>, vector<16x16xf32> -> vector<16x16xf32>
    %386 = arith.addf %380, %385 : vector<16x16xf32>
    %cst_109 = arith.constant dense<0.000000e+00> : vector<16xf32>
    %387 = vector.multi_reduction <add>, %386, %cst_109 [1] : vector<16x16xf32> to vector<16xf32>
    %388 = vector.shape_cast %387 : vector<16xf32> to vector<16x1xf32>
    %cst_110 = arith.constant 1.600000e+01 : f32
    %389 = vector.broadcast %cst_110 : f32 to vector<16x1xf32>
    %390 = arith.divf %388, %389 : vector<16x1xf32>
    %391 = vector.broadcast %390 : vector<16x1xf32> to vector<16x16xf32>
    %392 = arith.subf %386, %391 : vector<16x16xf32>
    %393 = arith.mulf %392, %392 : vector<16x16xf32>
    %cst_111 = arith.constant dense<0.000000e+00> : vector<16xf32>
    %394 = vector.multi_reduction <add>, %393, %cst_111 [1] : vector<16x16xf32> to vector<16xf32>
    %395 = vector.shape_cast %394 : vector<16xf32> to vector<16x1xf32>
    %cst_112 = arith.constant 1.600000e+01 : f32
    %396 = vector.broadcast %cst_112 : f32 to vector<16x1xf32>
    %397 = arith.divf %395, %396 : vector<16x1xf32>
    %398 = vector.broadcast %390 : vector<16x1xf32> to vector<16x16xf32>
    %399 = arith.subf %386, %398 : vector<16x16xf32>
    %cst_113 = arith.constant 9.99999974E-6 : f32
    %400 = vector.broadcast %cst_113 : f32 to vector<16x1xf32>
    %401 = arith.addf %397, %400 : vector<16x1xf32>
    %402 = math.rsqrt %401 : vector<16x1xf32>
    %403 = vector.broadcast %402 : vector<16x1xf32> to vector<16x16xf32>
    %404 = arith.mulf %399, %403 : vector<16x16xf32>
    %cst_114 = arith.constant dense<0.000000e+00> : vector<16x8xf32>
    %405 = tpu.matmul %378, %377, %cst_114 {dimension_numbers = #tpu.dot_dimension_numbers<[0], [0], [1], [1], [0, 1, 1, 1], [], []>} : vector<16x16xbf16>, vector<16x8xbf16>, vector<16x8xf32> -> vector<16x8xf32>
    %406 = vector.extract_strided_slice %252 {offsets = [0, 24], sizes = [1, 8], strides = [1, 1]} : vector<1x32xf32> to vector<1x8xf32>
    %407 = math.exp %406 : vector<1x8xf32>
    %408 = vector.broadcast %407 : vector<1x8xf32> to vector<16x8xf32>
    %409 = arith.mulf %206, %408 : vector<16x8xf32>
    %410 = arith.addf %409, %405 : vector<16x8xf32>
    %411 = tpu.concatenate %296, %332, %368, %404 in 1 : vector<16x16xf32>, vector<16x16xf32>, vector<16x16xf32>, vector<16x16xf32> -> vector<16x64xf32>
    %412 = arith.truncf %411 : vector<16x64xf32> to vector<16x64xbf16>
    %c0_115 = arith.constant 0 : index
    %413 = arith.index_cast %214 : i32 to index
    %c0_116 = arith.constant 0 : index
    %414 = vector.load %arg6[%c0_115, %413, %c0_116] : memref<1x64x64xbf16, #tpu.memory_space<vmem>>, vector<1x16x64xbf16>
    %415 = vector.shape_cast %414 : vector<1x16x64xbf16> to vector<16x64xbf16>
    %416 = vector.shape_cast %412 : vector<16x64xbf16> to vector<1x16x64xbf16>
    tpu.vector_store %arg6[%c0_115, %413, %c0_116], %416 {strides = array<i32>} : memref<1x64x64xbf16, #tpu.memory_space<vmem>>, vector<1x16x64xbf16>,
    %c2_i32 = arith.constant 2 : i32
    %c16_i32_117 = arith.constant 16 : i32
    %417 = arith.muli %c2_i32, %c16_i32_117 : i32
    %418 = tpu.assume_multiple %417, 16 : i32
    %c0_118 = arith.constant 0 : index
    %419 = arith.index_cast %418 : i32 to index
    %c0_119 = arith.constant 0 : index
    %420 = vector.load %arg2[%c0_118, %419, %c0_119] : memref<1x64x32xbf16, #tpu.memory_space<vmem>>, vector<1x16x32xbf16>
    %421 = vector.shape_cast %420 : vector<1x16x32xbf16> to vector<16x32xbf16>
    %422 = arith.extf %421 : vector<16x32xbf16> to vector<16x32xf32>
    %c0_120 = arith.constant 0 : index
    %423 = arith.index_cast %418 : i32 to index
    %c0_121 = arith.constant 0 : index
    %424 = vector.load %arg3[%c0_120, %423, %c0_121] : memref<1x64x32xbf16, #tpu.memory_space<vmem>>, vector<1x16x32xbf16>
    %425 = vector.shape_cast %424 : vector<1x16x32xbf16> to vector<16x32xbf16>
    %426 = arith.extf %425 : vector<16x32xbf16> to vector<16x32xf32>
    %c0_122 = arith.constant 0 : index
    %427 = arith.index_cast %418 : i32 to index
    %c0_123 = arith.constant 0 : index
    %428 = vector.load %arg4[%c0_122, %427, %c0_123] : memref<1x64x32xbf16, #tpu.memory_space<vmem>>, vector<1x16x32xbf16>
    %429 = vector.shape_cast %428 : vector<1x16x32xbf16> to vector<16x32xbf16>
    %430 = arith.extf %429 : vector<16x32xbf16> to vector<16x32xf32>
    %c0_124 = arith.constant 0 : index
    %431 = arith.index_cast %418 : i32 to index
    %c0_125 = arith.constant 0 : index
    %432 = vector.load %arg5[%c0_124, %431, %c0_125] : memref<1x64x64xbf16, #tpu.memory_space<vmem>>, vector<1x16x64xbf16>
    %433 = vector.shape_cast %432 : vector<1x16x64xbf16> to vector<16x64xbf16>
    %434 = arith.extf %433 : vector<16x64xbf16> to vector<16x64xf32>
    %cst_126 = arith.constant 0.000000e+00 : f32
    %435 = vector.broadcast %cst_126 : f32 to vector<16x32xf32>
    %436 = arith.subf %435, %430 : vector<16x32xf32>
    %cst_127 = arith.constant 0.000000e+00 : f32
    %437 = vector.broadcast %cst_127 : f32 to vector<16x32xf32>
    %438 = arith.maximumf %436, %437 : vector<16x32xf32>
    %439 = vector.broadcast %cst_127 : f32 to vector<16x32xf32>
    %440 = arith.subf %436, %439 : vector<16x32xf32>
    %441 = arith.cmpf one, %440, %440 : vector<16x32xf32>
    %442 = vector.broadcast %cst_127 : f32 to vector<16x32xf32>
    %443 = arith.addf %436, %442 : vector<16x32xf32>
    %444 = math.absf %440 : vector<16x32xf32>
    %cst_128 = arith.constant 0.000000e+00 : f32
    %445 = vector.broadcast %cst_128 : f32 to vector<16x32xf32>
    %446 = arith.subf %445, %444 : vector<16x32xf32>
    %447 = math.exp %446 : vector<16x32xf32>
    %448 = math.log1p %447 : vector<16x32xf32>
    %449 = arith.addf %438, %448 : vector<16x32xf32>
    %450 = arith.select %441, %443, %449 : vector<16x32xi1>, vector<16x32xf32>
    %cst_129 = arith.constant 0.000000e+00 : f32
    %451 = vector.broadcast %cst_129 : f32 to vector<16x32xf32>
    %452 = arith.subf %451, %450 : vector<16x32xf32>
    %cst_130 = arith.constant 6.250000e-02 : f32
    %453 = vector.broadcast %cst_130 : f32 to vector<16x32xf32>
    %454 = arith.mulf %452, %453 : vector<16x32xf32>
    %cst_131 = arith.constant dense<0.000000e+00> : vector<16x32xf32>
    %455 = tpu.matmul %4, %454, %cst_131 {dimension_numbers = #tpu.dot_dimension_numbers<[1], [0], [0], [1], [0, 0, 1, 1], [], []>} : vector<16x16xf32>, vector<16x32xf32>, vector<16x32xf32> -> vector<16x32xf32>
    %456 = vector.extract_strided_slice %455 {offsets = [15, 0], sizes = [1, 32], strides = [1, 1]} : vector<16x32xf32> to vector<1x32xf32>
    %457 = math.exp %455 : vector<16x32xf32>
    %458 = arith.mulf %422, %457 : vector<16x32xf32>
    %459 = arith.truncf %458 : vector<16x32xf32> to vector<16x32xbf16>
    %cst_132 = arith.constant 0.000000e+00 : f32
    %460 = vector.broadcast %cst_132 : f32 to vector<16x32xf32>
    %461 = arith.subf %460, %455 : vector<16x32xf32>
    %462 = math.exp %461 : vector<16x32xf32>
    %463 = arith.mulf %426, %462 : vector<16x32xf32>
    %464 = arith.truncf %463 : vector<16x32xf32> to vector<16x32xbf16>
    %465 = vector.broadcast %456 : vector<1x32xf32> to vector<16x32xf32>
    %466 = arith.subf %465, %455 : vector<16x32xf32>
    %467 = math.exp %466 : vector<16x32xf32>
    %468 = arith.mulf %426, %467 : vector<16x32xf32>
    %469 = arith.truncf %468 : vector<16x32xf32> to vector<16x32xbf16>
    %470 = arith.truncf %434 : vector<16x64xf32> to vector<16x64xbf16>
    %471 = vector.extract_strided_slice %459 {offsets = [0, 0], sizes = [16, 8], strides = [1, 1]} : vector<16x32xbf16> to vector<16x8xbf16>
    %472 = vector.extract_strided_slice %464 {offsets = [0, 0], sizes = [16, 8], strides = [1, 1]} : vector<16x32xbf16> to vector<16x8xbf16>
    %473 = vector.extract_strided_slice %469 {offsets = [0, 0], sizes = [16, 8], strides = [1, 1]} : vector<16x32xbf16> to vector<16x8xbf16>
    %474 = vector.extract_strided_slice %470 {offsets = [0, 0], sizes = [16, 16], strides = [1, 1]} : vector<16x64xbf16> to vector<16x16xbf16>
    %475 = arith.truncf %302 : vector<16x8xf32> to vector<16x8xbf16>
    %cst_133 = arith.constant dense<0.000000e+00> : vector<16x16xf32>
    %476 = tpu.matmul %471, %475, %cst_133 {dimension_numbers = #tpu.dot_dimension_numbers<[1], [1], [0], [0], [0, 0, 1, 0], [], []>} : vector<16x8xbf16>, vector<16x8xbf16>, vector<16x16xf32> -> vector<16x16xf32>
    %cst_134 = arith.constant dense<0.000000e+00> : vector<16x16xf32>
    %477 = tpu.matmul %471, %472, %cst_134 {dimension_numbers = #tpu.dot_dimension_numbers<[1], [1], [0], [0], [0, 0, 1, 0], [], []>} : vector<16x8xbf16>, vector<16x8xbf16>, vector<16x16xf32> -> vector<16x16xf32>
    %cst_135 = arith.constant 0.000000e+00 : f32
    %478 = vector.broadcast %cst_135 : f32 to vector<16x16xf32>
    %479 = arith.select %2, %477, %478 : vector<16x16xi1>, vector<16x16xf32>
    %480 = arith.truncf %479 : vector<16x16xf32> to vector<16x16xbf16>
    %cst_136 = arith.constant dense<0.000000e+00> : vector<16x16xf32>
    %481 = tpu.matmul %480, %474, %cst_136 {dimension_numbers = #tpu.dot_dimension_numbers<[1], [0], [0], [1], [0, 0, 1, 1], [], []>} : vector<16x16xbf16>, vector<16x16xbf16>, vector<16x16xf32> -> vector<16x16xf32>
    %482 = arith.addf %476, %481 : vector<16x16xf32>
    %cst_137 = arith.constant dense<0.000000e+00> : vector<16xf32>
    %483 = vector.multi_reduction <add>, %482, %cst_137 [1] : vector<16x16xf32> to vector<16xf32>
    %484 = vector.shape_cast %483 : vector<16xf32> to vector<16x1xf32>
    %cst_138 = arith.constant 1.600000e+01 : f32
    %485 = vector.broadcast %cst_138 : f32 to vector<16x1xf32>
    %486 = arith.divf %484, %485 : vector<16x1xf32>
    %487 = vector.broadcast %486 : vector<16x1xf32> to vector<16x16xf32>
    %488 = arith.subf %482, %487 : vector<16x16xf32>
    %489 = arith.mulf %488, %488 : vector<16x16xf32>
    %cst_139 = arith.constant dense<0.000000e+00> : vector<16xf32>
    %490 = vector.multi_reduction <add>, %489, %cst_139 [1] : vector<16x16xf32> to vector<16xf32>
    %491 = vector.shape_cast %490 : vector<16xf32> to vector<16x1xf32>
    %cst_140 = arith.constant 1.600000e+01 : f32
    %492 = vector.broadcast %cst_140 : f32 to vector<16x1xf32>
    %493 = arith.divf %491, %492 : vector<16x1xf32>
    %494 = vector.broadcast %486 : vector<16x1xf32> to vector<16x16xf32>
    %495 = arith.subf %482, %494 : vector<16x16xf32>
    %cst_141 = arith.constant 9.99999974E-6 : f32
    %496 = vector.broadcast %cst_141 : f32 to vector<16x1xf32>
    %497 = arith.addf %493, %496 : vector<16x1xf32>
    %498 = math.rsqrt %497 : vector<16x1xf32>
    %499 = vector.broadcast %498 : vector<16x1xf32> to vector<16x16xf32>
    %500 = arith.mulf %495, %499 : vector<16x16xf32>
    %cst_142 = arith.constant dense<0.000000e+00> : vector<16x8xf32>
    %501 = tpu.matmul %474, %473, %cst_142 {dimension_numbers = #tpu.dot_dimension_numbers<[0], [0], [1], [1], [0, 1, 1, 1], [], []>} : vector<16x16xbf16>, vector<16x8xbf16>, vector<16x8xf32> -> vector<16x8xf32>
    %502 = vector.extract_strided_slice %456 {offsets = [0, 0], sizes = [1, 8], strides = [1, 1]} : vector<1x32xf32> to vector<1x8xf32>
    %503 = math.exp %502 : vector<1x8xf32>
    %504 = vector.broadcast %503 : vector<1x8xf32> to vector<16x8xf32>
    %505 = arith.mulf %302, %504 : vector<16x8xf32>
    %506 = arith.addf %505, %501 : vector<16x8xf32>
    %507 = vector.extract_strided_slice %459 {offsets = [0, 8], sizes = [16, 8], strides = [1, 1]} : vector<16x32xbf16> to vector<16x8xbf16>
    %508 = vector.extract_strided_slice %464 {offsets = [0, 8], sizes = [16, 8], strides = [1, 1]} : vector<16x32xbf16> to vector<16x8xbf16>
    %509 = vector.extract_strided_slice %469 {offsets = [0, 8], sizes = [16, 8], strides = [1, 1]} : vector<16x32xbf16> to vector<16x8xbf16>
    %510 = vector.extract_strided_slice %470 {offsets = [0, 16], sizes = [16, 16], strides = [1, 1]} : vector<16x64xbf16> to vector<16x16xbf16>
    %511 = arith.truncf %338 : vector<16x8xf32> to vector<16x8xbf16>
    %cst_143 = arith.constant dense<0.000000e+00> : vector<16x16xf32>
    %512 = tpu.matmul %507, %511, %cst_143 {dimension_numbers = #tpu.dot_dimension_numbers<[1], [1], [0], [0], [0, 0, 1, 0], [], []>} : vector<16x8xbf16>, vector<16x8xbf16>, vector<16x16xf32> -> vector<16x16xf32>
    %cst_144 = arith.constant dense<0.000000e+00> : vector<16x16xf32>
    %513 = tpu.matmul %507, %508, %cst_144 {dimension_numbers = #tpu.dot_dimension_numbers<[1], [1], [0], [0], [0, 0, 1, 0], [], []>} : vector<16x8xbf16>, vector<16x8xbf16>, vector<16x16xf32> -> vector<16x16xf32>
    %cst_145 = arith.constant 0.000000e+00 : f32
    %514 = vector.broadcast %cst_145 : f32 to vector<16x16xf32>
    %515 = arith.select %2, %513, %514 : vector<16x16xi1>, vector<16x16xf32>
    %516 = arith.truncf %515 : vector<16x16xf32> to vector<16x16xbf16>
    %cst_146 = arith.constant dense<0.000000e+00> : vector<16x16xf32>
    %517 = tpu.matmul %516, %510, %cst_146 {dimension_numbers = #tpu.dot_dimension_numbers<[1], [0], [0], [1], [0, 0, 1, 1], [], []>} : vector<16x16xbf16>, vector<16x16xbf16>, vector<16x16xf32> -> vector<16x16xf32>
    %518 = arith.addf %512, %517 : vector<16x16xf32>
    %cst_147 = arith.constant dense<0.000000e+00> : vector<16xf32>
    %519 = vector.multi_reduction <add>, %518, %cst_147 [1] : vector<16x16xf32> to vector<16xf32>
    %520 = vector.shape_cast %519 : vector<16xf32> to vector<16x1xf32>
    %cst_148 = arith.constant 1.600000e+01 : f32
    %521 = vector.broadcast %cst_148 : f32 to vector<16x1xf32>
    %522 = arith.divf %520, %521 : vector<16x1xf32>
    %523 = vector.broadcast %522 : vector<16x1xf32> to vector<16x16xf32>
    %524 = arith.subf %518, %523 : vector<16x16xf32>
    %525 = arith.mulf %524, %524 : vector<16x16xf32>
    %cst_149 = arith.constant dense<0.000000e+00> : vector<16xf32>
    %526 = vector.multi_reduction <add>, %525, %cst_149 [1] : vector<16x16xf32> to vector<16xf32>
    %527 = vector.shape_cast %526 : vector<16xf32> to vector<16x1xf32>
    %cst_150 = arith.constant 1.600000e+01 : f32
    %528 = vector.broadcast %cst_150 : f32 to vector<16x1xf32>
    %529 = arith.divf %527, %528 : vector<16x1xf32>
    %530 = vector.broadcast %522 : vector<16x1xf32> to vector<16x16xf32>
    %531 = arith.subf %518, %530 : vector<16x16xf32>
    %cst_151 = arith.constant 9.99999974E-6 : f32
    %532 = vector.broadcast %cst_151 : f32 to vector<16x1xf32>
    %533 = arith.addf %529, %532 : vector<16x1xf32>
    %534 = math.rsqrt %533 : vector<16x1xf32>
    %535 = vector.broadcast %534 : vector<16x1xf32> to vector<16x16xf32>
    %536 = arith.mulf %531, %535 : vector<16x16xf32>
    %cst_152 = arith.constant dense<0.000000e+00> : vector<16x8xf32>
    %537 = tpu.matmul %510, %509, %cst_152 {dimension_numbers = #tpu.dot_dimension_numbers<[0], [0], [1], [1], [0, 1, 1, 1], [], []>} : vector<16x16xbf16>, vector<16x8xbf16>, vector<16x8xf32> -> vector<16x8xf32>
    %538 = vector.extract_strided_slice %456 {offsets = [0, 8], sizes = [1, 8], strides = [1, 1]} : vector<1x32xf32> to vector<1x8xf32>
    %539 = math.exp %538 : vector<1x8xf32>
    %540 = vector.broadcast %539 : vector<1x8xf32> to vector<16x8xf32>
    %541 = arith.mulf %338, %540 : vector<16x8xf32>
    %542 = arith.addf %541, %537 : vector<16x8xf32>
    %543 = vector.extract_strided_slice %459 {offsets = [0, 16], sizes = [16, 8], strides = [1, 1]} : vector<16x32xbf16> to vector<16x8xbf16>
    %544 = vector.extract_strided_slice %464 {offsets = [0, 16], sizes = [16, 8], strides = [1, 1]} : vector<16x32xbf16> to vector<16x8xbf16>
    %545 = vector.extract_strided_slice %469 {offsets = [0, 16], sizes = [16, 8], strides = [1, 1]} : vector<16x32xbf16> to vector<16x8xbf16>
    %546 = vector.extract_strided_slice %470 {offsets = [0, 32], sizes = [16, 16], strides = [1, 1]} : vector<16x64xbf16> to vector<16x16xbf16>
    %547 = arith.truncf %374 : vector<16x8xf32> to vector<16x8xbf16>
    %cst_153 = arith.constant dense<0.000000e+00> : vector<16x16xf32>
    %548 = tpu.matmul %543, %547, %cst_153 {dimension_numbers = #tpu.dot_dimension_numbers<[1], [1], [0], [0], [0, 0, 1, 0], [], []>} : vector<16x8xbf16>, vector<16x8xbf16>, vector<16x16xf32> -> vector<16x16xf32>
    %cst_154 = arith.constant dense<0.000000e+00> : vector<16x16xf32>
    %549 = tpu.matmul %543, %544, %cst_154 {dimension_numbers = #tpu.dot_dimension_numbers<[1], [1], [0], [0], [0, 0, 1, 0], [], []>} : vector<16x8xbf16>, vector<16x8xbf16>, vector<16x16xf32> -> vector<16x16xf32>
    %cst_155 = arith.constant 0.000000e+00 : f32
    %550 = vector.broadcast %cst_155 : f32 to vector<16x16xf32>
    %551 = arith.select %2, %549, %550 : vector<16x16xi1>, vector<16x16xf32>
    %552 = arith.truncf %551 : vector<16x16xf32> to vector<16x16xbf16>
    %cst_156 = arith.constant dense<0.000000e+00> : vector<16x16xf32>
    %553 = tpu.matmul %552, %546, %cst_156 {dimension_numbers = #tpu.dot_dimension_numbers<[1], [0], [0], [1], [0, 0, 1, 1], [], []>} : vector<16x16xbf16>, vector<16x16xbf16>, vector<16x16xf32> -> vector<16x16xf32>
    %554 = arith.addf %548, %553 : vector<16x16xf32>
    %cst_157 = arith.constant dense<0.000000e+00> : vector<16xf32>
    %555 = vector.multi_reduction <add>, %554, %cst_157 [1] : vector<16x16xf32> to vector<16xf32>
    %556 = vector.shape_cast %555 : vector<16xf32> to vector<16x1xf32>
    %cst_158 = arith.constant 1.600000e+01 : f32
    %557 = vector.broadcast %cst_158 : f32 to vector<16x1xf32>
    %558 = arith.divf %556, %557 : vector<16x1xf32>
    %559 = vector.broadcast %558 : vector<16x1xf32> to vector<16x16xf32>
    %560 = arith.subf %554, %559 : vector<16x16xf32>
    %561 = arith.mulf %560, %560 : vector<16x16xf32>
    %cst_159 = arith.constant dense<0.000000e+00> : vector<16xf32>
    %562 = vector.multi_reduction <add>, %561, %cst_159 [1] : vector<16x16xf32> to vector<16xf32>
    %563 = vector.shape_cast %562 : vector<16xf32> to vector<16x1xf32>
    %cst_160 = arith.constant 1.600000e+01 : f32
    %564 = vector.broadcast %cst_160 : f32 to vector<16x1xf32>
    %565 = arith.divf %563, %564 : vector<16x1xf32>
    %566 = vector.broadcast %558 : vector<16x1xf32> to vector<16x16xf32>
    %567 = arith.subf %554, %566 : vector<16x16xf32>
    %cst_161 = arith.constant 9.99999974E-6 : f32
    %568 = vector.broadcast %cst_161 : f32 to vector<16x1xf32>
    %569 = arith.addf %565, %568 : vector<16x1xf32>
    %570 = math.rsqrt %569 : vector<16x1xf32>
    %571 = vector.broadcast %570 : vector<16x1xf32> to vector<16x16xf32>
    %572 = arith.mulf %567, %571 : vector<16x16xf32>
    %cst_162 = arith.constant dense<0.000000e+00> : vector<16x8xf32>
    %573 = tpu.matmul %546, %545, %cst_162 {dimension_numbers = #tpu.dot_dimension_numbers<[0], [0], [1], [1], [0, 1, 1, 1], [], []>} : vector<16x16xbf16>, vector<16x8xbf16>, vector<16x8xf32> -> vector<16x8xf32>
    %574 = vector.extract_strided_slice %456 {offsets = [0, 16], sizes = [1, 8], strides = [1, 1]} : vector<1x32xf32> to vector<1x8xf32>
    %575 = math.exp %574 : vector<1x8xf32>
    %576 = vector.broadcast %575 : vector<1x8xf32> to vector<16x8xf32>
    %577 = arith.mulf %374, %576 : vector<16x8xf32>
    %578 = arith.addf %577, %573 : vector<16x8xf32>
    %579 = vector.extract_strided_slice %459 {offsets = [0, 24], sizes = [16, 8], strides = [1, 1]} : vector<16x32xbf16> to vector<16x8xbf16>
    %580 = vector.extract_strided_slice %464 {offsets = [0, 24], sizes = [16, 8], strides = [1, 1]} : vector<16x32xbf16> to vector<16x8xbf16>
    %581 = vector.extract_strided_slice %469 {offsets = [0, 24], sizes = [16, 8], strides = [1, 1]} : vector<16x32xbf16> to vector<16x8xbf16>
    %582 = vector.extract_strided_slice %470 {offsets = [0, 48], sizes = [16, 16], strides = [1, 1]} : vector<16x64xbf16> to vector<16x16xbf16>
    %583 = arith.truncf %410 : vector<16x8xf32> to vector<16x8xbf16>
    %cst_163 = arith.constant dense<0.000000e+00> : vector<16x16xf32>
    %584 = tpu.matmul %579, %583, %cst_163 {dimension_numbers = #tpu.dot_dimension_numbers<[1], [1], [0], [0], [0, 0, 1, 0], [], []>} : vector<16x8xbf16>, vector<16x8xbf16>, vector<16x16xf32> -> vector<16x16xf32>
    %cst_164 = arith.constant dense<0.000000e+00> : vector<16x16xf32>
    %585 = tpu.matmul %579, %580, %cst_164 {dimension_numbers = #tpu.dot_dimension_numbers<[1], [1], [0], [0], [0, 0, 1, 0], [], []>} : vector<16x8xbf16>, vector<16x8xbf16>, vector<16x16xf32> -> vector<16x16xf32>
    %cst_165 = arith.constant 0.000000e+00 : f32
    %586 = vector.broadcast %cst_165 : f32 to vector<16x16xf32>
    %587 = arith.select %2, %585, %586 : vector<16x16xi1>, vector<16x16xf32>
    %588 = arith.truncf %587 : vector<16x16xf32> to vector<16x16xbf16>
    %cst_166 = arith.constant dense<0.000000e+00> : vector<16x16xf32>
    %589 = tpu.matmul %588, %582, %cst_166 {dimension_numbers = #tpu.dot_dimension_numbers<[1], [0], [0], [1], [0, 0, 1, 1], [], []>} : vector<16x16xbf16>, vector<16x16xbf16>, vector<16x16xf32> -> vector<16x16xf32>
    %590 = arith.addf %584, %589 : vector<16x16xf32>
    %cst_167 = arith.constant dense<0.000000e+00> : vector<16xf32>
    %591 = vector.multi_reduction <add>, %590, %cst_167 [1] : vector<16x16xf32> to vector<16xf32>
    %592 = vector.shape_cast %591 : vector<16xf32> to vector<16x1xf32>
    %cst_168 = arith.constant 1.600000e+01 : f32
    %593 = vector.broadcast %cst_168 : f32 to vector<16x1xf32>
    %594 = arith.divf %592, %593 : vector<16x1xf32>
    %595 = vector.broadcast %594 : vector<16x1xf32> to vector<16x16xf32>
    %596 = arith.subf %590, %595 : vector<16x16xf32>
    %597 = arith.mulf %596, %596 : vector<16x16xf32>
    %cst_169 = arith.constant dense<0.000000e+00> : vector<16xf32>
    %598 = vector.multi_reduction <add>, %597, %cst_169 [1] : vector<16x16xf32> to vector<16xf32>
    %599 = vector.shape_cast %598 : vector<16xf32> to vector<16x1xf32>
    %cst_170 = arith.constant 1.600000e+01 : f32
    %600 = vector.broadcast %cst_170 : f32 to vector<16x1xf32>
    %601 = arith.divf %599, %600 : vector<16x1xf32>
    %602 = vector.broadcast %594 : vector<16x1xf32> to vector<16x16xf32>
    %603 = arith.subf %590, %602 : vector<16x16xf32>
    %cst_171 = arith.constant 9.99999974E-6 : f32
    %604 = vector.broadcast %cst_171 : f32 to vector<16x1xf32>
    %605 = arith.addf %601, %604 : vector<16x1xf32>
    %606 = math.rsqrt %605 : vector<16x1xf32>
    %607 = vector.broadcast %606 : vector<16x1xf32> to vector<16x16xf32>
    %608 = arith.mulf %603, %607 : vector<16x16xf32>
    %cst_172 = arith.constant dense<0.000000e+00> : vector<16x8xf32>
    %609 = tpu.matmul %582, %581, %cst_172 {dimension_numbers = #tpu.dot_dimension_numbers<[0], [0], [1], [1], [0, 1, 1, 1], [], []>} : vector<16x16xbf16>, vector<16x8xbf16>, vector<16x8xf32> -> vector<16x8xf32>
    %610 = vector.extract_strided_slice %456 {offsets = [0, 24], sizes = [1, 8], strides = [1, 1]} : vector<1x32xf32> to vector<1x8xf32>
    %611 = math.exp %610 : vector<1x8xf32>
    %612 = vector.broadcast %611 : vector<1x8xf32> to vector<16x8xf32>
    %613 = arith.mulf %410, %612 : vector<16x8xf32>
    %614 = arith.addf %613, %609 : vector<16x8xf32>
    %615 = tpu.concatenate %500, %536, %572, %608 in 1 : vector<16x16xf32>, vector<16x16xf32>, vector<16x16xf32>, vector<16x16xf32> -> vector<16x64xf32>
    %616 = arith.truncf %615 : vector<16x64xf32> to vector<16x64xbf16>
    %c0_173 = arith.constant 0 : index
    %617 = arith.index_cast %418 : i32 to index
    %c0_174 = arith.constant 0 : index
    %618 = vector.load %arg6[%c0_173, %617, %c0_174] : memref<1x64x64xbf16, #tpu.memory_space<vmem>>, vector<1x16x64xbf16>
    %619 = vector.shape_cast %618 : vector<1x16x64xbf16> to vector<16x64xbf16>
    %620 = vector.shape_cast %616 : vector<16x64xbf16> to vector<1x16x64xbf16>
    tpu.vector_store %arg6[%c0_173, %617, %c0_174], %620 {strides = array<i32>} : memref<1x64x64xbf16, #tpu.memory_space<vmem>>, vector<1x16x64xbf16>,
    %c3_i32 = arith.constant 3 : i32
    %c16_i32_175 = arith.constant 16 : i32
    %621 = arith.muli %c3_i32, %c16_i32_175 : i32
    %622 = tpu.assume_multiple %621, 16 : i32
    %c0_176 = arith.constant 0 : index
    %623 = arith.index_cast %622 : i32 to index
    %c0_177 = arith.constant 0 : index
    %624 = vector.load %arg2[%c0_176, %623, %c0_177] : memref<1x64x32xbf16, #tpu.memory_space<vmem>>, vector<1x16x32xbf16>
    %625 = vector.shape_cast %624 : vector<1x16x32xbf16> to vector<16x32xbf16>
    %626 = arith.extf %625 : vector<16x32xbf16> to vector<16x32xf32>
    %c0_178 = arith.constant 0 : index
    %627 = arith.index_cast %622 : i32 to index
    %c0_179 = arith.constant 0 : index
    %628 = vector.load %arg3[%c0_178, %627, %c0_179] : memref<1x64x32xbf16, #tpu.memory_space<vmem>>, vector<1x16x32xbf16>
    %629 = vector.shape_cast %628 : vector<1x16x32xbf16> to vector<16x32xbf16>
    %630 = arith.extf %629 : vector<16x32xbf16> to vector<16x32xf32>
    %c0_180 = arith.constant 0 : index
    %631 = arith.index_cast %622 : i32 to index
    %c0_181 = arith.constant 0 : index
    %632 = vector.load %arg4[%c0_180, %631, %c0_181] : memref<1x64x32xbf16, #tpu.memory_space<vmem>>, vector<1x16x32xbf16>
    %633 = vector.shape_cast %632 : vector<1x16x32xbf16> to vector<16x32xbf16>
    %634 = arith.extf %633 : vector<16x32xbf16> to vector<16x32xf32>
    %c0_182 = arith.constant 0 : index
    %635 = arith.index_cast %622 : i32 to index
    %c0_183 = arith.constant 0 : index
    %636 = vector.load %arg5[%c0_182, %635, %c0_183] : memref<1x64x64xbf16, #tpu.memory_space<vmem>>, vector<1x16x64xbf16>
    %637 = vector.shape_cast %636 : vector<1x16x64xbf16> to vector<16x64xbf16>
    %638 = arith.extf %637 : vector<16x64xbf16> to vector<16x64xf32>
    %cst_184 = arith.constant 0.000000e+00 : f32
    %639 = vector.broadcast %cst_184 : f32 to vector<16x32xf32>
    %640 = arith.subf %639, %634 : vector<16x32xf32>
    %cst_185 = arith.constant 0.000000e+00 : f32
    %641 = vector.broadcast %cst_185 : f32 to vector<16x32xf32>
    %642 = arith.maximumf %640, %641 : vector<16x32xf32>
    %643 = vector.broadcast %cst_185 : f32 to vector<16x32xf32>
    %644 = arith.subf %640, %643 : vector<16x32xf32>
    %645 = arith.cmpf one, %644, %644 : vector<16x32xf32>
    %646 = vector.broadcast %cst_185 : f32 to vector<16x32xf32>
    %647 = arith.addf %640, %646 : vector<16x32xf32>
    %648 = math.absf %644 : vector<16x32xf32>
    %cst_186 = arith.constant 0.000000e+00 : f32
    %649 = vector.broadcast %cst_186 : f32 to vector<16x32xf32>
    %650 = arith.subf %649, %648 : vector<16x32xf32>
    %651 = math.exp %650 : vector<16x32xf32>
    %652 = math.log1p %651 : vector<16x32xf32>
    %653 = arith.addf %642, %652 : vector<16x32xf32>
    %654 = arith.select %645, %647, %653 : vector<16x32xi1>, vector<16x32xf32>
    %cst_187 = arith.constant 0.000000e+00 : f32
    %655 = vector.broadcast %cst_187 : f32 to vector<16x32xf32>
    %656 = arith.subf %655, %654 : vector<16x32xf32>
    %cst_188 = arith.constant 6.250000e-02 : f32
    %657 = vector.broadcast %cst_188 : f32 to vector<16x32xf32>
    %658 = arith.mulf %656, %657 : vector<16x32xf32>
    %cst_189 = arith.constant dense<0.000000e+00> : vector<16x32xf32>
    %659 = tpu.matmul %4, %658, %cst_189 {dimension_numbers = #tpu.dot_dimension_numbers<[1], [0], [0], [1], [0, 0, 1, 1], [], []>} : vector<16x16xf32>, vector<16x32xf32>, vector<16x32xf32> -> vector<16x32xf32>
    %660 = vector.extract_strided_slice %659 {offsets = [15, 0], sizes = [1, 32], strides = [1, 1]} : vector<16x32xf32> to vector<1x32xf32>
    %661 = math.exp %659 : vector<16x32xf32>
    %662 = arith.mulf %626, %661 : vector<16x32xf32>
    %663 = arith.truncf %662 : vector<16x32xf32> to vector<16x32xbf16>
    %cst_190 = arith.constant 0.000000e+00 : f32
    %664 = vector.broadcast %cst_190 : f32 to vector<16x32xf32>
    %665 = arith.subf %664, %659 : vector<16x32xf32>
    %666 = math.exp %665 : vector<16x32xf32>
    %667 = arith.mulf %630, %666 : vector<16x32xf32>
    %668 = arith.truncf %667 : vector<16x32xf32> to vector<16x32xbf16>
    %669 = vector.broadcast %660 : vector<1x32xf32> to vector<16x32xf32>
    %670 = arith.subf %669, %659 : vector<16x32xf32>
    %671 = math.exp %670 : vector<16x32xf32>
    %672 = arith.mulf %630, %671 : vector<16x32xf32>
    %673 = arith.truncf %672 : vector<16x32xf32> to vector<16x32xbf16>
    %674 = arith.truncf %638 : vector<16x64xf32> to vector<16x64xbf16>
    %675 = vector.extract_strided_slice %663 {offsets = [0, 0], sizes = [16, 8], strides = [1, 1]} : vector<16x32xbf16> to vector<16x8xbf16>
    %676 = vector.extract_strided_slice %668 {offsets = [0, 0], sizes = [16, 8], strides = [1, 1]} : vector<16x32xbf16> to vector<16x8xbf16>
    %677 = vector.extract_strided_slice %673 {offsets = [0, 0], sizes = [16, 8], strides = [1, 1]} : vector<16x32xbf16> to vector<16x8xbf16>
    %678 = vector.extract_strided_slice %674 {offsets = [0, 0], sizes = [16, 16], strides = [1, 1]} : vector<16x64xbf16> to vector<16x16xbf16>
    %679 = arith.truncf %506 : vector<16x8xf32> to vector<16x8xbf16>
    %cst_191 = arith.constant dense<0.000000e+00> : vector<16x16xf32>
    %680 = tpu.matmul %675, %679, %cst_191 {dimension_numbers = #tpu.dot_dimension_numbers<[1], [1], [0], [0], [0, 0, 1, 0], [], []>} : vector<16x8xbf16>, vector<16x8xbf16>, vector<16x16xf32> -> vector<16x16xf32>
    %cst_192 = arith.constant dense<0.000000e+00> : vector<16x16xf32>
    %681 = tpu.matmul %675, %676, %cst_192 {dimension_numbers = #tpu.dot_dimension_numbers<[1], [1], [0], [0], [0, 0, 1, 0], [], []>} : vector<16x8xbf16>, vector<16x8xbf16>, vector<16x16xf32> -> vector<16x16xf32>
    %cst_193 = arith.constant 0.000000e+00 : f32
    %682 = vector.broadcast %cst_193 : f32 to vector<16x16xf32>
    %683 = arith.select %2, %681, %682 : vector<16x16xi1>, vector<16x16xf32>
    %684 = arith.truncf %683 : vector<16x16xf32> to vector<16x16xbf16>
    %cst_194 = arith.constant dense<0.000000e+00> : vector<16x16xf32>
    %685 = tpu.matmul %684, %678, %cst_194 {dimension_numbers = #tpu.dot_dimension_numbers<[1], [0], [0], [1], [0, 0, 1, 1], [], []>} : vector<16x16xbf16>, vector<16x16xbf16>, vector<16x16xf32> -> vector<16x16xf32>
    %686 = arith.addf %680, %685 : vector<16x16xf32>
    %cst_195 = arith.constant dense<0.000000e+00> : vector<16xf32>
    %687 = vector.multi_reduction <add>, %686, %cst_195 [1] : vector<16x16xf32> to vector<16xf32>
    %688 = vector.shape_cast %687 : vector<16xf32> to vector<16x1xf32>
    %cst_196 = arith.constant 1.600000e+01 : f32
    %689 = vector.broadcast %cst_196 : f32 to vector<16x1xf32>
    %690 = arith.divf %688, %689 : vector<16x1xf32>
    %691 = vector.broadcast %690 : vector<16x1xf32> to vector<16x16xf32>
    %692 = arith.subf %686, %691 : vector<16x16xf32>
    %693 = arith.mulf %692, %692 : vector<16x16xf32>
    %cst_197 = arith.constant dense<0.000000e+00> : vector<16xf32>
    %694 = vector.multi_reduction <add>, %693, %cst_197 [1] : vector<16x16xf32> to vector<16xf32>
    %695 = vector.shape_cast %694 : vector<16xf32> to vector<16x1xf32>
    %cst_198 = arith.constant 1.600000e+01 : f32
    %696 = vector.broadcast %cst_198 : f32 to vector<16x1xf32>
    %697 = arith.divf %695, %696 : vector<16x1xf32>
    %698 = vector.broadcast %690 : vector<16x1xf32> to vector<16x16xf32>
    %699 = arith.subf %686, %698 : vector<16x16xf32>
    %cst_199 = arith.constant 9.99999974E-6 : f32
    %700 = vector.broadcast %cst_199 : f32 to vector<16x1xf32>
    %701 = arith.addf %697, %700 : vector<16x1xf32>
    %702 = math.rsqrt %701 : vector<16x1xf32>
    %703 = vector.broadcast %702 : vector<16x1xf32> to vector<16x16xf32>
    %704 = arith.mulf %699, %703 : vector<16x16xf32>
    %cst_200 = arith.constant dense<0.000000e+00> : vector<16x8xf32>
    %705 = tpu.matmul %678, %677, %cst_200 {dimension_numbers = #tpu.dot_dimension_numbers<[0], [0], [1], [1], [0, 1, 1, 1], [], []>} : vector<16x16xbf16>, vector<16x8xbf16>, vector<16x8xf32> -> vector<16x8xf32>
    %706 = vector.extract_strided_slice %660 {offsets = [0, 0], sizes = [1, 8], strides = [1, 1]} : vector<1x32xf32> to vector<1x8xf32>
    %707 = math.exp %706 : vector<1x8xf32>
    %708 = vector.broadcast %707 : vector<1x8xf32> to vector<16x8xf32>
    %709 = arith.mulf %506, %708 : vector<16x8xf32>
    %710 = arith.addf %709, %705 : vector<16x8xf32>
    %711 = vector.extract_strided_slice %663 {offsets = [0, 8], sizes = [16, 8], strides = [1, 1]} : vector<16x32xbf16> to vector<16x8xbf16>
    %712 = vector.extract_strided_slice %668 {offsets = [0, 8], sizes = [16, 8], strides = [1, 1]} : vector<16x32xbf16> to vector<16x8xbf16>
    %713 = vector.extract_strided_slice %673 {offsets = [0, 8], sizes = [16, 8], strides = [1, 1]} : vector<16x32xbf16> to vector<16x8xbf16>
    %714 = vector.extract_strided_slice %674 {offsets = [0, 16], sizes = [16, 16], strides = [1, 1]} : vector<16x64xbf16> to vector<16x16xbf16>
    %715 = arith.truncf %542 : vector<16x8xf32> to vector<16x8xbf16>
    %cst_201 = arith.constant dense<0.000000e+00> : vector<16x16xf32>
    %716 = tpu.matmul %711, %715, %cst_201 {dimension_numbers = #tpu.dot_dimension_numbers<[1], [1], [0], [0], [0, 0, 1, 0], [], []>} : vector<16x8xbf16>, vector<16x8xbf16>, vector<16x16xf32> -> vector<16x16xf32>
    %cst_202 = arith.constant dense<0.000000e+00> : vector<16x16xf32>
    %717 = tpu.matmul %711, %712, %cst_202 {dimension_numbers = #tpu.dot_dimension_numbers<[1], [1], [0], [0], [0, 0, 1, 0], [], []>} : vector<16x8xbf16>, vector<16x8xbf16>, vector<16x16xf32> -> vector<16x16xf32>
    %cst_203 = arith.constant 0.000000e+00 : f32
    %718 = vector.broadcast %cst_203 : f32 to vector<16x16xf32>
    %719 = arith.select %2, %717, %718 : vector<16x16xi1>, vector<16x16xf32>
    %720 = arith.truncf %719 : vector<16x16xf32> to vector<16x16xbf16>
    %cst_204 = arith.constant dense<0.000000e+00> : vector<16x16xf32>
    %721 = tpu.matmul %720, %714, %cst_204 {dimension_numbers = #tpu.dot_dimension_numbers<[1], [0], [0], [1], [0, 0, 1, 1], [], []>} : vector<16x16xbf16>, vector<16x16xbf16>, vector<16x16xf32> -> vector<16x16xf32>
    %722 = arith.addf %716, %721 : vector<16x16xf32>
    %cst_205 = arith.constant dense<0.000000e+00> : vector<16xf32>
    %723 = vector.multi_reduction <add>, %722, %cst_205 [1] : vector<16x16xf32> to vector<16xf32>
    %724 = vector.shape_cast %723 : vector<16xf32> to vector<16x1xf32>
    %cst_206 = arith.constant 1.600000e+01 : f32
    %725 = vector.broadcast %cst_206 : f32 to vector<16x1xf32>
    %726 = arith.divf %724, %725 : vector<16x1xf32>
    %727 = vector.broadcast %726 : vector<16x1xf32> to vector<16x16xf32>
    %728 = arith.subf %722, %727 : vector<16x16xf32>
    %729 = arith.mulf %728, %728 : vector<16x16xf32>
    %cst_207 = arith.constant dense<0.000000e+00> : vector<16xf32>
    %730 = vector.multi_reduction <add>, %729, %cst_207 [1] : vector<16x16xf32> to vector<16xf32>
    %731 = vector.shape_cast %730 : vector<16xf32> to vector<16x1xf32>
    %cst_208 = arith.constant 1.600000e+01 : f32
    %732 = vector.broadcast %cst_208 : f32 to vector<16x1xf32>
    %733 = arith.divf %731, %732 : vector<16x1xf32>
    %734 = vector.broadcast %726 : vector<16x1xf32> to vector<16x16xf32>
    %735 = arith.subf %722, %734 : vector<16x16xf32>
    %cst_209 = arith.constant 9.99999974E-6 : f32
    %736 = vector.broadcast %cst_209 : f32 to vector<16x1xf32>
    %737 = arith.addf %733, %736 : vector<16x1xf32>
    %738 = math.rsqrt %737 : vector<16x1xf32>
    %739 = vector.broadcast %738 : vector<16x1xf32> to vector<16x16xf32>
    %740 = arith.mulf %735, %739 : vector<16x16xf32>
    %cst_210 = arith.constant dense<0.000000e+00> : vector<16x8xf32>
    %741 = tpu.matmul %714, %713, %cst_210 {dimension_numbers = #tpu.dot_dimension_numbers<[0], [0], [1], [1], [0, 1, 1, 1], [], []>} : vector<16x16xbf16>, vector<16x8xbf16>, vector<16x8xf32> -> vector<16x8xf32>
    %742 = vector.extract_strided_slice %660 {offsets = [0, 8], sizes = [1, 8], strides = [1, 1]} : vector<1x32xf32> to vector<1x8xf32>
    %743 = math.exp %742 : vector<1x8xf32>
    %744 = vector.broadcast %743 : vector<1x8xf32> to vector<16x8xf32>
    %745 = arith.mulf %542, %744 : vector<16x8xf32>
    %746 = arith.addf %745, %741 : vector<16x8xf32>
    %747 = vector.extract_strided_slice %663 {offsets = [0, 16], sizes = [16, 8], strides = [1, 1]} : vector<16x32xbf16> to vector<16x8xbf16>
    %748 = vector.extract_strided_slice %668 {offsets = [0, 16], sizes = [16, 8], strides = [1, 1]} : vector<16x32xbf16> to vector<16x8xbf16>
    %749 = vector.extract_strided_slice %673 {offsets = [0, 16], sizes = [16, 8], strides = [1, 1]} : vector<16x32xbf16> to vector<16x8xbf16>
    %750 = vector.extract_strided_slice %674 {offsets = [0, 32], sizes = [16, 16], strides = [1, 1]} : vector<16x64xbf16> to vector<16x16xbf16>
    %751 = arith.truncf %578 : vector<16x8xf32> to vector<16x8xbf16>
    %cst_211 = arith.constant dense<0.000000e+00> : vector<16x16xf32>
    %752 = tpu.matmul %747, %751, %cst_211 {dimension_numbers = #tpu.dot_dimension_numbers<[1], [1], [0], [0], [0, 0, 1, 0], [], []>} : vector<16x8xbf16>, vector<16x8xbf16>, vector<16x16xf32> -> vector<16x16xf32>
    %cst_212 = arith.constant dense<0.000000e+00> : vector<16x16xf32>
    %753 = tpu.matmul %747, %748, %cst_212 {dimension_numbers = #tpu.dot_dimension_numbers<[1], [1], [0], [0], [0, 0, 1, 0], [], []>} : vector<16x8xbf16>, vector<16x8xbf16>, vector<16x16xf32> -> vector<16x16xf32>
    %cst_213 = arith.constant 0.000000e+00 : f32
    %754 = vector.broadcast %cst_213 : f32 to vector<16x16xf32>
    %755 = arith.select %2, %753, %754 : vector<16x16xi1>, vector<16x16xf32>
    %756 = arith.truncf %755 : vector<16x16xf32> to vector<16x16xbf16>
    %cst_214 = arith.constant dense<0.000000e+00> : vector<16x16xf32>
    %757 = tpu.matmul %756, %750, %cst_214 {dimension_numbers = #tpu.dot_dimension_numbers<[1], [0], [0], [1], [0, 0, 1, 1], [], []>} : vector<16x16xbf16>, vector<16x16xbf16>, vector<16x16xf32> -> vector<16x16xf32>
    %758 = arith.addf %752, %757 : vector<16x16xf32>
    %cst_215 = arith.constant dense<0.000000e+00> : vector<16xf32>
    %759 = vector.multi_reduction <add>, %758, %cst_215 [1] : vector<16x16xf32> to vector<16xf32>
    %760 = vector.shape_cast %759 : vector<16xf32> to vector<16x1xf32>
    %cst_216 = arith.constant 1.600000e+01 : f32
    %761 = vector.broadcast %cst_216 : f32 to vector<16x1xf32>
    %762 = arith.divf %760, %761 : vector<16x1xf32>
    %763 = vector.broadcast %762 : vector<16x1xf32> to vector<16x16xf32>
    %764 = arith.subf %758, %763 : vector<16x16xf32>
    %765 = arith.mulf %764, %764 : vector<16x16xf32>
    %cst_217 = arith.constant dense<0.000000e+00> : vector<16xf32>
    %766 = vector.multi_reduction <add>, %765, %cst_217 [1] : vector<16x16xf32> to vector<16xf32>
    %767 = vector.shape_cast %766 : vector<16xf32> to vector<16x1xf32>
    %cst_218 = arith.constant 1.600000e+01 : f32
    %768 = vector.broadcast %cst_218 : f32 to vector<16x1xf32>
    %769 = arith.divf %767, %768 : vector<16x1xf32>
    %770 = vector.broadcast %762 : vector<16x1xf32> to vector<16x16xf32>
    %771 = arith.subf %758, %770 : vector<16x16xf32>
    %cst_219 = arith.constant 9.99999974E-6 : f32
    %772 = vector.broadcast %cst_219 : f32 to vector<16x1xf32>
    %773 = arith.addf %769, %772 : vector<16x1xf32>
    %774 = math.rsqrt %773 : vector<16x1xf32>
    %775 = vector.broadcast %774 : vector<16x1xf32> to vector<16x16xf32>
    %776 = arith.mulf %771, %775 : vector<16x16xf32>
    %cst_220 = arith.constant dense<0.000000e+00> : vector<16x8xf32>
    %777 = tpu.matmul %750, %749, %cst_220 {dimension_numbers = #tpu.dot_dimension_numbers<[0], [0], [1], [1], [0, 1, 1, 1], [], []>} : vector<16x16xbf16>, vector<16x8xbf16>, vector<16x8xf32> -> vector<16x8xf32>
    %778 = vector.extract_strided_slice %660 {offsets = [0, 16], sizes = [1, 8], strides = [1, 1]} : vector<1x32xf32> to vector<1x8xf32>
    %779 = math.exp %778 : vector<1x8xf32>
    %780 = vector.broadcast %779 : vector<1x8xf32> to vector<16x8xf32>
    %781 = arith.mulf %578, %780 : vector<16x8xf32>
    %782 = arith.addf %781, %777 : vector<16x8xf32>
    %783 = vector.extract_strided_slice %663 {offsets = [0, 24], sizes = [16, 8], strides = [1, 1]} : vector<16x32xbf16> to vector<16x8xbf16>
    %784 = vector.extract_strided_slice %668 {offsets = [0, 24], sizes = [16, 8], strides = [1, 1]} : vector<16x32xbf16> to vector<16x8xbf16>
    %785 = vector.extract_strided_slice %673 {offsets = [0, 24], sizes = [16, 8], strides = [1, 1]} : vector<16x32xbf16> to vector<16x8xbf16>
    %786 = vector.extract_strided_slice %674 {offsets = [0, 48], sizes = [16, 16], strides = [1, 1]} : vector<16x64xbf16> to vector<16x16xbf16>
    %787 = arith.truncf %614 : vector<16x8xf32> to vector<16x8xbf16>
    %cst_221 = arith.constant dense<0.000000e+00> : vector<16x16xf32>
    %788 = tpu.matmul %783, %787, %cst_221 {dimension_numbers = #tpu.dot_dimension_numbers<[1], [1], [0], [0], [0, 0, 1, 0], [], []>} : vector<16x8xbf16>, vector<16x8xbf16>, vector<16x16xf32> -> vector<16x16xf32>
    %cst_222 = arith.constant dense<0.000000e+00> : vector<16x16xf32>
    %789 = tpu.matmul %783, %784, %cst_222 {dimension_numbers = #tpu.dot_dimension_numbers<[1], [1], [0], [0], [0, 0, 1, 0], [], []>} : vector<16x8xbf16>, vector<16x8xbf16>, vector<16x16xf32> -> vector<16x16xf32>
    %cst_223 = arith.constant 0.000000e+00 : f32
    %790 = vector.broadcast %cst_223 : f32 to vector<16x16xf32>
    %791 = arith.select %2, %789, %790 : vector<16x16xi1>, vector<16x16xf32>
    %792 = arith.truncf %791 : vector<16x16xf32> to vector<16x16xbf16>
    %cst_224 = arith.constant dense<0.000000e+00> : vector<16x16xf32>
    %793 = tpu.matmul %792, %786, %cst_224 {dimension_numbers = #tpu.dot_dimension_numbers<[1], [0], [0], [1], [0, 0, 1, 1], [], []>} : vector<16x16xbf16>, vector<16x16xbf16>, vector<16x16xf32> -> vector<16x16xf32>
    %794 = arith.addf %788, %793 : vector<16x16xf32>
    %cst_225 = arith.constant dense<0.000000e+00> : vector<16xf32>
    %795 = vector.multi_reduction <add>, %794, %cst_225 [1] : vector<16x16xf32> to vector<16xf32>
    %796 = vector.shape_cast %795 : vector<16xf32> to vector<16x1xf32>
    %cst_226 = arith.constant 1.600000e+01 : f32
    %797 = vector.broadcast %cst_226 : f32 to vector<16x1xf32>
    %798 = arith.divf %796, %797 : vector<16x1xf32>
    %799 = vector.broadcast %798 : vector<16x1xf32> to vector<16x16xf32>
    %800 = arith.subf %794, %799 : vector<16x16xf32>
    %801 = arith.mulf %800, %800 : vector<16x16xf32>
    %cst_227 = arith.constant dense<0.000000e+00> : vector<16xf32>
    %802 = vector.multi_reduction <add>, %801, %cst_227 [1] : vector<16x16xf32> to vector<16xf32>
    %803 = vector.shape_cast %802 : vector<16xf32> to vector<16x1xf32>
    %cst_228 = arith.constant 1.600000e+01 : f32
    %804 = vector.broadcast %cst_228 : f32 to vector<16x1xf32>
    %805 = arith.divf %803, %804 : vector<16x1xf32>
    %806 = vector.broadcast %798 : vector<16x1xf32> to vector<16x16xf32>
    %807 = arith.subf %794, %806 : vector<16x16xf32>
    %cst_229 = arith.constant 9.99999974E-6 : f32
    %808 = vector.broadcast %cst_229 : f32 to vector<16x1xf32>
    %809 = arith.addf %805, %808 : vector<16x1xf32>
    %810 = math.rsqrt %809 : vector<16x1xf32>
    %811 = vector.broadcast %810 : vector<16x1xf32> to vector<16x16xf32>
    %812 = arith.mulf %807, %811 : vector<16x16xf32>
    %cst_230 = arith.constant dense<0.000000e+00> : vector<16x8xf32>
    %813 = tpu.matmul %786, %785, %cst_230 {dimension_numbers = #tpu.dot_dimension_numbers<[0], [0], [1], [1], [0, 1, 1, 1], [], []>} : vector<16x16xbf16>, vector<16x8xbf16>, vector<16x8xf32> -> vector<16x8xf32>
    %814 = vector.extract_strided_slice %660 {offsets = [0, 24], sizes = [1, 8], strides = [1, 1]} : vector<1x32xf32> to vector<1x8xf32>
    %815 = math.exp %814 : vector<1x8xf32>
    %816 = vector.broadcast %815 : vector<1x8xf32> to vector<16x8xf32>
    %817 = arith.mulf %614, %816 : vector<16x8xf32>
    %818 = arith.addf %817, %813 : vector<16x8xf32>
    %819 = tpu.concatenate %704, %740, %776, %812 in 1 : vector<16x16xf32>, vector<16x16xf32>, vector<16x16xf32>, vector<16x16xf32> -> vector<16x64xf32>
    %820 = arith.truncf %819 : vector<16x64xf32> to vector<16x64xbf16>
    %c0_231 = arith.constant 0 : index
    %821 = arith.index_cast %622 : i32 to index
    %c0_232 = arith.constant 0 : index
    %822 = vector.load %arg6[%c0_231, %821, %c0_232] : memref<1x64x64xbf16, #tpu.memory_space<vmem>>, vector<1x16x64xbf16>
    %823 = vector.shape_cast %822 : vector<1x16x64xbf16> to vector<16x64xbf16>
    %824 = vector.shape_cast %820 : vector<16x64xbf16> to vector<1x16x64xbf16>
    tpu.vector_store %arg6[%c0_231, %821, %c0_232], %824 {strides = array<i32>} : memref<1x64x64xbf16, #tpu.memory_space<vmem>>, vector<1x16x64xbf16>,
    %c4_i32 = arith.constant 4 : i32
    return
  }
  func.func @transform_0(%arg0: i32, %arg1: i32) -> (i32, i32, i32) {
    %c0_i32 = arith.constant 0 : i32
    %c0_i32_0 = arith.constant 0 : i32
    return %arg0, %c0_i32, %arg1 : i32, i32, i32
  }
  func.func @transform_1(%arg0: i32, %arg1: i32) -> (i32, i32, i32) {
    %c0_i32 = arith.constant 0 : i32
    %c0_i32_0 = arith.constant 0 : i32
    return %arg0, %c0_i32, %arg1 : i32, i32, i32
  }
  func.func @transform_2(%arg0: i32, %arg1: i32) -> (i32, i32, i32) {
    %c0_i32 = arith.constant 0 : i32
    %c0_i32_0 = arith.constant 0 : i32
    return %arg0, %c0_i32, %arg1 : i32, i32, i32
  }
  func.func @transform_3(%arg0: i32, %arg1: i32) -> (i32, i32, i32) {
    %c0_i32 = arith.constant 0 : i32
    %c0_i32_0 = arith.constant 0 : i32
    return %arg0, %c0_i32, %arg1 : i32, i32, i32
  }
  func.func @transform_4(%arg0: i32, %arg1: i32) -> (i32, i32, i32) {
    %c0_i32 = arith.constant 0 : i32
    %c0_i32_0 = arith.constant 0 : i32
    return %arg0, %c0_i32, %arg1 : i32, i32, i32
  }
}

</mosaic_0001>

<bundles_post_ra>
// kernel: gated_linear_attention_forward.1
= control target key start
LH: loop header
LB: loop body
LE: loop exit
PB: predicated region body
PF: predicated region fallthrough
CT: control target
= control target key end

     0   :  { %s5956_s15 = smov 0   ;;  %s5958_s16 = smov 0   ;;  %s7133_s0 = inlined_call_operand.vmem [shape: bf16[2,64,32], index: 0, kind: input, shape index: {}]   ;;  %s7134_s1 = inlined_call_operand.vmem [shape: bf16[2,64,32], index: 1, kind: input, shape index: {}]   ;;  %s7135_s2 = inlined_call_operand.vmem [shape: bf16[2,64,32], index: 2, kind: input, shape index: {}]   ;;  %s7136_s3 = inlined_call_operand.vmem [shape: bf16[2,64,64], index: 3, kind: input, shape index: {}]   ;;  %s7137_s4 = inlined_call_operand.vmem [shape: bf16[2,64,64], index: 4, kind: output, shape index: {}]  }
   0x1   :  { %s5960_s17 = smov 0  }
   0x2 LB: > { %s26_s18 = sadd.s32 1, %s5912_s16  ;;  %p4934_p0 = scmp.ge.s32.totalorder %s5916_s17, 1  ;;  %s5916_s17 = sphi %s5960_s17, %s14_s17   ;;  %s5912_s16 = sphi %s5958_s16, %s7177_s16   ;;  %s5908_s15 = sphi %s5956_s15, %s7176_s15  }
   0x3   : > { %p28_p1 = scmp.ge.s32.totalorder %s26_s18, 2  ;;  %p226_p2 = scmp.lt.s32.totalorder %s5916_s17, 3 }
   0x5   : > { %s7179_s18 = smov (%p28_p1, %s26_s18), 0  ;;  %p227_p3 = pnand %p4934_p0, %p226_p2 }
   0x7   : > { %230 = sbr.rel (%p227_p3) target bundleno = 5458 (0x1552), region = 36 }
   0xc   : > { %p282_p4 = scmp.lt.s32.totalorder %s5908_s15, 1  ;;  %v323_v0 = vlaneseq  ;;  %v7138_v1 = vmov 0.0   ;;  %vm390_vm0 = vcmask 130048   ;;  %vm5919_vm7 = vmmov 0   ;;  %s5920_s6 = smov 112  }
   0xd   : > { %5272 = vmatprep.subr.bf16.mxu1 %v7138_v1  ;;  %5274 = vmatprep.mubr.msk.bf16.mxu1 %vm5919_vm7, %v7138_v1  ;;  %vm501_vm8 = vcmask 64512   ;;  %s5921_s7 = smov 120   ;;  %s5922_s8 = smov 96  }
   0xe   : > { %s7181_s15 = smov (!%p282_p4, %s5908_s15), 1  ;;  %v5975_v2 = vshrl.u32 %v323_v0, 7  ;;  %v327_v3 = vand.u32 127, %v323_v0  ;;  %s5923_s9 = smov 104  }
   0xf   : > { %s5977_s19 = sshll.u32 %s7181_s15, 5  ;;  %s5924_s10 = smov 80  }
  0x10   : > { %vm5980_vm1 = vcmp.ge.s32.totalorder %v5975_v2, %v327_v3  ;;  %s5988_s22 = scalar_lea.vmem %s7135_s2, %s5977_s19  ;;  %s5994_s25 = scalar_lea.vmem %s7136_s3, %s5977_s19  ;;  %v325_v39 = vadd.s32 8, %v5975_v2  ;;  %v6027_v49 = vsub.s32 7, %v5975_v2 }
  0x11   : > { %v5999_v5 = vsel %vm5980_vm1, 1.0, %v7138_v1  ;;  %v5081_v6 = vld [vmem:[%s5988_s22] sm:$0xff]   ;;  %s6034_s28 = scalar_lea.vmem %s7134_s1, %s5977_s19  ;;  %s6041_s5 = scalar_lea.vmem %s7133_s0, %s5977_s19 }
  0x12   : > { %5269 = vmatprep.mubr.msk.f32.mxu0 %vm390_vm0, %v5999_v5  ;;  %v5082_v7 = vunpack.c.l.bf16 %v5081_v6  ;;  %v5083_v8 = vunpack.c.h.bf16 %v5081_v6  ;;  %vm6005_vm6 = vcmp.ge.s32.totalorder %v325_v39, %v327_v3  ;;  %v6018_v48 = vld [vmem:[%s5994_s25] sm:$0xff]   ;;  %s5926_s11 = smov 8   ;;  %s5927_s12 = smov 16  }
  0x13   : > { %v6012_v47 = vsel %vm6005_vm6, 1.0, %v7138_v1  ;;  %v5077_v63 = vld [vmem:[%s6034_s28] sm:$0xff]   ;;  %s5928_s13 = smov 24   ;;  %s5929_s14 = smov 32  }
  0x14   : > { %v349_v9 = vsub.f32 0.0, %v5083_v8  ;;  %v348_v10 = vsub.f32 0.0, %v5082_v7  ;;  %v5078_v0 = vunpack.c.l.bf16 %v5077_v63  ;;  %v5079_v2 = vunpack.c.h.bf16 %v5077_v63  ;;  %v5073_v6 = vld [vmem:[%s6041_s5] sm:$0xff]   ;;  %s5930_s15 = smov 48  }
  0x15   : > { %v5074_v8 = vunpack.c.l.bf16 %v5073_v6 }
  0x16   : > { %v357_v11 = vand.u32 2147483647, %v349_v9  ;;  %v356_v12 = vand.u32 2147483647, %v348_v10  ;;  %v351_v29 = vmax.f32 %v349_v9, 0.0  ;;  %v350_v33 = vmax.f32 %v348_v10, 0.0 }
  0x17   : > { %vm353_vm4 = vcmp.ne.f32.partialorder %v349_v9, %v349_v9  ;;  %vm352_vm5 = vcmp.ne.f32.partialorder %v348_v10, %v348_v10 }
  0x18   : > { %v359_v13 = vsub.f32 0.0, %v357_v11  ;;  %v358_v14 = vsub.f32 0.0, %v356_v12  ;;  %v5075_v12 = vunpack.c.h.bf16 %v5073_v6 }
  0x1a   : > { %v362_v15 = vmul.f32 1.442695, %v359_v13  ;;  %v360_v16 = vmul.f32 1.442695, %v358_v14 }
  0x1c   : > { %5754 = vpow2.f32 %v362_v15 }
  0x1d   : > { %5756 = vpow2.f32 %v360_v16 }
  0x29   : > { %v5755_v17 = vpop.eup %5754 }
  0x2a   : > { %v5757_v18 = vpop.eup %5756  ;;  %v373_v19 = vadd.f32 1.0, %v5755_v17  ;;  %v376_v21 = vmul.f32 -0.5, %v5755_v17  ;;  %v379_v24 = vand.u32 2147483647, %v5755_v17 }
  0x2b   : > { %v364_v20 = vadd.f32 1.0, %v5757_v18  ;;  %v367_v22 = vmul.f32 -0.5, %v5757_v18  ;;  %v370_v26 = vand.u32 2147483647, %v5757_v18 }
  0x2c   : > { %5758 = vlog2.f32 %v373_v19  ;;  %v377_v23 = vadd.f32 1.0, %v376_v21  ;;  %vm380_vm2 = vcmp.lt.f32.partialorder %v379_v24, 0.0004427343 }
  0x2d   : > { %5760 = vlog2.f32 %v364_v20  ;;  %v368_v25 = vadd.f32 1.0, %v367_v22  ;;  %vm371_vm3 = vcmp.lt.f32.partialorder %v370_v26, 0.0004427343 }
  0x2e   : > { %v378_v27 = vmul.f32 %v5755_v17, %v377_v23 }
  0x2f   : > { %v369_v30 = vmul.f32 %v5757_v18, %v368_v25 }
  0x39   : > { %v5759_v28 = vpop.eup %5758 }
  0x3a   : > { %v5761_v31 = vpop.eup %5760  ;;  %v375_v32 = vmul.f32 0.6931472, %v5759_v28 }
  0x3b   : > { %v366_v34 = vmul.f32 0.6931472, %v5761_v31  ;;  %v5122_v31 = vld [vmem:[%s5988_s22 + $0x8] sm:$0xff]  }
  0x3c   : > { %v381_v35 = vsel %vm380_vm2, %v378_v27, %v375_v32  ;;  %v5095_v32 = vunpack.c.h.bf16 %v5122_v31 }
  0x3d   : > { %v383_v36 = vadd.f32 %v381_v35, %v351_v29  ;;  %v372_v37 = vsel %vm371_vm3, %v369_v30, %v366_v34  ;;  %v5094_v35 = vunpack.c.l.bf16 %v5122_v31 }
  0x3e   : > { %v382_v38 = vadd.f32 %v372_v37, %v350_v33  ;;  %v6085_v33 = vsub.f32 0.0, %v5095_v32 }
  0x3f   : > { %v385_v40 = vsel %vm353_vm4, %v349_v9, %v383_v36  ;;  %v6088_v37 = vsub.f32 0.0, %v5094_v35 }
  0x40   : > { %v387_v41 = vsub.f32 0.0, %v385_v40  ;;  %v384_v42 = vsel %vm352_vm5, %v348_v10, %v382_v38  ;;  %v1536_v34 = vand.u32 2147483647, %v6085_v33  ;;  %vm1532_vm10 = vcmp.ne.f32.partialorder %v6085_v33, %v6085_v33 }
  0x41   : > { %v386_v43 = vsub.f32 0.0, %v384_v42  ;;  %v1535_v39 = vand.u32 2147483647, %v6088_v37  ;;  %vm1531_vm12 = vcmp.ne.f32.partialorder %v6088_v37, %v6088_v37 }
  0x42   : > { %v389_v44 = vmul.f32 0.0625, %v387_v41  ;;  %v1538_v36 = vsub.f32 0.0, %v1536_v34 }
  0x43   : > { %v388_v46 = vmul.f32 0.0625, %v386_v43  ;;  %v1537_v41 = vsub.f32 0.0, %v1535_v39 }
  0x44   : > { %5265 = vmatprep.subr.mxu0 %v389_v44  ;;  %v1541_v38 = vmul.f32 1.442695, %v1538_v36 }
  0x45   : > { %5266 = vmatpush3.msra.mxu0 %v389_v44  ;;  %v1539_v44 = vmul.f32 1.442695, %v1537_v41 }
  0x46   : > { %5267 = vmatprep.subr.mxu0 %v388_v46 }
  0x47   : > { %5268 = vmatpush3.msra.mxu0 %v388_v46 }
  0x48   : > { %5270 = vmatmul.mubr.msk.f32.vlgmr.msra.gmra.mxu0 %vm390_vm0, %v6012_v47  ;;  %5278 = vmatprep.subr.bf16.mxu0 %v7138_v1 }
  0x49   : > { %5280 = vmatprep.mubr.msk.bf16.mxu0 %vm5919_vm7, %v7138_v1  ;;  %5279 = vmatpush3.bf16.msra.mxu0 %v6018_v48 }
  0x4a   : > { %5284 = vmatprep.subr.bf16.mxu0 %v7138_v1 }
 0x108   : > { %v5271_v50 = vpop.f32.mrf.mxu0 }
 0x109   : > { %v480_v51 = vsub.f32 0.0, %v5271_v50  ;;  %v491_v52 = vrot.slane %v5271_v50, %v6027_v49  ;;  %v474_v58 = vmul.f32 1.442695, %v5271_v50 }
 0x10a   : > { %v463_v53 = vpop.f32.mrf.mxu0 }
 0x10b   : > { %v483_v54 = vmul.f32 1.442695, %v480_v51  ;;  %v472_v55 = vmul.f32 1.442695, %v463_v53  ;;  %v479_v56 = vsub.f32 0.0, %v463_v53  ;;  %v493_v57 = vsub.f32 %v491_v52, %v5271_v50 }
 0x10c   : > { %v492_v60 = vsub.f32 %v491_v52, %v463_v53  ;;  %v5925_v52 = vmov 0  }
 0x10d   : > { %5762 = vpow2.f32 %v483_v54  ;;  %v481_v59 = vmul.f32 1.442695, %v479_v56  ;;  %v496_v61 = vmul.f32 1.442695, %v493_v57 }
 0x10e   : > { %5764 = vpow2.f32 %v472_v55  ;;  %v494_v62 = vmul.f32 1.442695, %v492_v60 }
 0x10f   : > { %5766 = vpow2.f32 %v481_v59 }
 0x110   : > { %5768 = vpow2.f32 %v474_v58 }
 0x111   : > { %5770 = vpow2.f32 %v496_v61 }
 0x112   : > { %5772 = vpow2.f32 %v494_v62 }
 0x113   : > { %5774 = vpow2.f32 %v1541_v38 }
 0x114   : > { %5776 = vpow2.f32 %v1539_v44 }
 0x11a   : > { %v5763_v3 = vpop.eup %5762 }
 0x11b   : > { %v5765_v7 = vpop.eup %5764  ;;  %v486_v11 = vmul.f32 %v5763_v3, %v5079_v2 }
 0x11c   : > { %v5767_v9 = vpop.eup %5766  ;;  %v476_v15 = vmul.f32 %v5765_v7, %v5074_v8  ;;  %v1530_v8 = vmax.f32 %v6085_v33, 0.0 }
 0x11d   : > { %v485_v10 = vmul.f32 %v5767_v9, %v5078_v0  ;;  %v6044_v13 = vpop.eup %5768 }
 0x11e   : > { %v5771_v16 = vpop.eup %5770  ;;  %v477_v18 = vmul.f32 %v6044_v13, %v5075_v12 }
 0x11f   : > { %v487_v14 = vpack.c.bf16 %v486_v11, %v485_v10  ;;  %v5773_v19 = vpop.eup %5772  ;;  %v499_v22 = vmul.f32 %v5771_v16, %v5079_v2 }
 0x120   : > { %v6050_v20 = vpack.c.bf16 %v477_v18, %v476_v15  ;;  %v498_v21 = vmul.f32 %v5773_v19, %v5078_v0  ;;  %v5775_v53 = vpop.eup %5774 }
 0x121   : > { %986 = vrot.lane.b32.xlu1 %v487_v14, %s5920_s6  ;;  %744 = vrot.lane.b32.xlu0 %v487_v14, %s5921_s7  ;;  %v506_v17 = vsel %vm501_vm8, %v487_v14, 0  ;;  %v1552_v55 = vadd.f32 1.0, %v5775_v53  ;;  %v5777_v56 = vpop.eup %5776  ;;  %v1555_v58 = vmul.f32 -0.5, %v5775_v53  ;;  %v1558_v63 = vand.u32 2147483647, %v5775_v53 }
 0x122   : > { %5273 = vmatpush3.bf16.xpose.msra.mxu1 %v506_v17  ;;  %v500_v23 = vpack.c.bf16 %v499_v22, %v498_v21  ;;  %v1543_v57 = vadd.f32 1.0, %v5777_v56  ;;  %v1546_v6 = vmul.f32 -0.5, %v5777_v56 }
 0x123   : > { %5290 = vmatprep.subr.bf16.mxu1 %v7138_v1  ;;  %5778 = vlog2.f32 %v1552_v55  ;;  %v1556_v60 = vadd.f32 1.0, %v1555_v58  ;;  %vm1559_vm9 = vcmp.lt.f32.partialorder %v1558_v63, 0.0004427343 }
 0x124   : > { %5780 = vlog2.f32 %v1543_v57  ;;  %v1547_v10 = vadd.f32 1.0, %v1546_v6 }
 0x125   : > { %984 = vrot.lane.b32.xlu1 %v6050_v20, %s5920_s6  ;;  %741 = vrot.lane.b32.xlu0 %v6050_v20, %s5921_s7  ;;  %v1557_v3 = vmul.f32 %v5775_v53, %v1556_v60 }
 0x126   : > { %v1548_v17 = vmul.f32 %v5777_v56, %v1547_v10 }
 0x129   : > { %1038 = vrot.lane.b32.xlu1 %v6018_v48, %s5922_s8  ;;  %796 = vrot.lane.b32.xlu0 %v6018_v48, %s5920_s6 }
 0x12a   : > { %5275 = vmatmul.mubr.msk.bf16.vlgmr.msra.gmra.mxu1 %vm501_vm8, %v6050_v20 }
 0x12b   : > { %5291 = vmatpush3.bf16.msra.mxu1 %v500_v23  ;;  %5292 = vmatprep.mubr.msk.bf16.mxu1 %vm5919_vm7, %v7138_v1 }
 0x12c   : > { %5302 = vmatprep.subr.bf16.mxu1 %v7138_v1 }
 0x12d   : > { %1225 = vrot.lane.b32.xlu0 %v6050_v20, %s5923_s9 }
 0x130   : > { %v5779_v61 = vpop.eup %5778 }
 0x131   : > { %927 = vrot.lane.b32.xlu0 %v500_v23, %s5921_s7  ;;  %v1554_v2 = vmul.f32 0.6931472, %v5779_v61  ;;  %v5781_v11 = vpop.eup %5780 }
 0x132   : > { %v1545_v16 = vmul.f32 0.6931472, %v5781_v11 }
 0x133   : > { %v1560_v9 = vsel %vm1559_vm9, %v1557_v3, %v1554_v2 }
 0x134   : > { %v1562_v15 = vadd.f32 %v1560_v9, %v1530_v8 }
 0x135   : > { %1227 = vrot.lane.b32.xlu0 %v487_v14, %s5923_s9  ;;  %v1549_v14 = vand.u32 2147483647, %v5777_v56 }
 0x136   : > { %v1564_v19 = vsel %vm1532_vm10, %v6085_v33, %v1562_v15 }
 0x137   : > { %vm1550_vm11 = vcmp.lt.f32.partialorder %v1549_v14, 0.0004427343 }
 0x138   : > { %v1551_v22 = vsel %vm1550_vm11, %v1548_v17, %v1545_v16 }
 0x139   : > { %1168 = vrot.lane.b32.xlu0 %v500_v23, %s5920_s6 }
 0x14c   : > { %673 = vxpose.xlu1.c.b16.start.end [1/1] (short) (narrow) %v6018_v48, 16 }
 0x193   : > { %v987_v24 = vpop.permute.xlu1 %986  ;;  %v745_v25 = vpop.permute.xlu0 %744 }
 0x194   : > { %v750_v54 = vsel %vm501_vm8, %v745_v25, 0  ;;  %v992_v59 = vsel %vm501_vm8, %v987_v24, 0 }
 0x197   : > { %v6072_v26 = vpop.permute.xlu1 %984  ;;  %v742_v27 = vpop.permute.xlu0 %741 }
 0x19b   : > { %v6074_v28 = vpop.permute.xlu1 %1038  ;;  %v797_v29 = vpop.permute.xlu0 %796 }
 0x19c   : > { %1152 = vxpose.xlu1.c.b16.start.end [1/1] (short) (narrow) %v6074_v28, 16  ;;  %910 = vxpose.xlu0.c.b16.start.end [1/1] (short) (narrow) %v797_v29, 16 }
 0x19f   : > { %v1226_v62 = vpop.permute.xlu0 %1225 }
 0x1a0   : > { %1279 = vrot.lane.b32.xlu1 %v6018_v48, %s5924_s10 }
 0x1a3   : > { %v6118_v7 = vpop.permute.xlu0 %927 }
 0x1a4   : > { %1409 = vrot.lane.b32.xlu1 %v500_v23, %s5923_s9  ;;  %v1566_v23 = vsub.f32 0.0, %v1564_v19 }
 0x1a6   : > { %v1568_v25 = vmul.f32 0.0625, %v1566_v23 }
 0x1a7   : > { %v1228_v18 = vpop.permute.xlu0 %1227 }
 0x1a8   : > { %v1233_v21 = vsel %vm501_vm8, %v1228_v18, 0 }
 0x1ab   : > { %v1169_v55 = vpop.permute.xlu0 %1168 }
 0x1ae   : > { %v681_v30 = vpop.trf.xlu1 }
 0x1af   : > { %5293 = vmatmul.mubr.msk.bf16.vlgmr.msra.gmra.mxu1 %vm390_vm0, %v681_v30 }
 0x1b0   : > { %5303 = vmatpush3.bf16.msra.mxu1 %v797_v29  ;;  %5304 = vmatprep.mubr.msk.bf16.mxu1 %vm5919_vm7, %v7138_v1 }
 0x1b1   : > { %5314 = vmatprep.subr.bf16.mxu1 %v7138_v1 }
 0x1ea   : > { %v542_v40 = vpop.f32.mrf.mxu1 }
 0x1eb   : > { %v549_v46 = vsel %vm5980_vm1, %v542_v40, 0.0 }
 0x1ec   : > { %v5276_v42 = vpop.f32.mrf.mxu1 }
 0x1ee   : > { %v545_v43 = vpop.f32.mrf.mxu1 }
 0x1ef   : > { %v550_v48 = vsel %vm6005_vm6, %v545_v43, 0.0 }
 0x1f0   : > { %v551_v50 = vpack.c.bf16 %v550_v48, %v549_v46  ;;  %v5277_v51 = vpop.f32.mrf.mxu1 }
 0x1f2   : > { %5281 = vmatmul.mubr.msk.bf16.vlgmr.msra.gmra.mxu0 %vm390_vm0, %v551_v50 }
 0x1f3   : > { %5285 = vmatpush3.bf16.xpose.msra.mxu0 %v5925_v52  ;;  %5286 = vmatprep.mubr.msk.bf16.mxu0 %vm5919_vm7, %v7138_v1 }
 0x1f4   : > { %5296 = vmatprep.subr.bf16.mxu0 %v7138_v1 }
 0x1fa   : > { %5287 = vmatmul.mubr.msk.bf16.vlgmr.msra.gmra.mxu0 %vm501_vm8, %v6050_v20  ;;  %v1529_v20 = vmax.f32 %v6088_v37, 0.0 }
 0x1fb   : > { %5297 = vmatpush3.bf16.xpose.msra.mxu0 %v750_v54  ;;  %5298 = vmatprep.mubr.msk.bf16.mxu0 %vm5919_vm7, %v7138_v1 }
 0x1fc   : > { %5308 = vmatprep.subr.bf16.mxu0 %v7138_v1  ;;  %v1561_v24 = vadd.f32 %v1551_v22, %v1529_v20 }
 0x1fe   : > { %v6116_v0 = vpop.trf.xlu1  ;;  %v918_v58 = vpop.trf.xlu0 }
 0x202   : > { %5299 = vmatmul.mubr.msk.bf16.vlgmr.msra.gmra.mxu0 %vm501_vm8, %v742_v27 }
 0x203   : > { %5309 = vmatpush3.bf16.xpose.msra.mxu0 %v5925_v52  ;;  %5310 = vmatprep.mubr.msk.bf16.mxu0 %vm5919_vm7, %v7138_v1 }
 0x204   : > { %5320 = vmatprep.subr.bf16.mxu0 %v7138_v1 }
 0x20a   : > { %5311 = vmatmul.mubr.msk.bf16.vlgmr.msra.gmra.mxu0 %vm501_vm8, %v742_v27  ;;  %v1563_v27 = vsel %vm1531_vm12, %v6088_v37, %v1561_v24 }
 0x20b   : > { %5321 = vmatpush3.bf16.xpose.msra.mxu0 %v992_v59  ;;  %5322 = vmatprep.mubr.msk.bf16.mxu0 %vm5919_vm7, %v7138_v1 }
 0x20c   : > { %5332 = vmatprep.subr.bf16.mxu0 %v7138_v1 }
 0x212   : > { %5323 = vmatmul.mubr.msk.bf16.vlgmr.msra.gmra.mxu0 %vm501_vm8, %v6072_v26  ;;  %v6124_v12 = vpop.permute.xlu1 %1279 }
 0x213   : > { %5333 = vmatpush3.bf16.xpose.msra.mxu0 %v5925_v52  ;;  %5334 = vmatprep.mubr.msk.bf16.mxu0 %vm5919_vm7, %v7138_v1 }
 0x214   : > { %5344 = vmatprep.subr.bf16.mxu0 %v7138_v1  ;;  %1393 = vxpose.xlu0.c.b16.start.end [1/1] (short) (narrow) %v6124_v12, 16 }
 0x216   : > { %v1410_v19 = vpop.permute.xlu1 %1409 }
 0x21a   : > { %5335 = vmatmul.mubr.msk.bf16.vlgmr.msra.gmra.mxu0 %vm501_vm8, %v6072_v26  ;;  %v1565_v26 = vsub.f32 0.0, %v1563_v27 }
 0x21b   : > { %5345 = vmatpush3.bf16.xpose.msra.mxu0 %v1233_v21  ;;  %5346 = vmatprep.mubr.msk.bf16.mxu0 %vm5919_vm7, %v7138_v1 }
 0x21c   : > { %5356 = vmatprep.subr.bf16.mxu0 %v7138_v1  ;;  %v1567_v29 = vmul.f32 0.0625, %v1565_v26 }
 0x222   : > { %5347 = vmatmul.mubr.msk.bf16.vlgmr.msra.gmra.mxu0 %vm501_vm8, %v1226_v62 }
 0x223   : > { %5357 = vmatpush3.bf16.xpose.msra.mxu0 %v5925_v52  ;;  %5358 = vmatprep.mubr.msk.bf16.mxu0 %vm5919_vm7, %v7138_v1 }
 0x224   : > { %5368 = vmatprep.subr.mxu0 %v1568_v25 }
 0x22a   : > { %5359 = vmatmul.mubr.msk.bf16.vlgmr.msra.gmra.mxu0 %vm501_vm8, %v1226_v62 }
 0x22b   : > { %5369 = vmatpush3.msra.mxu0 %v1568_v25  ;;  %5372 = vmatprep.mubr.msk.f32.mxu0 %vm390_vm0, %v5999_v5 }
 0x22c   : > { %5370 = vmatprep.subr.mxu0 %v1567_v29 }
 0x22d   : > { %5371 = vmatpush3.msra.mxu0 %v1567_v29 }
 0x22e   : > { %5381 = vmatprep.subr.bf16.mxu0 %v7138_v1 }
 0x232   : > { %5373 = vmatmul.mubr.msk.f32.vlgmr.msra.gmra.mxu0 %vm390_vm0, %v6012_v47 }
 0x233   : > { %5383 = vmatprep.mubr.msk.bf16.mxu0 %vm5919_vm7, %v7138_v1 }
 0x26f   : > { %v6155_v30 = vpop.f32.mrf.mxu1 }
 0x271   : > { %v5294_v31 = vpop.f32.mrf.mxu1 }
 0x273   : > { %v6157_v32 = vpop.f32.mrf.mxu1 }
 0x275   : > { %v5295_v33 = vpop.f32.mrf.mxu1 }
 0x276   : > { %v1401_v21 = vpop.trf.xlu0 }
 0x2b2   : > { %v595_v34 = vpop.f32.mrf.mxu0 }
 0x2b4   : > { %v5282_v35 = vpop.f32.mrf.mxu0 }
 0x2b6   : > { %v598_v36 = vpop.f32.mrf.mxu0 }
 0x2b8   : > { %v5283_v37 = vpop.f32.mrf.mxu0 }
 0x2ba   : > { %v639_v38 = vpop.f32.mrf.mxu0 }
 0x2bb   : > { %v6159_v39 = vadd.f32 %v639_v38, %v595_v34  ;;  %v6223_v34 = vld [vmem:[%s6034_s28 + $0x8] sm:$0xff]  }
 0x2bc   : > { %v5288_v40 = vpop.f32.mrf.mxu0  ;;  %v5091_v35 = vunpack.c.h.bf16 %v6223_v34  ;;  %v5120_v38 = vld [vmem:[%s6041_s5 + $0x8] sm:$0xff]  }
 0x2bd   : > { %v736_v40 = vrot.slane %v6044_v13, %v6027_v49 }
 0x2be   : > { %v642_v41 = vpop.f32.mrf.mxu0 }
 0x2bf   : > { %v6161_v42 = vadd.f32 %v642_v41, %v598_v36  ;;  %v5090_v36 = vunpack.c.l.bf16 %v6223_v34 }
 0x2c0   : > { %v5289_v43 = vpop.f32.mrf.mxu0 }
 0x2c2   : > { %v786_v44 = vpop.f32.mrf.mxu0 }
 0x2c3   : > { %v793_v50 = vsel %vm5980_vm1, %v786_v44, 0.0 }
 0x2c4   : > { %v5300_v46 = vpop.f32.mrf.mxu0 }
 0x2c5   : > { %v5086_v46 = vunpack.c.l.bf16 %v5120_v38 }
 0x2c6   : > { %v789_v48 = vpop.f32.mrf.mxu0 }
 0x2c7   : > { %v794_v51 = vsel %vm6005_vm6, %v789_v48, 0.0  ;;  %v5087_v48 = vunpack.c.h.bf16 %v5120_v38 }
 0x2c8   : > { %v795_v52 = vpack.c.bf16 %v794_v51, %v793_v50  ;;  %v5301_v53 = vpop.f32.mrf.mxu0  ;;  %v6234_v51 = vmul.f32 0.0, %v736_v40 }
 0x2ca   : > { %5305 = vmatmul.mubr.msk.bf16.vlgmr.msra.gmra.mxu1 %vm390_vm0, %v795_v52  ;;  %v6168_v54 = vpop.f32.mrf.mxu0 }
 0x2cb   : > { %5315 = vmatpush3.bf16.msra.mxu1 %v6118_v7  ;;  %5316 = vmatprep.mubr.msk.bf16.mxu1 %vm5919_vm7, %v7138_v1 }
 0x2cc   : > { %v5312_v56 = vpop.f32.mrf.mxu0  ;;  %5326 = vmatprep.subr.bf16.mxu1 %v7138_v1 }
 0x2ce   : > { %v6174_v57 = vpop.f32.mrf.mxu0 }
 0x2d0   : > { %v5313_v59 = vpop.f32.mrf.mxu0 }
 0x2d1   : > { %v6249_v59 = vadd.f32 %v6234_v51, %v6155_v30  ;;  %v6267_v30 = vld [vmem:[%s5994_s25 + $0x8] sm:$0xff]  }
 0x2d2   : > { %5317 = vmatmul.mubr.msk.bf16.vlgmr.msra.gmra.mxu1 %vm390_vm0, %v918_v58  ;;  %v1028_v60 = vpop.f32.mrf.mxu0  ;;  %5382 = vmatpush3.bf16.msra.mxu0 %v6267_v30 }
 0x2d3   : > { %5327 = vmatpush3.bf16.msra.mxu1 %v6074_v28  ;;  %5328 = vmatprep.mubr.msk.bf16.mxu1 %vm5919_vm7, %v7138_v1  ;;  %v1035_v63 = vsel %vm5980_vm1, %v1028_v60, 0.0 }
 0x2d4   : > { %v5324_v61 = vpop.f32.mrf.mxu0  ;;  %5338 = vmatprep.subr.bf16.mxu1 %v7138_v1  ;;  %5393 = vmatprep.subr.bf16.mxu0 %v7138_v1 }
 0x2d6   : > { %v1031_v62 = vpop.f32.mrf.mxu0 }
 0x2d7   : > { %v1036_v2 = vsel %vm6005_vm6, %v1031_v62, 0.0 }
 0x2d8   : > { %v1037_v3 = vpack.c.bf16 %v1036_v2, %v1035_v63  ;;  %v5325_v6 = vpop.f32.mrf.mxu0 }
 0x2da   : > { %5329 = vmatmul.mubr.msk.bf16.vlgmr.msra.gmra.mxu1 %vm390_vm0, %v1037_v3  ;;  %v6186_v7 = vpop.f32.mrf.mxu0 }
 0x2db   : > { %5339 = vmatpush3.bf16.msra.mxu1 %v1169_v55  ;;  %5340 = vmatprep.mubr.msk.bf16.mxu1 %vm5919_vm7, %v7138_v1  ;;  %v6242_v55 = vadd.f32 %v6234_v51, %v6157_v32 }
 0x2dc   : > { %v5336_v28 = vpop.f32.mrf.mxu0  ;;  %5350 = vmatprep.subr.bf16.mxu1 %v7138_v1 }
 0x2dd   : > { %v1673_v60 = vpack.c.bf16 %v6242_v55, %v6249_v59 }
 0x2de   : > { %v6191_v8 = vpop.f32.mrf.mxu0 }
 0x2df   : > { %v1775_v32 = vsel %vm501_vm8, %v1673_v60, 0 }
 0x2e0   : > { %v5337_v9 = vpop.f32.mrf.mxu0 }
 0x2e2   : > { %5341 = vmatmul.mubr.msk.bf16.vlgmr.msra.gmra.mxu1 %vm390_vm0, %v6116_v0  ;;  %v1269_v10 = vpop.f32.mrf.mxu0 }
 0x2e3   : > { %5351 = vmatpush3.bf16.msra.mxu1 %v6124_v12  ;;  %5352 = vmatprep.mubr.msk.bf16.mxu1 %vm5919_vm7, %v7138_v1  ;;  %v1276_v15 = vsel %vm5980_vm1, %v1269_v10, 0.0 }
 0x2e4   : > { %v5348_v11 = vpop.f32.mrf.mxu0  ;;  %5362 = vmatprep.subr.bf16.mxu1 %v7138_v1 }
 0x2e6   : > { %v1272_v14 = vpop.f32.mrf.mxu0 }
 0x2e7   : > { %v1277_v16 = vsel %vm6005_vm6, %v1272_v14, 0.0 }
 0x2e8   : > { %v1278_v17 = vpack.c.bf16 %v1277_v16, %v1276_v15  ;;  %v5349_v18 = vpop.f32.mrf.mxu0 }
 0x2ea   : > { %5353 = vmatmul.mubr.msk.bf16.vlgmr.msra.gmra.mxu1 %vm390_vm0, %v1278_v17  ;;  %v6204_v0 = vpop.f32.mrf.mxu0 }
 0x2eb   : > { %5363 = vmatpush3.bf16.msra.mxu1 %v1410_v19  ;;  %5364 = vmatprep.mubr.msk.bf16.mxu1 %vm5919_vm7, %v7138_v1 }
 0x2ec   : > { %v5360_v12 = vpop.f32.mrf.mxu0  ;;  %5375 = vmatprep.subr.bf16.mxu1 %v7138_v1 }
 0x2ee   : > { %v6209_v20 = vpop.f32.mrf.mxu0 }
 0x2f0   : > { %v5361_v22 = vpop.f32.mrf.mxu0 }
 0x2f2   : > { %v6211_v23 = vpop.f32.mrf.mxu0  ;;  %5365 = vmatmul.mubr.msk.bf16.vlgmr.msra.gmra.mxu1 %vm390_vm0, %v1401_v21 }
 0x2f3   : > { %v1652_v24 = vsub.f32 0.0, %v6211_v23  ;;  %5377 = vmatprep.mubr.msk.bf16.mxu1 %vm5919_vm7, %v7138_v1  ;;  %v1646_v33 = vmul.f32 1.442695, %v6211_v23 }
 0x2f4   : > { %v6217_v25 = vpop.f32.mrf.mxu0 }
 0x2f5   : > { %v1655_v27 = vmul.f32 1.442695, %v1652_v24  ;;  %v1651_v26 = vsub.f32 0.0, %v6217_v25  ;;  %v1644_v29 = vmul.f32 1.442695, %v6217_v25 }
 0x2f7   : > { %5782 = vpow2.f32 %v1655_v27  ;;  %v1653_v31 = vmul.f32 1.442695, %v1651_v26 }
 0x2f9   : > { %5784 = vpow2.f32 %v1653_v31 }
 0x2fa   : > { %5786 = vpow2.f32 %v1644_v29 }
 0x2fb   : > { %5788 = vpow2.f32 %v1646_v33  ;;  %v1663_v33 = vrot.slane %v6211_v23, %v6027_v49 }
 0x2fd   : > { %v1664_v38 = vsub.f32 %v1663_v33, %v6217_v25  ;;  %v1665_v40 = vsub.f32 %v1663_v33, %v6211_v23 }
 0x304   : > { %v5783_v37 = vpop.eup %5782 }
 0x305   : > { %v1658_v41 = vmul.f32 %v5783_v37, %v5091_v35 }
 0x306   : > { %v5785_v43 = vpop.eup %5784 }
 0x307   : > { %v1657_v44 = vmul.f32 %v5785_v43, %v5090_v36  ;;  %v5787_v50 = vpop.eup %5786  ;;  %v1668_v43 = vmul.f32 1.442695, %v1665_v40 }
 0x308   : > { %v6238_v53 = vpop.eup %5788  ;;  %v1648_v56 = vmul.f32 %v5787_v50, %v5086_v46 }
 0x309   : > { %v6236_v52 = vpack.c.bf16 %v1658_v41, %v1657_v44  ;;  %v1649_v58 = vmul.f32 %v6238_v53, %v5087_v48  ;;  %v1666_v41 = vmul.f32 1.442695, %v1664_v38 }
 0x30b   : > { %v1678_v13 = vsel %vm501_vm8, %v6236_v52, 0  ;;  %v6254_v61 = vpack.c.bf16 %v1649_v58, %v1648_v56  ;;  %5790 = vpow2.f32 %v1666_v41 }
 0x30c   : > { %5376 = vmatpush3.bf16.xpose.msra.mxu1 %v1678_v13  ;;  %5792 = vpow2.f32 %v1668_v43 }
 0x30d   : > { %5387 = vmatprep.subr.bf16.mxu1 %v7138_v1 }
 0x313   : > { %5378 = vmatmul.mubr.msk.bf16.vlgmr.msra.gmra.mxu1 %vm501_vm8, %v6254_v61 }
 0x314   : > { %5388 = vmatpush3.bf16.xpose.msra.mxu1 %v1775_v32  ;;  %5389 = vmatprep.mubr.msk.bf16.mxu1 %vm5919_vm7, %v7138_v1 }
 0x315   : > { %5399 = vmatprep.subr.bf16.mxu1 %v7138_v1 }
 0x318   : > { %v5791_v44 = vpop.eup %5790 }
 0x319   : > { %v5793_v46 = vpop.eup %5792  ;;  %v1670_v50 = vmul.f32 %v5791_v44, %v5090_v36 }
 0x31a   : > { %v1671_v13 = vmul.f32 %v5793_v46, %v5091_v35 }
 0x31b   : > { %5390 = vmatmul.mubr.msk.bf16.vlgmr.msra.gmra.mxu1 %vm501_vm8, %v6254_v61 }
 0x31c   : > { %5401 = vmatprep.mubr.msk.bf16.mxu1 %vm5919_vm7, %v7138_v1  ;;  %v1672_v60 = vpack.c.bf16 %v1671_v13, %v1670_v50 }
 0x38a   : > { %v6271_v62 = vpop.f32.mrf.mxu1 }
 0x38c   : > { %v5306_v63 = vpop.f32.mrf.mxu1 }
 0x38e   : > { %v6273_v2 = vpop.f32.mrf.mxu1 }
 0x390   : > { %v5307_v3 = vpop.f32.mrf.mxu1 }
 0x392   : > { %v967_v6 = vpop.f32.mrf.mxu1 }
 0x393   : > { %976 = vrot.lane.b32.xlu1 %v967_v6, %s5926_s11 }
 0x394   : > { %v5318_v28 = vpop.f32.mrf.mxu1 }
 0x396   : > { %v970_v9 = vpop.f32.mrf.mxu1 }
 0x397   : > { %978 = vrot.lane.b32.xlu0 %v970_v9, %s5926_s11 }
 0x398   : > { %v5319_v10 = vpop.f32.mrf.mxu1 }
 0x39a   : > { %v6277_v11 = vpop.f32.mrf.mxu1 }
 0x39b   : > { %1917 = vrot.lane.b32.xlu0 %v6236_v52, %s5921_s7 }
 0x39c   : > { %v5330_v14 = vpop.f32.mrf.mxu1 }
 0x39e   : > { %v6281_v15 = vpop.f32.mrf.mxu1 }
 0x3a0   : > { %v5331_v16 = vpop.f32.mrf.mxu1 }
 0x3a2   : > { %v1208_v17 = vpop.f32.mrf.mxu1 }
 0x3a3   : > { %1217 = vrot.lane.b32.xlu1 %v1208_v17, %s5927_s12 }
 0x3a4   : > { %v5342_v18 = vpop.f32.mrf.mxu1 }
 0x3a6   : > { %v1211_v19 = vpop.f32.mrf.mxu1 }
 0x3a7   : > { %1219 = vrot.lane.b32.xlu1 %v1211_v19, %s5927_s12 }
 0x3a8   : > { %v5343_v12 = vpop.f32.mrf.mxu1 }
 0x3aa   : > { %v6285_v21 = vpop.f32.mrf.mxu1 }
 0x3ab   : > { %1914 = vrot.lane.b32.xlu1 %v6254_v61, %s5921_s7 }
 0x3ac   : > { %v5354_v22 = vpop.f32.mrf.mxu1 }
 0x3ae   : > { %v6289_v24 = vpop.f32.mrf.mxu1 }
 0x3af   : > { %2168 = vrot.lane.b32.xlu1 %v6236_v52, %s5920_s6 }
 0x3b0   : > { %v5355_v27 = vpop.f32.mrf.mxu1 }
 0x3b2   : > { %v1449_v26 = vpop.f32.mrf.mxu1 }
 0x3b4   : > { %v5366_v29 = vpop.f32.mrf.mxu1 }
 0x3b6   : > { %v1452_v31 = vpop.f32.mrf.mxu1 }
 0x3b8   : > { %v5367_v37 = vpop.f32.mrf.mxu1 }
 0x3d3   : > { %v1714_v48 = vpop.f32.mrf.mxu1 }
 0x3d4   : > { %v1721_v58 = vsel %vm5980_vm1, %v1714_v48, 0.0 }
 0x3d5   : > { %v5379_v56 = vpop.f32.mrf.mxu1 }
 0x3d7   : > { %v1717_v25 = vpop.f32.mrf.mxu1 }
 0x3d8   : > { %v1722_v23 = vsel %vm6005_vm6, %v1717_v25, 0.0 }
 0x3d9   : > { %v1723_v32 = vpack.c.bf16 %v1722_v23, %v1721_v58  ;;  %v5380_v63 = vpop.f32.mrf.mxu1 }
 0x3da   : > { %v5125_v63 = vld [vmem:[%s5988_s22 + $0x10] sm:$0xff]  }
 0x3db   : > { %5384 = vmatmul.mubr.msk.bf16.vlgmr.msra.gmra.mxu0 %vm390_vm0, %v1723_v32 }
 0x3dc   : > { %5394 = vmatpush3.bf16.msra.mxu0 %v1672_v60  ;;  %5395 = vmatprep.mubr.msk.bf16.mxu0 %vm5919_vm7, %v7138_v1 }
 0x3dd   : > { %5405 = vmatprep.subr.bf16.mxu0 %v7138_v1 }
 0x405   : > { %v977_v34 = vpop.permute.xlu1 %976 }
 0x406   : > { %v6310_v36 = vadd.f32 %v977_v34, %v6234_v51  ;;  %v5107_v34 = vunpack.c.h.bf16 %v5125_v63 }
 0x409   : > { %v979_v35 = vpop.permute.xlu0 %978 }
 0x40a   : > { %v6313_v3 = vadd.f32 %v979_v35, %v6234_v51  ;;  %v2725_v35 = vsub.f32 0.0, %v5107_v34 }
 0x40c   : > { %v1912_v6 = vpack.c.bf16 %v6313_v3, %v6310_v36  ;;  %vm2729_vm14 = vcmp.ne.f32.partialorder %v2725_v35, %v2725_v35 }
 0x40d   : > { %v1918_v28 = vpop.permute.xlu0 %1917 }
 0x40e   : > { %2017 = vrot.lane.b32.xlu0 %v1912_v6, %s5921_s7  ;;  %v1923_v9 = vsel %vm501_vm8, %v1918_v28, 0  ;;  %v2733_v6 = vand.u32 2147483647, %v2725_v35  ;;  %v5106_v28 = vunpack.c.l.bf16 %v5125_v63 }
 0x40f   : > { %5400 = vmatpush3.bf16.xpose.msra.mxu1 %v1923_v9 }
 0x410   : > { %5411 = vmatprep.subr.bf16.mxu1 %v7138_v1  ;;  %v2735_v9 = vsub.f32 0.0, %v2733_v6  ;;  %v2727_v6 = vmax.f32 %v2725_v35, 0.0 }
 0x412   : > { %2166 = vrot.lane.b32.xlu0 %v6254_v61, %s5920_s6 }
 0x415   : > { %v1218_v10 = vpop.permute.xlu1 %1217 }
 0x416   : > { %2418 = vrot.lane.b32.xlu0 %v6236_v52, %s5923_s9  ;;  %v6325_v16 = vadd.f32 %v1218_v10, %v6234_v51  ;;  %v6348_v52 = vpop.f32.mrf.mxu1  ;;  %v2724_v10 = vsub.f32 0.0, %v5106_v28 }
 0x418   : > { %v5391_v12 = vpop.f32.mrf.mxu1  ;;  %vm2728_vm2 = vcmp.ne.f32.partialorder %v2724_v10, %v2724_v10 }
 0x419   : > { %v1220_v14 = vpop.permute.xlu1 %1219 }
 0x41a   : > { %v6328_v17 = vadd.f32 %v1220_v14, %v6234_v51  ;;  %1458 = vrot.lane.b32.xlu0 %v1449_v26, %s5928_s13  ;;  %v6350_v22 = vpop.f32.mrf.mxu1  ;;  %v2738_v14 = vmul.f32 1.442695, %v2735_v9 }
 0x41c   : > { %v2165_v18 = vpack.c.bf16 %v6328_v17, %v6325_v16  ;;  %5794 = vpow2.f32 %v2738_v14 }
 0x41d   : > { %v1915_v19 = vpop.permute.xlu1 %1914 }
 0x41e   : > { %2268 = vrot.lane.b32.xlu1 %v2165_v18, %s5920_s6  ;;  %5402 = vmatmul.mubr.msk.bf16.vlgmr.msra.gmra.mxu1 %vm501_vm8, %v1915_v19  ;;  %v2732_v18 = vand.u32 2147483647, %v2724_v10 }
 0x41f   : > { %1969 = vrot.lane.b32.xlu0 %v6267_v30, %s5920_s6  ;;  %5413 = vmatprep.mubr.msk.bf16.mxu1 %vm5919_vm7, %v7138_v1 }
 0x421   : > { %v2169_v29 = vpop.permute.xlu1 %2168 }
 0x422   : > { %2416 = vrot.lane.b32.xlu1 %v6254_v61, %s5923_s9  ;;  %v5392_v61 = vpop.f32.mrf.mxu1  ;;  %v2174_v33 = vsel %vm501_vm8, %v2169_v29, 0 }
 0x423   : > { %2470 = vrot.lane.b32.xlu0 %v6267_v30, %s5924_s10 }
 0x426   : > { %1460 = vrot.lane.b32.xlu1 %v1452_v31, %s5928_s13 }
 0x42a   : > { %2220 = vrot.lane.b32.xlu1 %v6267_v30, %s5922_s8 }
 0x42e   : > { %2106 = vrot.lane.b32.xlu1 %v1672_v60, %s5921_s7 }
 0x432   : > { %2356 = vrot.lane.b32.xlu1 %v1672_v60, %s5920_s6 }
 0x441   : > { %1844 = vxpose.xlu0.c.b16.start.end [1/1] (short) (narrow) %v6267_v30, 16 }
 0x44a   : > { %2606 = vrot.lane.b32.xlu0 %v1672_v60, %s5923_s9 }
 0x480   : > { %v2018_v27 = vpop.permute.xlu0 %2017 }
 0x481   : > { %v2020_v26 = vsel %vm501_vm8, %v2018_v27, 0 }
 0x482   : > { %5412 = vmatpush3.bf16.xpose.msra.mxu1 %v2020_v26 }
 0x483   : > { %5423 = vmatprep.subr.bf16.mxu1 %v7138_v1 }
 0x484   : > { %v2167_v31 = vpop.permute.xlu0 %2166 }
 0x488   : > { %v2419_v30 = vpop.permute.xlu0 %2418 }
 0x489   : > { %5414 = vmatmul.mubr.msk.bf16.vlgmr.msra.gmra.mxu1 %vm501_vm8, %v1915_v19  ;;  %v2424_v46 = vsel %vm501_vm8, %v2419_v30, 0  ;;  %v2734_v19 = vsub.f32 0.0, %v2732_v18 }
 0x48a   : > { %5424 = vmatpush3.bf16.xpose.msra.mxu1 %v2174_v33  ;;  %5425 = vmatprep.mubr.msk.bf16.mxu1 %vm5919_vm7, %v7138_v1 }
 0x48b   : > { %5435 = vmatprep.subr.bf16.mxu1 %v7138_v1  ;;  %v2736_v12 = vmul.f32 1.442695, %v2734_v19 }
 0x48c   : > { %v1459_v40 = vpop.permute.xlu0 %1458 }
 0x48d   : > { %v6370_v48 = vadd.f32 %v1459_v40, %v6234_v51  ;;  %5796 = vpow2.f32 %v2736_v12 }
 0x490   : > { %v2269_v37 = vpop.permute.xlu1 %2268 }
 0x491   : > { %v2271_v38 = vsel %vm501_vm8, %v2269_v37, 0  ;;  %5426 = vmatmul.mubr.msk.bf16.vlgmr.msra.gmra.mxu1 %vm501_vm8, %v2167_v31  ;;  %v1970_v43 = vpop.permute.xlu0 %1969  ;;  %v5795_v37 = vpop.eup %5794 }
 0x492   : > { %5436 = vmatpush3.bf16.xpose.msra.mxu1 %v2271_v38  ;;  %5437 = vmatprep.mubr.msk.bf16.mxu1 %vm5919_vm7, %v7138_v1  ;;  %v2749_v40 = vadd.f32 1.0, %v5795_v37 }
 0x493   : > { %5447 = vmatprep.subr.bf16.mxu1 %v7138_v1 }
 0x494   : > { %v6366_v41 = vpop.permute.xlu1 %2416  ;;  %5798 = vlog2.f32 %v2749_v40 }
 0x498   : > { %v1461_v44 = vpop.permute.xlu1 %1460 }
 0x499   : > { %v6373_v50 = vadd.f32 %v1461_v44, %v6234_v51  ;;  %5438 = vmatmul.mubr.msk.bf16.vlgmr.msra.gmra.mxu1 %vm501_vm8, %v2167_v31  ;;  %v6386_v51 = vpop.permute.xlu0 %2470 }
 0x49a   : > { %5448 = vmatpush3.bf16.xpose.msra.mxu1 %v2424_v46  ;;  %5449 = vmatprep.mubr.msk.bf16.mxu1 %vm5919_vm7, %v7138_v1  ;;  %v2752_v46 = vmul.f32 -0.5, %v5795_v37 }
 0x49b   : > { %v2415_v13 = vpack.c.bf16 %v6373_v50, %v6370_v48  ;;  %v6380_v56 = vpop.f32.mrf.mxu0  ;;  %5459 = vmatprep.subr.bf16.mxu1 %v7138_v1 }
 0x49c   : > { %v6383_v58 = vpop.permute.xlu1 %2220 }
 0x49d   : > { %2518 = vrot.lane.b32.xlu1 %v2415_v13, %s5923_s9  ;;  %v5385_v25 = vpop.f32.mrf.mxu0  ;;  %2340 = vxpose.xlu0.c.b16.start.end [1/1] (short) (narrow) %v6383_v58, 16  ;;  %v2753_v13 = vadd.f32 1.0, %v2752_v46 }
 0x49f   : > { %v6389_v23 = vpop.f32.mrf.mxu0  ;;  %v2754_v63 = vmul.f32 %v5795_v37, %v2753_v13 }
 0x4a0   : > { %v2107_v38 = vpop.permute.xlu1 %2106 }
 0x4a1   : > { %5450 = vmatmul.mubr.msk.bf16.vlgmr.msra.gmra.mxu1 %vm501_vm8, %v6366_v41  ;;  %v5386_v60 = vpop.f32.mrf.mxu0 }
 0x4a2   : > { %5461 = vmatprep.mubr.msk.bf16.mxu1 %vm5919_vm7, %v7138_v1  ;;  %v2755_v60 = vand.u32 2147483647, %v5795_v37 }
 0x4a3   : > { %v1852_v32 = vpop.trf.xlu0 }
 0x4a4   : > { %5396 = vmatmul.mubr.msk.bf16.vlgmr.msra.gmra.mxu0 %vm390_vm0, %v1852_v32  ;;  %vm2756_vm13 = vcmp.lt.f32.partialorder %v2755_v60, 0.0004427343 }
 0x4a5   : > { %5406 = vmatpush3.bf16.msra.mxu0 %v1970_v43  ;;  %5407 = vmatprep.mubr.msk.bf16.mxu0 %vm5919_vm7, %v7138_v1 }
 0x4a6   : > { %5417 = vmatprep.subr.bf16.mxu0 %v7138_v1 }
 0x4c0   : > { %2089 = vxpose.xlu1.c.b16.start.end [1/1] (short) (narrow) %v1970_v43, 16  ;;  %v5797_v43 = vpop.eup %5796 }
 0x4c1   : > { %v2740_v44 = vadd.f32 1.0, %v5797_v43  ;;  %v5799_v25 = vpop.eup %5798  ;;  %v2743_v34 = vmul.f32 -0.5, %v5797_v43  ;;  %v2746_v18 = vand.u32 2147483647, %v5797_v43 }
 0x4c2   : > { %v2751_v32 = vmul.f32 0.6931472, %v5799_v25 }
 0x4c3   : > { %5800 = vlog2.f32 %v2740_v44  ;;  %v2744_v9 = vadd.f32 1.0, %v2743_v34  ;;  %vm2747_vm15 = vcmp.lt.f32.partialorder %v2746_v18, 0.0004427343 }
 0x4c4   : > { %2590 = vxpose.xlu1.c.b16.start.end [1/1] (short) (narrow) %v6386_v51, 16  ;;  %v2757_v28 = vsel %vm2756_vm13, %v2754_v63, %v2751_v32 }
 0x4c5   : > { %v2759_v19 = vadd.f32 %v2757_v28, %v2727_v6 }
 0x4d0   : > { %v5801_v14 = vpop.eup %5800 }
 0x4d1   : > { %v2742_v12 = vmul.f32 0.6931472, %v5801_v14  ;;  %v2607_v14 = vpop.permute.xlu0 %2606 }
 0x4de   : > { %v1959_v61 = vpop.f32.mrf.mxu1 }
 0x4df   : > { %v1966_v26 = vsel %vm5980_vm1, %v1959_v61, 0.0  ;;  %v2745_v61 = vmul.f32 %v5797_v43, %v2744_v9 }
 0x4e0   : > { %v5403_v27 = vpop.f32.mrf.mxu1 }
 0x4e1   : > { %v2761_v27 = vsel %vm2729_vm14, %v2725_v35, %v2759_v19 }
 0x4e2   : > { %v1962_v29 = vpop.f32.mrf.mxu1 }
 0x4e3   : > { %v1967_v31 = vsel %vm6005_vm6, %v1962_v29, 0.0  ;;  %v2748_v29 = vsel %vm2747_vm15, %v2745_v61, %v2742_v12 }
 0x4e4   : > { %v1968_v33 = vpack.c.bf16 %v1967_v31, %v1966_v26  ;;  %v5404_v30 = vpop.f32.mrf.mxu1  ;;  %v2726_v26 = vmax.f32 %v2724_v10, 0.0  ;;  %v2763_v31 = vsub.f32 0.0, %v2761_v27 }
 0x4e6   : > { %5408 = vmatmul.mubr.msk.bf16.vlgmr.msra.gmra.mxu0 %vm390_vm0, %v1968_v33  ;;  %v2357_v33 = vpop.permute.xlu1 %2356  ;;  %v2758_v30 = vadd.f32 %v2748_v29, %v2726_v26  ;;  %v2765_v37 = vmul.f32 0.0625, %v2763_v31 }
 0x4e7   : > { %5418 = vmatpush3.bf16.msra.mxu0 %v2107_v38  ;;  %5419 = vmatprep.mubr.msk.bf16.mxu0 %vm5919_vm7, %v7138_v1 }
 0x4e8   : > { %5429 = vmatprep.subr.bf16.mxu0 %v7138_v1  ;;  %v2760_v40 = vsel %vm2728_vm2, %v2724_v10, %v2758_v30 }
 0x4e9   : > { %v2762_v46 = vsub.f32 0.0, %v2760_v40 }
 0x4eb   : > { %v2764_v13 = vmul.f32 0.0625, %v2762_v46 }
 0x4ff   : > { %v2348_v12 = vpop.trf.xlu0 }
 0x50f   : > { %v2519_v38 = vpop.permute.xlu1 %2518 }
 0x510   : > { %v2521_v44 = vsel %vm501_vm8, %v2519_v38, 0 }
 0x511   : > { %5460 = vmatpush3.bf16.xpose.msra.mxu1 %v2521_v44 }
 0x512   : > { %5471 = vmatprep.subr.mxu1 %v2765_v37 }
 0x518   : > { %5462 = vmatmul.mubr.msk.bf16.vlgmr.msra.gmra.mxu1 %vm501_vm8, %v6366_v41 }
 0x519   : > { %5472 = vmatpush3.msra.mxu1 %v2765_v37  ;;  %5475 = vmatprep.mubr.msk.f32.mxu1 %vm390_vm0, %v5999_v5 }
 0x51a   : > { %5473 = vmatprep.subr.mxu1 %v2764_v13 }
 0x51b   : > { %5474 = vmatpush3.msra.mxu1 %v2764_v13 }
 0x51c   : > { %5484 = vmatprep.subr.bf16.mxu1 %v7138_v1 }
 0x520   : > { %5476 = vmatmul.mubr.msk.f32.vlgmr.msra.gmra.mxu1 %vm390_vm0, %v6012_v47 }
 0x521   : > { %5486 = vmatprep.mubr.msk.bf16.mxu1 %vm5919_vm7, %v7138_v1 }
 0x522   : > { %v2097_v35 = vpop.trf.xlu1 }
 0x523   : > { %5420 = vmatmul.mubr.msk.bf16.vlgmr.msra.gmra.mxu0 %vm390_vm0, %v2097_v35 }
 0x524   : > { %5430 = vmatpush3.bf16.msra.mxu0 %v6383_v58  ;;  %5431 = vmatprep.mubr.msk.bf16.mxu0 %vm5919_vm7, %v7138_v1 }
 0x525   : > { %5441 = vmatprep.subr.bf16.mxu0 %v7138_v1 }
 0x526   : > { %v2598_v46 = vpop.trf.xlu1 }
 0x549   : > { %v6424_v41 = vpop.f32.mrf.mxu1 }
 0x54b   : > { %v5415_v10 = vpop.f32.mrf.mxu1 }
 0x54d   : > { %v6426_v43 = vpop.f32.mrf.mxu1 }
 0x54f   : > { %v5416_v25 = vpop.f32.mrf.mxu1 }
 0x551   : > { %v2210_v60 = vpop.f32.mrf.mxu1 }
 0x552   : > { %v2217_v34 = vsel %vm5980_vm1, %v2210_v60, 0.0 }
 0x553   : > { %v5427_v32 = vpop.f32.mrf.mxu1 }
 0x555   : > { %v2213_v63 = vpop.f32.mrf.mxu1 }
 0x556   : > { %v2218_v58 = vsel %vm6005_vm6, %v2213_v63, 0.0 }
 0x557   : > { %v2219_v6 = vpack.c.bf16 %v2218_v58, %v2217_v34  ;;  %v5428_v28 = vpop.f32.mrf.mxu1 }
 0x559   : > { %5432 = vmatmul.mubr.msk.bf16.vlgmr.msra.gmra.mxu0 %vm390_vm0, %v2219_v6  ;;  %v6433_v9 = vpop.f32.mrf.mxu1 }
 0x55a   : > { %5442 = vmatpush3.bf16.msra.mxu0 %v2357_v33  ;;  %5443 = vmatprep.mubr.msk.bf16.mxu0 %vm5919_vm7, %v7138_v1 }
 0x55b   : > { %v5439_v18 = vpop.f32.mrf.mxu1  ;;  %5453 = vmatprep.subr.bf16.mxu0 %v7138_v1 }
 0x55d   : > { %v6438_v19 = vpop.f32.mrf.mxu1 }
 0x55f   : > { %v5440_v61 = vpop.f32.mrf.mxu1 }
 0x561   : > { %5444 = vmatmul.mubr.msk.bf16.vlgmr.msra.gmra.mxu0 %vm390_vm0, %v2348_v12  ;;  %v2460_v27 = vpop.f32.mrf.mxu1 }
 0x562   : > { %5454 = vmatpush3.bf16.msra.mxu0 %v6386_v51  ;;  %5455 = vmatprep.mubr.msk.bf16.mxu0 %vm5919_vm7, %v7138_v1  ;;  %v2467_v33 = vsel %vm5980_vm1, %v2460_v27, 0.0 }
 0x563   : > { %v5451_v26 = vpop.f32.mrf.mxu1  ;;  %5465 = vmatprep.subr.bf16.mxu0 %v7138_v1 }
 0x564   : > { %v6445_v29 = vpop.f32.mrf.mxu0 }
 0x565   : > { %v2463_v31 = vpop.f32.mrf.mxu1 }
 0x566   : > { %v5397_v30 = vpop.f32.mrf.mxu0  ;;  %v2468_v37 = vsel %vm6005_vm6, %v2463_v31, 0.0 }
 0x567   : > { %v2469_v38 = vpack.c.bf16 %v2468_v37, %v2467_v33  ;;  %v5452_v40 = vpop.f32.mrf.mxu1 }
 0x568   : > { %v1900_v44 = vpop.f32.mrf.mxu0 }
 0x569   : > { %5456 = vmatmul.mubr.msk.bf16.vlgmr.msra.gmra.mxu0 %vm390_vm0, %v2469_v38 }
 0x56a   : > { %5466 = vmatpush3.bf16.msra.mxu0 %v2607_v14  ;;  %5467 = vmatprep.mubr.msk.bf16.mxu0 %vm5919_vm7, %v7138_v1  ;;  %v5398_v51 = vpop.f32.mrf.mxu0 }
 0x56b   : > { %5478 = vmatprep.subr.bf16.mxu0 %v7138_v1 }
 0x571   : > { %5468 = vmatmul.mubr.msk.bf16.vlgmr.msra.gmra.mxu0 %vm390_vm0, %v2598_v46 }
 0x572   : > { %5480 = vmatprep.mubr.msk.bf16.mxu0 %vm5919_vm7, %v7138_v1 }
 0x5a6   : > { %v6458_v13 = vpop.f32.mrf.mxu0 }
 0x5a8   : > { %v5409_v35 = vpop.f32.mrf.mxu0 }
 0x5a9   : > { %v5124_v35 = vld [vmem:[%s6034_s28 + $0x10] sm:$0xff]  }
 0x5aa   : > { %v6460_v10 = vpop.f32.mrf.mxu0 }
 0x5ac   : > { %v5410_v25 = vpop.f32.mrf.mxu0 }
 0x5ad   : > { %v5103_v25 = vunpack.c.h.bf16 %v5124_v35 }
 0x5d8   : > { %v6462_v60 = vpop.f32.mrf.mxu1 }
 0x5d9   : > { %7144 = vst [vmem:[#allocation2_spill] sm:$0xff] %v6462_v60 }
 0x5da   : > { %v5463_v32 = vpop.f32.mrf.mxu1 }
 0x5db   : > { %v5102_v32 = vunpack.c.l.bf16 %v5124_v35 }
 0x5dc   : > { %v6464_v63 = vpop.f32.mrf.mxu1 }
 0x5dd   : > { %7145 = vst [vmem:[#allocation3_spill] sm:$0xff] %v6464_v63  ;;  %v7150_v63 = vmov 0.0  }
 0x5de   : > { %v5464_v34 = vpop.f32.mrf.mxu1 }
 0x5e0   : > { %v5477_v58 = vpop.f32.mrf.mxu1 }
 0x5e1   : > { %v2849_v6 = vsub.f32 0.0, %v5477_v58  ;;  %v2860_v28 = vrot.slane %v5477_v58, %v6027_v49  ;;  %v2843_v40 = vmul.f32 1.442695, %v5477_v58 }
 0x5e2   : > { %v2832_v14 = vpop.f32.mrf.mxu1 }
 0x5e3   : > { %v2852_v18 = vmul.f32 1.442695, %v2849_v6  ;;  %v2841_v12 = vmul.f32 1.442695, %v2832_v14  ;;  %v2848_v61 = vsub.f32 0.0, %v2832_v14  ;;  %v2146_v27 = vpop.f32.mrf.mxu0  ;;  %v2861_v26 = vsub.f32 %v2860_v28, %v2832_v14 }
 0x5e4   : > { %v2862_v31 = vsub.f32 %v2860_v28, %v5477_v58  ;;  %2157 = vrot.lane.b32.xlu1 %v2146_v27, %s5926_s11  ;;  %v6472_v6 = vrot.slane %v6238_v53, %v6027_v49  ;;  %v5123_v28 = vld [vmem:[%s6041_s5 + $0x10] sm:$0xff]  }
 0x5e5   : > { %5802 = vpow2.f32 %v2852_v18  ;;  %v2850_v33 = vmul.f32 1.442695, %v2848_v61  ;;  %v5421_v30 = vpop.f32.mrf.mxu0  ;;  %v2863_v37 = vmul.f32 1.442695, %v2861_v26  ;;  %v5098_v27 = vunpack.c.l.bf16 %v5123_v28 }
 0x5e6   : > { %5804 = vpow2.f32 %v2841_v12  ;;  %v2865_v38 = vmul.f32 1.442695, %v2862_v31  ;;  %v5099_v26 = vunpack.c.h.bf16 %v5123_v28  ;;  %v1908_v53 = vmul.f32 %v6472_v6, %v6249_v59 }
 0x5e7   : > { %5806 = vpow2.f32 %v2850_v33  ;;  %v2149_v51 = vpop.f32.mrf.mxu0  ;;  %v1909_v33 = vmul.f32 %v6472_v6, %v6242_v55 }
 0x5e8   : > { %5808 = vpow2.f32 %v2863_v37  ;;  %2159 = vrot.lane.b32.xlu1 %v2149_v51, %s5926_s11  ;;  %v6489_v55 = vadd.f32 %v1908_v53, %v6445_v29 }
 0x5e9   : > { %5810 = vpow2.f32 %v2865_v38  ;;  %v5422_v46 = vpop.f32.mrf.mxu0  ;;  %v6481_v51 = vadd.f32 %v1909_v33, %v1900_v44 }
 0x5ea   : > { %5812 = vpow2.f32 %v2843_v40 }
 0x5eb   : > { %v2870_v59 = vpack.c.bf16 %v6481_v51, %v6489_v55 }
 0x5f2   : > { %v5803_v34 = vpop.eup %5802 }
 0x5f3   : > { %v5805_v14 = vpop.eup %5804  ;;  %v2855_v18 = vmul.f32 %v5803_v34, %v5103_v25 }
 0x5f4   : > { %v5807_v58 = vpop.eup %5806  ;;  %v2845_v35 = vmul.f32 %v5805_v14, %v5098_v27 }
 0x5f5   : > { %v5809_v12 = vpop.eup %5808  ;;  %v2854_v61 = vmul.f32 %v5807_v58, %v5102_v32 }
 0x5f6   : > { %v5811_v31 = vpop.eup %5810  ;;  %v2867_v30 = vmul.f32 %v5809_v12, %v5102_v32 }
 0x5f7   : > { %v2856_v37 = vpack.c.bf16 %v2855_v18, %v2854_v61  ;;  %v2868_v38 = vmul.f32 %v5811_v31, %v5103_v25  ;;  %v6477_v40 = vpop.eup %5812  ;;  %v2972_v25 = vsel %vm501_vm8, %v2870_v59, 0  ;;  %v5752_v61 = vld [vmem:[%s5994_s25 + $0x10] sm:$0xff]  }
 0x5f8   : > { %v2846_v34 = vmul.f32 %v6477_v40, %v5099_v26  ;;  %5485 = vmatpush3.bf16.msra.mxu1 %v5752_v61 }
 0x5f9   : > { %v2875_v46 = vsel %vm501_vm8, %v2856_v37, 0  ;;  %3114 = vrot.lane.b32.xlu0 %v2856_v37, %s5921_s7  ;;  %v6486_v28 = vpack.c.bf16 %v2868_v38, %v2867_v30  ;;  %5496 = vmatprep.subr.bf16.mxu1 %v7138_v1 }
 0x5fa   : > { %5479 = vmatpush3.bf16.xpose.msra.mxu0 %v2875_v46  ;;  %v2847_v44 = vpack.c.bf16 %v2846_v34, %v2845_v35 }
 0x5fb   : > { %5490 = vmatprep.subr.bf16.mxu0 %v7138_v1 }
 0x5fd   : > { %3365 = vrot.lane.b32.xlu0 %v2856_v37, %s5920_s6 }
 0x601   : > { %5481 = vmatmul.mubr.msk.bf16.vlgmr.msra.gmra.mxu0 %vm501_vm8, %v2847_v44 }
 0x602   : > { %5491 = vmatpush3.bf16.xpose.msra.mxu0 %v2972_v25  ;;  %5492 = vmatprep.mubr.msk.bf16.mxu0 %vm5919_vm7, %v7138_v1  ;;  %v2153_v25 = vmul.f32 %v6472_v6, %v6310_v36 }
 0x603   : > { %5502 = vmatprep.subr.bf16.mxu0 %v7138_v1 }
 0x609   : > { %5493 = vmatmul.mubr.msk.bf16.vlgmr.msra.gmra.mxu0 %vm501_vm8, %v2847_v44 }
 0x60a   : > { %5504 = vmatprep.mubr.msk.bf16.mxu0 %vm5919_vm7, %v7138_v1 }
 0x619   : > { %v6503_v29 = vpop.f32.mrf.mxu0 }
 0x61b   : > { %v5433_v32 = vpop.f32.mrf.mxu0 }
 0x61c   : > { %v2154_v32 = vmul.f32 %v6472_v6, %v6313_v3 }
 0x61d   : > { %v6505_v14 = vpop.f32.mrf.mxu0 }
 0x61f   : > { %v5434_v18 = vpop.f32.mrf.mxu0 }
 0x621   : > { %v2396_v58 = vpop.f32.mrf.mxu0 }
 0x622   : > { %2407 = vrot.lane.b32.xlu1 %v2396_v58, %s5927_s12 }
 0x623   : > { %v5445_v12 = vpop.f32.mrf.mxu0 }
 0x625   : > { %v2399_v27 = vpop.f32.mrf.mxu0 }
 0x626   : > { %2409 = vrot.lane.b32.xlu1 %v2399_v27, %s5927_s12 }
 0x627   : > { %v5446_v26 = vpop.f32.mrf.mxu0 }
 0x629   : > { %v6511_v31 = vpop.f32.mrf.mxu0 }
 0x62a   : > { %7146 = vst [vmem:[#allocation4_spill] sm:$0xff] %v6511_v31 }
 0x62b   : > { %v5457_v33 = vpop.f32.mrf.mxu0 }
 0x62c   : > { %v2403_v33 = vmul.f32 %v6472_v6, %v6325_v16  ;;  %v2653_v16 = vmul.f32 %v6472_v6, %v6370_v48 }
 0x62d   : > { %v6513_v30 = vpop.f32.mrf.mxu0 }
 0x62e   : > { %7147 = vst [vmem:[#allocation5_spill] sm:$0xff] %v6513_v30 }
 0x62f   : > { %v5458_v38 = vpop.f32.mrf.mxu0 }
 0x630   : > { %v2404_v38 = vmul.f32 %v6472_v6, %v6328_v17  ;;  %v2654_v17 = vmul.f32 %v6472_v6, %v6373_v50 }
 0x631   : > { %v2646_v53 = vpop.f32.mrf.mxu0 }
 0x632   : > { %2657 = vrot.lane.b32.xlu1 %v2646_v53, %s5928_s13 }
 0x633   : > { %v5469_v46 = vpop.f32.mrf.mxu0 }
 0x635   : > { %v2649_v35 = vpop.f32.mrf.mxu0 }
 0x636   : > { %2659 = vrot.lane.b32.xlu1 %v2649_v35, %s5928_s13 }
 0x637   : > { %v5470_v34 = vpop.f32.mrf.mxu0 }
 0x63a   : > { %3111 = vrot.lane.b32.xlu1 %v2847_v44, %s5921_s7 }
 0x656   : > { %v2158_v59 = vpop.permute.xlu1 %2157 }
 0x657   : > { %v6522_v58 = vadd.f32 %v2158_v59, %v2153_v25 }
 0x65a   : > { %v2160_v18 = vpop.permute.xlu1 %2159 }
 0x65b   : > { %v6524_v12 = vadd.f32 %v2160_v18, %v2154_v32 }
 0x65d   : > { %v3109_v27 = vpack.c.bf16 %v6524_v12, %v6522_v58 }
 0x65f   : > { %3214 = vrot.lane.b32.xlu1 %v3109_v27, %s5921_s7 }
 0x663   : > { %3363 = vrot.lane.b32.xlu1 %v2847_v44, %s5920_s6 }
 0x667   : > { %3615 = vrot.lane.b32.xlu1 %v2856_v37, %s5923_s9 }
 0x66b   : > { %v3115_v26 = vpop.permute.xlu0 %3114 }
 0x66c   : > { %v3120_v36 = vsel %vm501_vm8, %v3115_v26, 0 }
 0x66d   : > { %5503 = vmatpush3.bf16.xpose.msra.mxu0 %v3120_v36 }
 0x66e   : > { %5514 = vmatprep.subr.bf16.mxu0 %v7138_v1 }
 0x694   : > { %v2408_v3 = vpop.permute.xlu1 %2407 }
 0x695   : > { %v6537_v46 = vadd.f32 %v2408_v3, %v2403_v33 }
 0x698   : > { %v2410_v53 = vpop.permute.xlu1 %2409 }
 0x699   : > { %v6539_v35 = vadd.f32 %v2410_v53, %v2404_v38 }
 0x69b   : > { %v3362_v37 = vpack.c.bf16 %v6539_v35, %v6537_v46 }
 0x69d   : > { %3465 = vrot.lane.b32.xlu0 %v3362_v37, %s5920_s6 }
 0x6a1   : > { %3613 = vrot.lane.b32.xlu0 %v2847_v44, %s5923_s9 }
 0x6a4   : > { %v2658_v34 = vpop.permute.xlu1 %2657 }
 0x6a5   : > { %3166 = vrot.lane.b32.xlu0 %v5752_v61, %s5920_s6  ;;  %v6550_v25 = vadd.f32 %v2658_v34, %v2653_v16  ;;  %v5128_v34 = vld [vmem:[%s5988_s22 + $0x18] sm:$0xff]   ;;  %s6925_s22 = scalar_lea.vmem %s7137_s4, %s5977_s19 }
 0x6a8   : > { %v2660_v59 = vpop.permute.xlu1 %2659 }
 0x6a9   : > { %v6552_v32 = vadd.f32 %v2660_v59, %v2654_v17  ;;  %3667 = vrot.lane.b32.xlu0 %v5752_v61, %s5924_s10  ;;  %v5119_v17 = vunpack.c.h.bf16 %v5128_v34  ;;  %v3366_v59 = vpop.permute.xlu0 %3365 }
 0x6ab   : > { %v3612_v18 = vpack.c.bf16 %v6552_v32, %v6550_v25 }
 0x6ac   : > { %v3112_v44 = vpop.permute.xlu1 %3111 }
 0x6ad   : > { %3715 = vrot.lane.b32.xlu1 %v3612_v18, %s5923_s9  ;;  %5505 = vmatmul.mubr.msk.bf16.vlgmr.msra.gmra.mxu0 %vm501_vm8, %v3112_v44  ;;  %v3922_v18 = vsub.f32 0.0, %v5119_v17 }
 0x6ae   : > { %5516 = vmatprep.mubr.msk.bf16.mxu0 %vm5919_vm7, %v7138_v1 }
 0x6af   : > { %vm3926_vm4 = vcmp.ne.f32.partialorder %v3922_v18, %v3922_v18 }
 0x6b1   : > { %3417 = vrot.lane.b32.xlu1 %v5752_v61, %s5922_s8 }
 0x6b5   : > { %3303 = vrot.lane.b32.xlu1 %v6486_v28, %s5921_s7 }
 0x6b9   : > { %3553 = vrot.lane.b32.xlu1 %v6486_v28, %s5920_s6 }
 0x6c1   : > { %v2911_v48 = vpop.f32.mrf.mxu0 }
 0x6c2   : > { %v2918_v6 = vsel %vm5980_vm1, %v2911_v48, 0.0  ;;  %v3371_v48 = vsel %vm501_vm8, %v3366_v59, 0 }
 0x6c3   : > { %v5482_v50 = vpop.f32.mrf.mxu0 }
 0x6c4   : > { %v5118_v50 = vunpack.c.l.bf16 %v5128_v34 }
 0x6c5   : > { %v2914_v27 = vpop.f32.mrf.mxu0 }
 0x6c6   : > { %v2919_v26 = vsel %vm6005_vm6, %v2914_v27, 0.0  ;;  %v3921_v27 = vsub.f32 0.0, %v5118_v50 }
 0x6c7   : > { %v2920_v36 = vpack.c.bf16 %v2919_v26, %v2918_v6  ;;  %3041 = vxpose.xlu0.c.b16.start.end [1/1] (short) (narrow) %v5752_v61, 16  ;;  %v5483_v3 = vpop.f32.mrf.mxu0 }
 0x6c8   : > { %v3929_v3 = vand.u32 2147483647, %v3921_v27  ;;  %vm3925_vm9 = vcmp.ne.f32.partialorder %v3921_v27, %v3921_v27 }
 0x6c9   : > { %5487 = vmatmul.mubr.msk.bf16.vlgmr.msra.gmra.mxu1 %vm390_vm0, %v2920_v36  ;;  %v6571_v33 = vpop.f32.mrf.mxu0 }
 0x6ca   : > { %7148 = vst [vmem:[#allocation6_spill] sm:$0xff] %v6571_v33  ;;  %5497 = vmatpush3.bf16.msra.mxu1 %v6486_v28  ;;  %5498 = vmatprep.mubr.msk.bf16.mxu1 %vm5919_vm7, %v7138_v1 }
 0x6cb   : > { %v5494_v38 = vpop.f32.mrf.mxu0  ;;  %5508 = vmatprep.subr.bf16.mxu1 %v7138_v1 }
 0x6cd   : > { %v6577_v53 = vpop.f32.mrf.mxu0 }
 0x6ce   : > { %7149 = vst [vmem:[#allocation7_spill] sm:$0xff] %v6577_v53 }
 0x6cf   : > { %v5495_v37 = vpop.f32.mrf.mxu0 }
 0x6d0   : > { %3803 = vrot.lane.b32.xlu0 %v6486_v28, %s5923_s9  ;;  %v3930_v28 = vand.u32 2147483647, %v3922_v18 }
 0x6d1   : > { %v3215_v61 = vpop.permute.xlu1 %3214 }
 0x6d2   : > { %v3217_v16 = vsel %vm501_vm8, %v3215_v61, 0  ;;  %v3932_v6 = vsub.f32 0.0, %v3930_v28 }
 0x6d3   : > { %5515 = vmatpush3.bf16.xpose.msra.mxu0 %v3217_v16 }
 0x6d4   : > { %5526 = vmatprep.subr.bf16.mxu0 %v7138_v1  ;;  %v3935_v36 = vmul.f32 1.442695, %v3932_v6 }
 0x6d5   : > { %v3364_v26 = vpop.permute.xlu1 %3363 }
 0x6d6   : > { %5814 = vpow2.f32 %v3935_v36 }
 0x6da   : > { %5517 = vmatmul.mubr.msk.bf16.vlgmr.msra.gmra.mxu0 %vm501_vm8, %v3112_v44  ;;  %v3931_v44 = vsub.f32 0.0, %v3929_v3 }
 0x6db   : > { %5527 = vmatpush3.bf16.xpose.msra.mxu0 %v3371_v48  ;;  %5528 = vmatprep.mubr.msk.bf16.mxu0 %vm5919_vm7, %v7138_v1 }
 0x6dc   : > { %5538 = vmatprep.subr.bf16.mxu0 %v7138_v1  ;;  %v3933_v38 = vmul.f32 1.442695, %v3931_v44 }
 0x6de   : > { %5816 = vpow2.f32 %v3933_v38 }
 0x6e2   : > { %5529 = vmatmul.mubr.msk.bf16.vlgmr.msra.gmra.mxu0 %vm501_vm8, %v3364_v26 }
 0x6e3   : > { %5540 = vmatprep.mubr.msk.bf16.mxu0 %vm5919_vm7, %v7138_v1  ;;  %v5815_v37 = vpop.eup %5814  ;;  %v3924_v1 = vmax.f32 %v3922_v18, 0.0 }
 0x6e4   : > { %v3946_v61 = vadd.f32 1.0, %v5815_v37  ;;  %v3949_v34 = vmul.f32 -0.5, %v5815_v37  ;;  %v3952_v28 = vand.u32 2147483647, %v5815_v37 }
 0x6e6   : > { %5818 = vlog2.f32 %v3946_v61  ;;  %v3950_v59 = vadd.f32 1.0, %v3949_v34  ;;  %vm3953_vm3 = vcmp.lt.f32.partialorder %v3952_v28, 0.0004427343  ;;  %v3923_v28 = vmax.f32 %v3921_v27, 0.0 }
 0x6e8   : > { %v3951_v53 = vmul.f32 %v5815_v37, %v3950_v59 }
 0x6eb   : > { %v5817_v16 = vpop.eup %5816 }
 0x6ec   : > { %v3937_v17 = vadd.f32 1.0, %v5817_v16  ;;  %v3940_v33 = vmul.f32 -0.5, %v5817_v16  ;;  %v3943_v61 = vand.u32 2147483647, %v5817_v16 }
 0x6ee   : > { %5820 = vlog2.f32 %v3937_v17  ;;  %v3941_v44 = vadd.f32 1.0, %v3940_v33  ;;  %vm3944_vm5 = vcmp.lt.f32.partialorder %v3943_v61, 0.0004427343 }
 0x6f0   : > { %v3942_v60 = vmul.f32 %v5817_v16, %v3941_v44 }
 0x6f3   : > { %v5819_v48 = vpop.eup %5818 }
 0x6f4   : > { %v3948_v50 = vmul.f32 0.6931472, %v5819_v48  ;;  %v3616_v48 = vpop.permute.xlu1 %3615 }
 0x6f5   : > { %v3621_v31 = vsel %vm501_vm8, %v3616_v48, 0 }
 0x6f6   : > { %v3954_v3 = vsel %vm3953_vm3, %v3951_v53, %v3948_v50 }
 0x6f7   : > { %v3956_v17 = vadd.f32 %v3954_v3, %v3924_v1 }
 0x6f9   : > { %v3958_v59 = vsel %vm3926_vm4, %v3922_v18, %v3956_v17 }
 0x6fa   : > { %v3960_v1 = vsub.f32 0.0, %v3958_v59 }
 0x6fb   : > { %v5821_v38 = vpop.eup %5820 }
 0x6fc   : > { %v3939_v34 = vmul.f32 0.6931472, %v5821_v38  ;;  %v3962_v18 = vmul.f32 0.0625, %v3960_v1  ;;  %v6635_v1 = vld [vmem:[%s5994_s25 + $0x18] sm:$0xff]  }
 0x6fe   : > { %v3945_v33 = vsel %vm3944_vm5, %v3942_v60, %v3939_v34 }
 0x6ff   : > { %v3955_v16 = vadd.f32 %v3945_v33, %v3923_v28 }
 0x70f   : > { %v3466_v6 = vpop.permute.xlu0 %3465 }
 0x710   : > { %v3468_v36 = vsel %vm501_vm8, %v3466_v6, 0  ;;  %v3957_v6 = vsel %vm3925_vm9, %v3921_v27, %v3955_v16 }
 0x711   : > { %5539 = vmatpush3.bf16.xpose.msra.mxu0 %v3468_v36  ;;  %v3959_v60 = vsub.f32 0.0, %v3957_v6 }
 0x712   : > { %5550 = vmatprep.subr.bf16.mxu0 %v7150_v63 }
 0x713   : > { %v3614_v30 = vpop.permute.xlu0 %3613  ;;  %v3961_v36 = vmul.f32 0.0625, %v3959_v60 }
 0x717   : > { %v3167_v37 = vpop.permute.xlu0 %3166 }
 0x718   : > { %5541 = vmatmul.mubr.msk.bf16.vlgmr.msra.gmra.mxu0 %vm501_vm8, %v3364_v26  ;;  %3286 = vxpose.xlu1.c.b16.start.end [1/1] (short) (narrow) %v3167_v37, 16 }
 0x719   : > { %5551 = vmatpush3.bf16.xpose.msra.mxu0 %v3621_v31  ;;  %5552 = vmatprep.mubr.msk.bf16.mxu0 %vm5919_vm7, %v7150_v63 }
 0x71a   : > { %5562 = vmatprep.subr.bf16.mxu0 %v7150_v63 }
 0x71b   : > { %v6599_v53 = vpop.permute.xlu0 %3667 }
 0x71c   : > { %3787 = vxpose.xlu1.c.b16.start.end [1/1] (short) (narrow) %v6599_v53, 16 }
 0x71f   : > { %v3716_v50 = vpop.permute.xlu1 %3715 }
 0x720   : > { %v3718_v26 = vsel %vm501_vm8, %v3716_v50, 0  ;;  %5553 = vmatmul.mubr.msk.bf16.vlgmr.msra.gmra.mxu0 %vm501_vm8, %v3614_v30 }
 0x721   : > { %5563 = vmatpush3.bf16.xpose.msra.mxu0 %v3718_v26  ;;  %5564 = vmatprep.mubr.msk.bf16.mxu0 %vm5919_vm7, %v7150_v63 }
 0x722   : > { %5574 = vmatprep.subr.mxu0 %v3962_v18 }
 0x723   : > { %v3418_v31 = vpop.permute.xlu1 %3417 }
 0x724   : > { %3537 = vxpose.xlu0.c.b16.start.end [1/1] (short) (narrow) %v3418_v31, 16 }
 0x727   : > { %v3304_v27 = vpop.permute.xlu1 %3303 }
 0x728   : > { %5565 = vmatmul.mubr.msk.bf16.vlgmr.msra.gmra.mxu0 %vm501_vm8, %v3614_v30 }
 0x729   : > { %v3049_v3 = vpop.trf.xlu0  ;;  %5575 = vmatpush3.msra.mxu0 %v3962_v18  ;;  %5578 = vmatprep.mubr.msk.f32.mxu0 %vm390_vm0, %v5999_v5 }
 0x72a   : > { %5499 = vmatmul.mubr.msk.bf16.vlgmr.msra.gmra.mxu1 %vm390_vm0, %v3049_v3  ;;  %5576 = vmatprep.subr.mxu0 %v3961_v36 }
 0x72b   : > { %5509 = vmatpush3.bf16.msra.mxu1 %v3167_v37  ;;  %5577 = vmatpush3.msra.mxu0 %v3961_v36  ;;  %v3554_v48 = vpop.permute.xlu1 %3553 }
 0x72c   : > { %5510 = vmatprep.mubr.msk.bf16.mxu1 %vm5919_vm7, %v7150_v63  ;;  %5520 = vmatprep.subr.bf16.mxu1 %v7150_v63 }
 0x72d   : > { %5587 = vmatprep.subr.bf16.mxu0 %v7150_v63 }
 0x730   : > { %5579 = vmatmul.mubr.msk.f32.vlgmr.msra.gmra.mxu0 %vm390_vm0, %v6012_v47 }
 0x731   : > { %5589 = vmatprep.mubr.msk.bf16.mxu0 %vm5919_vm7, %v7150_v63  ;;  %5588 = vmatpush3.bf16.msra.mxu0 %v6635_v1 }
 0x732   : > { %5599 = vmatprep.subr.bf16.mxu0 %v7150_v63 }
 0x76d   : > { %v3156_v30 = vpop.f32.mrf.mxu0 }
 0x76e   : > { %v3163_v38 = vsel %vm5980_vm1, %v3156_v30, 0.0 }
 0x76f   : > { %v5506_v5 = vpop.f32.mrf.mxu0 }
 0x771   : > { %v3159_v44 = vpop.f32.mrf.mxu0 }
 0x772   : > { %v3164_v61 = vsel %vm6005_vm6, %v3159_v44, 0.0 }
 0x773   : > { %v3165_v17 = vpack.c.bf16 %v3164_v61, %v3163_v38  ;;  %v5507_v34 = vpop.f32.mrf.mxu0 }
 0x775   : > { %5511 = vmatmul.mubr.msk.bf16.vlgmr.msra.gmra.mxu1 %vm390_vm0, %v3165_v17 }
 0x776   : > { %5521 = vmatpush3.bf16.msra.mxu1 %v3304_v27  ;;  %5522 = vmatprep.mubr.msk.bf16.mxu1 %vm5919_vm7, %v7150_v63  ;;  %v3804_v27 = vpop.permute.xlu0 %3803 }
 0x777   : > { %5532 = vmatprep.subr.bf16.mxu1 %v7150_v63 }
 0x77a   : > { %v3294_v47 = vpop.trf.xlu1 }
 0x77d   : > { %5523 = vmatmul.mubr.msk.bf16.vlgmr.msra.gmra.mxu1 %vm390_vm0, %v3294_v47 }
 0x77e   : > { %5533 = vmatpush3.bf16.msra.mxu1 %v3418_v31  ;;  %5534 = vmatprep.mubr.msk.bf16.mxu1 %vm5919_vm7, %v7150_v63 }
 0x77f   : > { %5544 = vmatprep.subr.bf16.mxu1 %v7150_v63 }
 0x786   : > { %v3545_v44 = vpop.trf.xlu0 }
 0x789   : > { %v6630_v37 = vpop.f32.mrf.mxu1 }
 0x78b   : > { %v5488_v59 = vpop.f32.mrf.mxu1 }
 0x78d   : > { %v6632_v28 = vpop.f32.mrf.mxu1 }
 0x78f   : > { %v5489_v33 = vpop.f32.mrf.mxu1 }
 0x79a   : > { %v6639_v16 = vpop.f32.mrf.mxu0 }
 0x79c   : > { %v5518_v18 = vpop.f32.mrf.mxu0 }
 0x79e   : > { %v6641_v50 = vpop.f32.mrf.mxu0 }
 0x79f   : > { %7151 = vst [vmem:[#allocation8_spill] sm:$0xff] %v6641_v50 }
 0x7a0   : > { %v5519_v6 = vpop.f32.mrf.mxu0 }
 0x7a2   : > { %v3407_v26 = vpop.f32.mrf.mxu0 }
 0x7a3   : > { %v3414_v36 = vsel %vm5980_vm1, %v3407_v26, 0.0 }
 0x7a4   : > { %v5530_v60 = vpop.f32.mrf.mxu0 }
 0x7a6   : > { %v3410_v31 = vpop.f32.mrf.mxu0 }
 0x7a7   : > { %v3415_v3 = vsel %vm6005_vm6, %v3410_v31, 0.0 }
 0x7a8   : > { %v3416_v30 = vpack.c.bf16 %v3415_v3, %v3414_v36  ;;  %v5531_v5 = vpop.f32.mrf.mxu0 }
 0x7aa   : > { %5535 = vmatmul.mubr.msk.bf16.vlgmr.msra.gmra.mxu1 %vm390_vm0, %v3416_v30  ;;  %v3795_v30 = vpop.trf.xlu1 }
 0x7ab   : > { %5545 = vmatpush3.bf16.msra.mxu1 %v3554_v48  ;;  %5546 = vmatprep.mubr.msk.bf16.mxu1 %vm5919_vm7, %v7150_v63 }
 0x7ac   : > { %5556 = vmatprep.subr.bf16.mxu1 %v7150_v63 }
 0x7b2   : > { %5547 = vmatmul.mubr.msk.bf16.vlgmr.msra.gmra.mxu1 %vm390_vm0, %v3545_v44 }
 0x7b3   : > { %5557 = vmatpush3.bf16.msra.mxu1 %v6599_v53  ;;  %5558 = vmatprep.mubr.msk.bf16.mxu1 %vm5919_vm7, %v7150_v63 }
 0x7b4   : > { %5568 = vmatprep.subr.bf16.mxu1 %v7150_v63 }
 0x7d8   : > { %v6656_v38 = vpop.f32.mrf.mxu0 }
 0x7d9   : > { %7152 = vst [vmem:[#allocation9_spill] sm:$0xff] %v6656_v38 }
 0x7da   : > { %v5542_v61 = vpop.f32.mrf.mxu0 }
 0x7dc   : > { %v6658_v17 = vpop.f32.mrf.mxu0 }
 0x7dd   : > { %7153 = vst [vmem:[#allocation10_spill] sm:$0xff] %v6658_v17 }
 0x7de   : > { %v5543_v34 = vpop.f32.mrf.mxu0 }
 0x7e0   : > { %v3657_v48 = vpop.f32.mrf.mxu0 }
 0x7e1   : > { %v3664_v33 = vsel %vm5980_vm1, %v3657_v48, 0.0 }
 0x7e2   : > { %v5554_v47 = vpop.f32.mrf.mxu0 }
 0x7e4   : > { %v3660_v59 = vpop.f32.mrf.mxu0 }
 0x7e5   : > { %v3665_v53 = vsel %vm6005_vm6, %v3660_v59, 0.0 }
 0x7e6   : > { %v3666_v18 = vpack.c.bf16 %v3665_v53, %v3664_v33  ;;  %v5555_v6 = vpop.f32.mrf.mxu0 }
 0x7e7   : > { %v5127_v6 = vld [vmem:[%s6034_s28 + $0x18] sm:$0xff]  }
 0x7e8   : > { %5559 = vmatmul.mubr.msk.bf16.vlgmr.msra.gmra.mxu1 %vm390_vm0, %v3666_v18  ;;  %v6665_v26 = vpop.f32.mrf.mxu0 }
 0x7e9   : > { %7154 = vst [vmem:[#allocation11_spill] sm:$0xff] %v6665_v26  ;;  %5569 = vmatpush3.bf16.msra.mxu1 %v3804_v27  ;;  %5570 = vmatprep.mubr.msk.bf16.mxu1 %vm5919_vm7, %v7150_v63 }
 0x7ea   : > { %v3094_v60 = vpop.f32.mrf.mxu1  ;;  %v5566_v31 = vpop.f32.mrf.mxu0  ;;  %5581 = vmatprep.subr.bf16.mxu1 %v7150_v63 }
 0x7eb   : > { %v5115_v31 = vunpack.c.h.bf16 %v5127_v6 }
 0x7ec   : > { %v5500_v36 = vpop.f32.mrf.mxu1  ;;  %v6670_v3 = vpop.f32.mrf.mxu0 }
 0x7ed   : > { %7155 = vst [vmem:[#allocation12_spill] sm:$0xff] %v6670_v3  ;;  %v5126_v36 = vld [vmem:[%s6041_s5 + $0x18] sm:$0xff]  }
 0x7ee   : > { %v3097_v5 = vpop.f32.mrf.mxu1  ;;  %v5567_v44 = vpop.f32.mrf.mxu0  ;;  %v5111_v17 = vunpack.c.h.bf16 %v5126_v36 }
 0x7ef   : > { %v5114_v44 = vunpack.c.l.bf16 %v5127_v6 }
 0x7f0   : > { %v5580_v61 = vpop.f32.mrf.mxu0  ;;  %5571 = vmatmul.mubr.msk.bf16.vlgmr.msra.gmra.mxu1 %vm390_vm0, %v3795_v30  ;;  %v5501_v34 = vpop.f32.mrf.mxu1 }
 0x7f1   : > { %v4040_v27 = vmul.f32 1.442695, %v5580_v61  ;;  %v4046_v48 = vsub.f32 0.0, %v5580_v61  ;;  %5583 = vmatprep.mubr.msk.bf16.mxu1 %vm5919_vm7, %v7150_v63  ;;  %v6679_v61 = vrot.slane %v6477_v40, %v6027_v49 }
 0x7f2   : > { %v4029_v47 = vpop.f32.mrf.mxu0 }
 0x7f3   : > { %v4049_v59 = vmul.f32 1.442695, %v4046_v48  ;;  %v4038_v33 = vmul.f32 1.442695, %v4029_v47  ;;  %v4045_v53 = vsub.f32 0.0, %v4029_v47  ;;  %5822 = vpow2.f32 %v4040_v27 }
 0x7f4   : > { %v5110_v48 = vunpack.c.l.bf16 %v5126_v36  ;;  %v3105_v6 = vmul.f32 %v6679_v61, %v6489_v55 }
 0x7f5   : > { %5824 = vpow2.f32 %v4049_v59  ;;  %v4047_v18 = vmul.f32 1.442695, %v4045_v53  ;;  %v3106_v59 = vmul.f32 %v6679_v61, %v6481_v51 }
 0x7f6   : > { %5826 = vpow2.f32 %v4038_v33  ;;  %v3107_v49 = vadd.f32 %v3105_v6, %v3094_v60 }
 0x7f7   : > { %5828 = vpow2.f32 %v4047_v18  ;;  %v3108_v38 = vadd.f32 %v3106_v59, %v3097_v5 }
 0x800   : > { %v5823_v30 = vpop.eup %5822 }
 0x801   : > { %v4043_v18 = vmul.f32 %v5823_v30, %v5111_v17 }
 0x802   : > { %v5825_v34 = vpop.eup %5824 }
 0x803   : > { %v5827_v3 = vpop.eup %5826  ;;  %v4052_v26 = vmul.f32 %v5825_v34, %v5115_v31  ;;  %v4054_v31 = vpack.c.bf16 %v3108_v38, %v3107_v49 }
 0x804   : > { %v5829_v47 = vpop.eup %5828  ;;  %v4042_v53 = vmul.f32 %v5827_v3, %v5110_v48 }
 0x805   : > { %v4051_v27 = vmul.f32 %v5829_v47, %v5114_v44  ;;  %v4156_v51 = vsel %vm501_vm8, %v4054_v31, 0  ;;  %v646_v44 = vsel %vm390_vm0, %v6159_v39, 0.0 }
 0x806   : > { %v4044_v40 = vpack.c.bf16 %v4043_v18, %v4042_v53 }
 0x807   : > { %v4053_v33 = vpack.c.bf16 %v4052_v26, %v4051_v27 }
 0x809   : > { %v4059_v50 = vsel %vm501_vm8, %v4053_v33, 0  ;;  %4230 = vrot.lane.b32.xlu1 %v4053_v33, %s5921_s7 }
 0x80a   : > { %5582 = vmatpush3.bf16.xpose.msra.mxu1 %v4059_v50 }
 0x80b   : > { %5593 = vmatprep.subr.bf16.mxu1 %v7150_v63 }
 0x80d   : > { %4227 = vrot.lane.b32.xlu1 %v4044_v40, %s5921_s7 }
 0x811   : > { %5584 = vmatmul.mubr.msk.bf16.vlgmr.msra.gmra.mxu1 %vm501_vm8, %v4044_v40  ;;  %4282 = vrot.lane.b32.xlu1 %v6635_v1, %s5920_s6 }
 0x812   : > { %5594 = vmatpush3.bf16.xpose.msra.mxu1 %v4156_v51  ;;  %5595 = vmatprep.mubr.msk.bf16.mxu1 %vm5919_vm7, %v7150_v63 }
 0x813   : > { %5605 = vmatprep.subr.bf16.mxu1 %v7150_v63 }
 0x815   : > { %4405 = vrot.lane.b32.xlu1 %v4053_v33, %s5920_s6 }
 0x819   : > { %5596 = vmatmul.mubr.msk.bf16.vlgmr.msra.gmra.mxu1 %vm501_vm8, %v4044_v40  ;;  %4403 = vrot.lane.b32.xlu1 %v4044_v40, %s5920_s6 }
 0x81a   : > { %5607 = vmatprep.mubr.msk.bf16.mxu1 %vm5919_vm7, %v7150_v63 }
 0x835   : > { %v6701_v55 = vpop.f32.mrf.mxu1 }
 0x837   : > { %v5512_v50 = vpop.f32.mrf.mxu1 }
 0x839   : > { %v6703_v38 = vpop.f32.mrf.mxu1 }
 0x83b   : > { %v5513_v17 = vpop.f32.mrf.mxu1 }
 0x83d   : > { %v3343_v26 = vpop.f32.mrf.mxu1 }
 0x83e   : > { %3354 = vrot.lane.b32.xlu1 %v3343_v26, %s5926_s11 }
 0x83f   : > { %v5524_v60 = vpop.f32.mrf.mxu1 }
 0x841   : > { %v3346_v3 = vpop.f32.mrf.mxu1 }
 0x842   : > { %3356 = vrot.lane.b32.xlu1 %v3346_v3, %s5926_s11 }
 0x843   : > { %v5525_v5 = vpop.f32.mrf.mxu1 }
 0x846   : > { %4457 = vrot.lane.b32.xlu1 %v6635_v1, %s5922_s8 }
 0x84a   : > { %4580 = vrot.lane.b32.xlu1 %v4053_v33, %s5923_s9 }
 0x86a   : > { %v6710_v36 = vpop.f32.mrf.mxu1 }
 0x86c   : > { %v5536_v30 = vpop.f32.mrf.mxu1 }
 0x86d   : > { %v3350_v30 = vmul.f32 %v6679_v61, %v6522_v58 }
 0x86e   : > { %v6714_v34 = vpop.f32.mrf.mxu1  ;;  %647 = vadd.xlane.f32.xlu1 %v646_v44  ;;  %v3351_v44 = vmul.f32 %v6679_v61, %v6524_v12 }
 0x870   : > { %v5537_v48 = vpop.f32.mrf.mxu1 }
 0x872   : > { %v3593_v47 = vpop.f32.mrf.mxu1 }
 0x874   : > { %v5548_v27 = vpop.f32.mrf.mxu1 }
 0x876   : > { %v3596_v59 = vpop.f32.mrf.mxu1 }
 0x878   : > { %v5549_v53 = vpop.f32.mrf.mxu1 }
 0x87b   : > { %v4231_v18 = vpop.permute.xlu1 %4230 }
 0x87f   : > { %v4228_v6 = vpop.permute.xlu1 %4227 }
 0x883   : > { %v4283_v49 = vpop.permute.xlu1 %4282 }
 0x884   : > { %5606 = vmatpush3.bf16.msra.mxu1 %v4283_v49 }
 0x885   : > { %5617 = vmatprep.subr.bf16.mxu1 %v7150_v63 }
 0x887   : > { %v6717_v33 = vpop.permute.xlu1 %4405 }
 0x88b   : > { %v6721_v50 = vpop.permute.xlu1 %4403 }
 0x8a8   : > { %v6719_v31 = vpop.f32.mrf.mxu1 }
 0x8a9   : > { %7156 = vst [vmem:[#allocation13_spill] sm:$0xff] %v6719_v31 }
 0x8aa   : > { %v5560_v51 = vpop.f32.mrf.mxu1 }
 0x8ac   : > { %v6723_v17 = vpop.f32.mrf.mxu1 }
 0x8ae   : > { %v5561_v26 = vpop.f32.mrf.mxu1 }
 0x8b0   : > { %v3355_v60 = vpop.permute.xlu1 %3354  ;;  %v6725_v3 = vpop.f32.mrf.mxu1 }
 0x8b1   : > { %v3360_v53 = vadd.f32 %v3355_v60, %v3350_v30 }
 0x8b2   : > { %v5572_v5 = vpop.f32.mrf.mxu1 }
 0x8b4   : > { %v3357_v48 = vpop.permute.xlu1 %3356  ;;  %v6731_v27 = vpop.f32.mrf.mxu1 }
 0x8b5   : > { %v3361_v49 = vadd.f32 %v3357_v48, %v3351_v44  ;;  %v4236_v48 = vsel %vm501_vm8, %v4231_v18, 0  ;;  %v649_v18 = vsel %vm390_vm0, %v6161_v42, 0.0 }
 0x8b6   : > { %v5573_v51 = vpop.f32.mrf.mxu1 }
 0x8b7   : > { %v4225_v31 = vpack.c.bf16 %v3361_v49, %v3360_v53 }
 0x8b8   : > { %v4458_v53 = vpop.permute.xlu1 %4457 }
 0x8b9   : > { %4330 = vrot.lane.b32.xlu0 %v4225_v31, %s5921_s7 }
 0x8bc   : > { %v6755_v49 = vpop.permute.xlu1 %4580 }
 0x8bd   : > { %4578 = vrot.lane.b32.xlu0 %v4044_v40, %s5923_s9 }
 0x8c1   : > { %3604 = vrot.lane.b32.xlu0 %v3593_v47, %s5927_s12 }
 0x8c5   : > { %3606 = vrot.lane.b32.xlu0 %v3596_v59, %s5927_s12 }
 0x8d1   : > { %v4095_v26 = vpop.f32.mrf.mxu1 }
 0x8d2   : > { %v4102_v12 = vsel %vm5980_vm1, %v4095_v26, 0.0 }
 0x8d3   : > { %v5585_v58 = vpop.f32.mrf.mxu1 }
 0x8d5   : > { %v4098_v5 = vpop.f32.mrf.mxu1 }
 0x8d6   : > { %v4103_v60 = vsel %vm6005_vm6, %v4098_v5, 0.0 }
 0x8d7   : > { %v4104_v30 = vpack.c.bf16 %v4103_v60, %v4102_v12  ;;  %v5586_v44 = vpop.f32.mrf.mxu1 }
 0x8d9   : > { %5590 = vmatmul.mubr.msk.bf16.vlgmr.msra.gmra.mxu0 %vm390_vm0, %v4104_v30  ;;  %v6743_v40 = vpop.f32.mrf.mxu1 }
 0x8da   : > { %5600 = vmatpush3.bf16.xpose.msra.mxu0 %v4236_v48  ;;  %5601 = vmatprep.mubr.msk.bf16.mxu0 %vm5919_vm7, %v7150_v63  ;;  %v3600_v48 = vmul.f32 %v6679_v61, %v6537_v46 }
 0x8db   : > { %v5597_v47 = vpop.f32.mrf.mxu1  ;;  %5611 = vmatprep.subr.bf16.mxu0 %v7150_v63 }
 0x8dd   : > { %v6748_v59 = vpop.f32.mrf.mxu1 }
 0x8de   : > { %7157 = vst [vmem:[#allocation14_spill] sm:$0xff] %v6748_v59 }
 0x8df   : > { %v5598_v31 = vpop.f32.mrf.mxu1 }
 0x8e0   : > { %v3601_v31 = vmul.f32 %v6679_v61, %v6539_v35 }
 0x8e1   : > { %5602 = vmatmul.mubr.msk.bf16.vlgmr.msra.gmra.mxu0 %vm501_vm8, %v4228_v6 }
 0x8e2   : > { %5613 = vmatprep.mubr.msk.bf16.mxu0 %vm5919_vm7, %v7150_v63 }
 0x8e4   : > { %650 = vadd.xlane.f32.xlu0 %v649_v18 }
 0x8f7   : > { %v648_v51 = vpop.xlane.xlu1 %647 }
 0x8f8   : > { %v653_v26 = vmul.f32 0.0625, %v648_v51 }
 0x8fa   : > { %v6758_v58 = vsub.f32 %v6159_v39, %v653_v26 }
 0x8fc   : > { %v657_v12 = vmul.f32 %v6758_v58, %v6758_v58 }
 0x8fe   : > { %v659_v5 = vsel %vm390_vm0, %v657_v12, 0.0 }
 0x8ff   : > { %660 = vadd.xlane.f32.xlu1 %v659_v5 }
 0x92b   : > { %v4331_v60 = vpop.permute.xlu0 %4330 }
 0x92c   : > { %v4333_v30 = vsel %vm501_vm8, %v4331_v60, 0  ;;  %v881_v60 = vadd.f32 %v6174_v57, %v6273_v2 }
 0x92d   : > { %5612 = vmatpush3.bf16.xpose.msra.mxu0 %v4333_v30 }
 0x92e   : > { %5623 = vmatprep.subr.bf16.mxu0 %v7150_v63 }
 0x92f   : > { %v6765_v44 = vpop.permute.xlu0 %4578 }
 0x933   : > { %v3605_v47 = vpop.permute.xlu0 %3604 }
 0x934   : > { %v6769_v39 = vadd.f32 %v3605_v47, %v3600_v48  ;;  %5614 = vmatmul.mubr.msk.bf16.vlgmr.msra.gmra.mxu0 %vm501_vm8, %v4228_v6  ;;  %v887_v48 = vsel %vm390_vm0, %v881_v60, 0.0 }
 0x935   : > { %5624 = vmatpush3.bf16.msra.mxu0 %v4458_v53  ;;  %5625 = vmatprep.mubr.msk.bf16.mxu0 %vm5919_vm7, %v7150_v63  ;;  %v878_v53 = vadd.f32 %v6168_v54, %v6271_v62 }
 0x936   : > { %5635 = vmatprep.subr.bf16.mxu0 %v7150_v63 }
 0x937   : > { %v3607_v18 = vpop.permute.xlu0 %3606  ;;  %v884_v30 = vsel %vm390_vm0, %v878_v53, 0.0 }
 0x938   : > { %v6777_v51 = vadd.f32 %v3607_v18, %v3601_v31 }
 0x96d   : > { %v651_v26 = vpop.xlane.xlu0 %650 }
 0x96e   : > { %v654_v12 = vmul.f32 0.0625, %v651_v26 }
 0x970   : > { %v6782_v5 = vsub.f32 %v6161_v42, %v654_v12 }
 0x972   : > { %v658_v6 = vmul.f32 %v6782_v5, %v6782_v5 }
 0x974   : > { %v662_v35 = vsel %vm390_vm0, %v658_v6, 0.0 }
 0x975   : > { %663 = vadd.xlane.f32.xlu1 %v662_v35  ;;  %v4411_v35 = vsel %vm501_vm8, %v6717_v33, 0 }
 0x979   : > { %885 = vadd.xlane.f32.xlu1 %v884_v30 }
 0x97d   : > { %888 = vadd.xlane.f32.xlu1 %v887_v48 }
 0x988   : > { %v6815_v33 = vpop.xlane.xlu1 %660 }
 0x999   : > { %v6793_v42 = vpop.f32.mrf.mxu0 }
 0x99b   : > { %v5591_v47 = vpop.f32.mrf.mxu0 }
 0x99d   : > { %v6795_v31 = vpop.f32.mrf.mxu0 }
 0x99f   : > { %v5592_v18 = vpop.f32.mrf.mxu0 }
 0x9a1   : > { %v4272_v26 = vpop.f32.mrf.mxu0 }
 0x9a2   : > { %v4279_v12 = vsel %vm5980_vm1, %v4272_v26, 0.0 }
 0x9a3   : > { %v5603_v54 = vpop.f32.mrf.mxu0 }
 0x9a5   : > { %v4275_v62 = vpop.f32.mrf.mxu0 }
 0x9a6   : > { %v4280_v57 = vsel %vm6005_vm6, %v4275_v62, 0.0 }
 0x9a7   : > { %v4281_v2 = vpack.c.bf16 %v4280_v57, %v4279_v12  ;;  %v5604_v6 = vpop.f32.mrf.mxu0 }
 0x9a9   : > { %5608 = vmatmul.mubr.msk.bf16.vlgmr.msra.gmra.mxu1 %vm390_vm0, %v4281_v2 }
 0x9aa   : > { %5618 = vmatpush3.bf16.xpose.msra.mxu1 %v4411_v35  ;;  %5619 = vmatprep.mubr.msk.bf16.mxu1 %vm5919_vm7, %v7150_v63 }
 0x9ab   : > { %5629 = vmatprep.subr.bf16.mxu1 %v7150_v63 }
 0x9b1   : > { %5620 = vmatmul.mubr.msk.bf16.vlgmr.msra.gmra.mxu1 %vm501_vm8, %v6721_v50 }
 0x9b2   : > { %5631 = vmatprep.mubr.msk.bf16.mxu1 %vm5919_vm7, %v7150_v63 }
 0x9f4   : > { %v6811_v30 = vpop.f32.mrf.mxu0 }
 0x9f6   : > { %v5615_v48 = vpop.f32.mrf.mxu0 }
 0x9f7   : > { %v1123_v48 = vadd.f32 %v6191_v8, %v6281_v15 }
 0x9f8   : > { %v6813_v47 = vpop.f32.mrf.mxu0 }
 0x9f9   : > { %7158 = vst [vmem:[#allocation15_spill] sm:$0xff] %v6813_v47 }
 0x9fa   : > { %v5616_v18 = vpop.f32.mrf.mxu0 }
 0x9fb   : > { %v1129_v18 = vsel %vm390_vm0, %v1123_v48, 0.0 }
 0x9fe   : > { %v6817_v26 = vpop.xlane.xlu1 %663 }
 0xa02   : > { %v886_v54 = vpop.xlane.xlu1 %885 }
 0xa03   : > { %v890_v62 = vmul.f32 0.0625, %v886_v54 }
 0xa05   : > { %v892_v12 = vsub.f32 %v878_v53, %v890_v62  ;;  %v1120_v53 = vadd.f32 %v6186_v7, %v6277_v11  ;;  %v4586_v11 = vsel %vm501_vm8, %v6755_v49, 0  ;;  %v3850_v49 = vmul.f32 %v6679_v61, %v6550_v25 }
 0xa06   : > { %v889_v57 = vpop.xlane.xlu1 %888  ;;  %v1364_v25 = vadd.f32 %v6209_v20, %v6289_v24 }
 0xa07   : > { %v891_v2 = vmul.f32 0.0625, %v889_v57  ;;  %v894_v6 = vmul.f32 %v892_v12, %v892_v12 }
 0xa09   : > { %v893_v35 = vsub.f32 %v881_v60, %v891_v2  ;;  %v896_v46 = vsel %vm390_vm0, %v894_v6, 0.0 }
 0xa0a   : > { %897 = vadd.xlane.f32.xlu0 %v896_v46  ;;  %v1126_v46 = vsel %vm390_vm0, %v1120_v53, 0.0 }
 0xa0b   : > { %v895_v59 = vmul.f32 %v893_v35, %v893_v35 }
 0xa0d   : > { %v899_v47 = vsel %vm390_vm0, %v895_v59, 0.0 }
 0xa0e   : > { %900 = vadd.xlane.f32.xlu1 %v899_v47 }
 0xa12   : > { %1130 = vadd.xlane.f32.xlu1 %v1129_v18 }
 0xa20   : > { %3854 = vrot.lane.b32.xlu0 %v6725_v3, %s5928_s13 }
 0xa24   : > { %3856 = vrot.lane.b32.xlu0 %v6731_v27, %s5928_s13 }
 0xa43   : > { %1127 = vadd.xlane.f32.xlu0 %v1126_v46 }
 0xa69   : > { %v6831_v60 = vpop.f32.mrf.mxu1 }
 0xa6b   : > { %v5609_v8 = vpop.f32.mrf.mxu1 }
 0xa6d   : > { %v6833_v15 = vpop.f32.mrf.mxu1 }
 0xa6e   : > { %7159 = vst [vmem:[#allocation16_spill] sm:$0xff] %v6833_v15 }
 0xa6f   : > { %v5610_v59 = vpop.f32.mrf.mxu1 }
 0xa71   : > { %v4447_v47 = vpop.f32.mrf.mxu1 }
 0xa72   : > { %v4454_v3 = vsel %vm5980_vm1, %v4447_v47, 0.0 }
 0xa73   : > { %v5621_v54 = vpop.f32.mrf.mxu1 }
 0xa75   : > { %v4450_v62 = vpop.f32.mrf.mxu1 }
 0xa76   : > { %v4455_v27 = vsel %vm6005_vm6, %v4450_v62, 0.0  ;;  %v3851_v62 = vmul.f32 %v6679_v61, %v6552_v32 }
 0xa77   : > { %v4456_v57 = vpack.c.bf16 %v4455_v27, %v4454_v3  ;;  %v5622_v7 = vpop.f32.mrf.mxu1 }
 0xa79   : > { %5626 = vmatmul.mubr.msk.bf16.vlgmr.msra.gmra.mxu0 %vm390_vm0, %v4456_v57 }
 0xa7a   : > { %5636 = vmatpush3.bf16.xpose.msra.mxu0 %v4586_v11  ;;  %5637 = vmatprep.mubr.msk.bf16.mxu0 %vm5919_vm7, %v7150_v63 }
 0xa7b   : > { %5647 = vmatprep.subr.bf16.mxu0 %v7150_v63 }
 0xa81   : > { %5638 = vmatmul.mubr.msk.bf16.vlgmr.msra.gmra.mxu0 %vm501_vm8, %v6765_v44 }
 0xa82   : > { %5649 = vmatprep.mubr.msk.bf16.mxu0 %vm5919_vm7, %v7150_v63 }
 0xa93   : > { %v898_v2 = vpop.xlane.xlu0 %897 }
 0xa94   : > { %v902_v6 = vmul.f32 0.0625, %v898_v2 }
 0xa96   : > { %v904_v18 = vadd.f32 1e-05, %v902_v6 }
 0xa97   : > { %v3855_v46 = vpop.permute.xlu0 %3854  ;;  %v901_v8 = vpop.xlane.xlu1 %900 }
 0xa98   : > { %v3860_v59 = vadd.f32 %v3855_v46, %v3850_v49  ;;  %v903_v47 = vmul.f32 0.0625, %v901_v8  ;;  %5830 = vrsqrt.f32 %v904_v18  ;;  %v1370_v18 = vsel %vm390_vm0, %v1364_v25, 0.0 }
 0xa9a   : > { %v905_v54 = vadd.f32 1e-05, %v903_v47 }
 0xa9b   : > { %v3857_v3 = vpop.permute.xlu0 %3856  ;;  %v1131_v27 = vpop.xlane.xlu1 %1130 }
 0xa9c   : > { %5832 = vrsqrt.f32 %v905_v54  ;;  %v3861_v57 = vadd.f32 %v3857_v3, %v3851_v62  ;;  %v1133_v7 = vmul.f32 0.0625, %v1131_v27 }
 0xa9e   : > { %v4577_v11 = vpack.c.bf16 %v3861_v57, %v3860_v59  ;;  %v1135_v2 = vsub.f32 %v1123_v48, %v1133_v7  ;;  %v1361_v48 = vadd.f32 %v6204_v0, %v6285_v21 }
 0xaa0   : > { %v1137_v6 = vmul.f32 %v1135_v2, %v1135_v2  ;;  %v1367_v24 = vsel %vm390_vm0, %v1361_v48, 0.0 }
 0xaa2   : > { %v1141_v15 = vsel %vm390_vm0, %v1137_v6, 0.0 }
 0xaa3   : > { %1142 = vadd.xlane.f32.xlu1 %v1141_v15 }
 0xaa5   : > { %v5831_v49 = vpop.eup %5830 }
 0xaa6   : > { %v908_v32 = vmul.f32 %v5831_v49, %v892_v12 }
 0xaa7   : > { %1371 = vadd.xlane.f32.xlu1 %v1370_v18 }
 0xaa9   : > { %v5833_v46 = vpop.eup %5832 }
 0xaaa   : > { %v909_v61 = vmul.f32 %v5833_v46, %v893_v35 }
 0xaac   : > { %v5690_v8 = vpack.i.bf16 %v909_v61, %v908_v32 }
 0xacc   : > { %v1128_v47 = vpop.xlane.xlu0 %1127 }
 0xacd   : > { %v1132_v54 = vmul.f32 0.0625, %v1128_v47  ;;  %v7160_v47 = vpack.c.bf16 %v6777_v51, %v6769_v39 }
 0xacf   : > { %v1134_v62 = vsub.f32 %v1120_v53, %v1132_v54 }
 0xad1   : > { %v1136_v59 = vmul.f32 %v1134_v62, %v1134_v62 }
 0xad3   : > { %v1138_v20 = vsel %vm390_vm0, %v1136_v59, 0.0 }
 0xad4   : > { %1139 = vadd.xlane.f32.xlu0 %v1138_v20 }
 0xad8   : > { %1368 = vadd.xlane.f32.xlu0 %v1367_v24 }
 0xb2c   : > { %v1143_v15 = vpop.xlane.xlu1 %1142 }
 0xb2d   : > { %v1145_v54 = vmul.f32 0.0625, %v1143_v15 }
 0xb2f   : > { %v1147_v59 = vadd.f32 1e-05, %v1145_v54 }
 0xb30   : > { %v1372_v3 = vpop.xlane.xlu1 %1371 }
 0xb31   : > { %v1374_v27 = vmul.f32 0.0625, %v1372_v3  ;;  %5834 = vrsqrt.f32 %v1147_v59 }
 0xb33   : > { %v6861_v57 = vsub.f32 %v1364_v25, %v1374_v27 }
 0xb35   : > { %v1378_v12 = vmul.f32 %v6861_v57, %v6861_v57 }
 0xb37   : > { %v1382_v35 = vsel %vm390_vm0, %v1378_v12, 0.0 }
 0xb38   : > { %1383 = vadd.xlane.f32.xlu1 %v1382_v35 }
 0xb39   : > { %v6866_v53 = vpop.f32.mrf.mxu0 }
 0xb3b   : > { %v5627_v0 = vpop.f32.mrf.mxu0 }
 0xb3d   : > { %v6868_v21 = vpop.f32.mrf.mxu0 }
 0xb3e   : > { %v5835_v0 = vpop.eup %5834 }
 0xb3f   : > { %v5628_v7 = vpop.f32.mrf.mxu0  ;;  %v1151_v51 = vmul.f32 %v5835_v0, %v1135_v2 }
 0xb41   : > { %v4622_v6 = vpop.f32.mrf.mxu0 }
 0xb42   : > { %v4629_v46 = vsel %vm5980_vm1, %v4622_v6, 0.0  ;;  %vm1492_vm1 = vcmask 261120  }
 0xb43   : > { %v5639_v18 = vpop.f32.mrf.mxu0 }
 0xb45   : > { %v4625_v49 = vpop.f32.mrf.mxu0 }
 0xb46   : > { %v4630_v25 = vsel %vm6005_vm6, %v4625_v49, 0.0  ;;  %vm1495_vm6 = vcmask 392192  }
 0xb47   : > { %v6874_v32 = vpack.c.bf16 %v4630_v25, %v4629_v46  ;;  %v5640_v61 = vpop.f32.mrf.mxu0 }
 0xb49   : > { %4505 = vrot.lane.b32.xlu1 %v7160_v47, %s5920_s6 }
 0xb4d   : > { %4680 = vrot.lane.b32.xlu1 %v4577_v11, %s5923_s9  ;;  %v1812_v11 = vadd.f32 %v6348_v52, %v6380_v56  ;;  %v665_v52 = vmul.f32 0.0625, %v6815_v33  ;;  %v666_v56 = vmul.f32 0.0625, %v6817_v26 }
 0xb5d   : > { %v1140_v20 = vpop.xlane.xlu0 %1139 }
 0xb5e   : > { %v1144_v24 = vmul.f32 0.0625, %v1140_v20 }
 0xb60   : > { %v1146_v4 = vadd.f32 1e-05, %v1144_v24 }
 0xb61   : > { %v1369_v3 = vpop.xlane.xlu0 %1368 }
 0xb62   : > { %5836 = vrsqrt.f32 %v1146_v4  ;;  %v1373_v45 = vmul.f32 0.0625, %v1369_v3 }
 0xb64   : > { %v1375_v27 = vsub.f32 %v1361_v48, %v1373_v45  ;;  %v1818_v48 = vsel %vm390_vm0, %v1812_v11, 0.0 }
 0xb66   : > { %v1377_v12 = vmul.f32 %v1375_v27, %v1375_v27 }
 0xb68   : > { %v1379_v35 = vsel %vm390_vm0, %v1377_v12, 0.0 }
 0xb69   : > { %1380 = vadd.xlane.f32.xlu0 %v1379_v35 }
 0xb6f   : > { %v5837_v7 = vpop.eup %5836 }
 0xb70   : > { %v1150_v39 = vmul.f32 %v5837_v7, %v1134_v62 }
 0xb72   : > { %v5695_v6 = vpack.i.bf16 %v1151_v51, %v1150_v39 }
 0xb74   : > { %5696 = vrot.lane.b32.xlu1 %v5695_v6, %s5929_s14 }
 0xb7f   : > { %5691 = vrot.lane.b32.xlu0 %v5690_v8, %s5927_s12  ;;  %v668_v8 = vadd.f32 1e-05, %v666_v56 }
 0xb83   : > { %4632 = vrot.lane.b32.xlu0 %v6635_v1, %s5924_s10  ;;  %v667_v1 = vadd.f32 1e-05, %v665_v52 }
 0xb85   : > { %5838 = vrsqrt.f32 %v667_v1 }
 0xb86   : > { %5840 = vrsqrt.f32 %v668_v8 }
 0xb92   : > { %v5839_v61 = vpop.eup %5838 }
 0xb93   : > { %v5841_v54 = vpop.eup %5840  ;;  %v671_v20 = vmul.f32 %v5839_v61, %v6758_v58 }
 0xb98   : > { %1819 = vadd.xlane.f32.xlu1 %v1818_v48 }
 0xbc1   : > { %v1384_v15 = vpop.xlane.xlu1 %1383 }
 0xbc2   : > { %v1386_v46 = vmul.f32 0.0625, %v1384_v15 }
 0xbc4   : > { %v1388_v25 = vadd.f32 1e-05, %v1386_v46 }
 0xbc5   : > { %v4506_v18 = vpop.permute.xlu1 %4505 }
 0xbc6   : > { %v4508_v62 = vsel %vm501_vm8, %v4506_v18, 0  ;;  %5842 = vrsqrt.f32 %v1388_v25  ;;  %v1815_v18 = vadd.f32 %v6350_v22, %v6389_v23 }
 0xbc7   : > { %5630 = vmatpush3.bf16.xpose.msra.mxu1 %v4508_v62 }
 0xbc8   : > { %5641 = vmatprep.subr.bf16.mxu1 %v7150_v63 }
 0xbc9   : > { %v4681_v2 = vpop.permute.xlu1 %4680 }
 0xbca   : > { %v4683_v49 = vsel %vm501_vm8, %v4681_v2, 0  ;;  %v1821_v2 = vsel %vm390_vm0, %v1815_v18, 0.0 }
 0xbcb   : > { %5648 = vmatpush3.bf16.xpose.msra.mxu0 %v4683_v49 }
 0xbce   : > { %5632 = vmatmul.mubr.msk.bf16.vlgmr.msra.gmra.mxu1 %vm501_vm8, %v6721_v50 }
 0xbcf   : > { %5643 = vmatprep.mubr.msk.bf16.mxu1 %vm5919_vm7, %v7150_v63  ;;  %vm1506_vm7 = vcmask 519168  }
 0xbd2   : > { %5650 = vmatmul.mubr.msk.bf16.vlgmr.msra.gmra.mxu0 %vm501_vm8, %v6765_v44  ;;  %v672_v44 = vmul.f32 %v5841_v54, %v6782_v5 }
 0xbd3   : > { %v5843_v58 = vpop.eup %5842 }
 0xbd4   : > { %v1392_v51 = vmul.f32 %v5843_v58, %v6861_v57  ;;  %v2057_v57 = vadd.f32 %v6424_v41, %v6458_v13  ;;  %v2308_v58 = vadd.f32 %v6433_v9, %v6503_v29  ;;  %v2311_v9 = vadd.f32 %v6438_v19, %v6505_v14 }
 0xbd6   : > { %v2063_v49 = vsel %vm390_vm0, %v2057_v57, 0.0 }
 0xbe6   : > { %v5697_v59 = vpop.permute.xlu1 %5696 }
 0xbe7   : > { %v5699_v4 = vunpack.i.h.bf16 %v5697_v59  ;;  %v5698_v3 = vunpack.i.l.bf16 %v5697_v59 }
 0xbf2   : > { %v1381_v47 = vpop.xlane.xlu0 %1380 }
 0xbf3   : > { %v1385_v50 = vmul.f32 0.0625, %v1381_v47 }
 0xbf5   : > { %v1387_v63 = vadd.f32 1e-05, %v1385_v50 }
 0xbf6   : > { %v5692_v33 = vpop.permute.xlu0 %5691 }
 0xbf7   : > { %5844 = vrsqrt.f32 %v1387_v63  ;;  %v5694_v26 = vunpack.i.h.bf16 %v5692_v33  ;;  %v5693_v24 = vunpack.i.l.bf16 %v5692_v33 }
 0xbf9   : > { %v1491_v45 = vsel %vm390_vm0, %v672_v44, %v5694_v26  ;;  %v1490_v12 = vsel %vm390_vm0, %v671_v20, %v5693_v24  ;;  %v2060_v26 = vadd.f32 %v6426_v43, %v6460_v10 }
 0xbfa   : > { %v4633_v35 = vpop.permute.xlu0 %4632  ;;  %v1493_v0 = vsel %vm1492_vm1, %v1490_v12, %v5698_v3  ;;  %v1494_v7 = vsel %vm1492_vm1, %v1491_v45, %v5699_v4 }
 0xbfb   : > { %5642 = vmatpush3.bf16.msra.mxu1 %v4633_v35  ;;  %v2066_v12 = vsel %vm390_vm0, %v2060_v26, 0.0 }
 0xbfe   : > { %5644 = vmatmul.mubr.msk.bf16.vlgmr.msra.gmra.mxu1 %vm390_vm0, %v6874_v32 }
 0xc04   : > { %v5845_v5 = vpop.eup %5844 }
 0xc05   : > { %v1391_v39 = vmul.f32 %v5845_v5, %v1375_v27 }
 0xc07   : > { %v5700_v6 = vpack.i.bf16 %v1392_v51, %v1391_v39 }
 0xc09   : > { %5701 = vrot.lane.b32.xlu0 %v5700_v6, %s5930_s15  ;;  %v2314_v6 = vsel %vm390_vm0, %v2308_v58, 0.0 }
 0xc21   : > { %v1820_v48 = vpop.xlane.xlu1 %1819 }
 0xc22   : > { %v1824_v15 = vmul.f32 0.0625, %v1820_v48 }
 0xc24   : > { %v6912_v62 = vsub.f32 %v1812_v11, %v1824_v15 }
 0xc26   : > { %v1828_v32 = vmul.f32 %v6912_v62, %v6912_v62 }
 0xc28   : > { %1822 = vadd.xlane.f32.xlu0 %v1821_v2  ;;  %v1830_v27 = vsel %vm390_vm0, %v1828_v32, 0.0 }
 0xc2c   : > { %1831 = vadd.xlane.f32.xlu0 %v1830_v27 }
 0xc30   : > { %2064 = vadd.xlane.f32.xlu0 %v2063_v49 }
 0xc7b   : > { %v5702_v52 = vpop.permute.xlu0 %5701 }
 0xc7c   : > { %v5704_v22 = vunpack.i.h.bf16 %v5702_v52  ;;  %v5703_v23 = vunpack.i.l.bf16 %v5702_v52 }
 0xc7e   : > { %v1496_v41 = vsel %vm1495_vm6, %v1493_v0, %v5703_v23  ;;  %v1497_v13 = vsel %vm1495_vm6, %v1494_v7, %v5704_v22  ;;  %v2317_v22 = vsel %vm390_vm0, %v2311_v9, 0.0 }
 0xc7f   : > { %v5064_v11 = vpack.c.bf16 %v1496_v41, %v1496_v41  ;;  %v5065_v56 = vpack.c.bf16 %v1497_v13, %v1497_v13  ;;  %v7161_v41 = vld [vmem:[#allocation4_spill] sm:$0xff]  ;;  %v7162_v13 = vld [vmem:[#allocation2_spill] sm:$0xff] }
 0xc81   : > { %1507 = vst.msk [vmem:[%s6925_s22] sm:$0xf] %vm1506_vm7, %v5064_v11  ;;  %1508 = vst.msk [vmem:[%s6925_s22 + $0x4] sm:$0xf] %vm1506_vm7, %v5065_v56  ;;  %v2558_v11 = vadd.f32 %v7162_v13, %v7161_v41 }
 0xc83   : > { %v2564_v19 = vsel %vm390_vm0, %v2558_v11, 0.0 }
 0xc8e   : > { %v6933_v1 = vpop.f32.mrf.mxu1 }
 0xc90   : > { %v5633_v8 = vpop.f32.mrf.mxu1 }
 0xc92   : > { %v6935_v46 = vpop.f32.mrf.mxu1  ;;  %v4719_v25 = vpop.f32.mrf.mxu0 }
 0xc94   : > { %v5634_v61 = vpop.f32.mrf.mxu1  ;;  %v5651_v47 = vpop.f32.mrf.mxu0 }
 0xc96   : > { %v4722_v54 = vpop.f32.mrf.mxu0 }
 0xc98   : > { %v5652_v50 = vpop.f32.mrf.mxu0 }
 0xc99   : > { %v7163_v50 = vld [vmem:[#allocation5_spill] sm:$0xff] }
 0xcb1   : > { %v1823_v59 = vpop.xlane.xlu0 %1822 }
 0xcb2   : > { %v1825_v63 = vmul.f32 0.0625, %v1823_v59  ;;  %v7164_v59 = vld [vmem:[#allocation3_spill] sm:$0xff] }
 0xcb4   : > { %v6937_v20 = vsub.f32 %v1815_v18, %v1825_v63  ;;  %v2561_v63 = vadd.f32 %v7164_v59, %v7163_v50 }
 0xcb5   : > { %v6939_v44 = vpop.xlane.xlu0 %1831 }
 0xcb6   : > { %v1829_v33 = vmul.f32 %v6937_v20, %v6937_v20 }
 0xcb8   : > { %v1833_v24 = vsel %vm390_vm0, %v1829_v33, 0.0 }
 0xcb9   : > { %1834 = vadd.xlane.f32.xlu1 %v1833_v24  ;;  %v2065_v4 = vpop.xlane.xlu0 %2064 }
 0xcba   : > { %v2069_v3 = vmul.f32 0.0625, %v2065_v4 }
 0xcbc   : > { %v2071_v45 = vsub.f32 %v2057_v57, %v2069_v3 }
 0xcbd   : > { %2067 = vadd.xlane.f32.xlu1 %v2066_v12 }
 0xcbe   : > { %v4672_v35 = vpop.f32.mrf.mxu1  ;;  %v2073_v0 = vmul.f32 %v2071_v45, %v2071_v45 }
 0xcbf   : > { %v6947_v7 = vadd.f32 %v4719_v25, %v4672_v35  ;;  %v2567_v35 = vsel %vm390_vm0, %v2561_v63, 0.0 }
 0xcc0   : > { %v5645_v5 = vpop.f32.mrf.mxu1  ;;  %v2075_v39 = vsel %vm390_vm0, %v2073_v0, 0.0 }
 0xcc1   : > { %2076 = vadd.xlane.f32.xlu0 %v2075_v39 }
 0xcc2   : > { %v4675_v43 = vpop.f32.mrf.mxu1 }
 0xcc3   : > { %v6952_v10 = vadd.f32 %v4722_v54, %v4675_v43 }
 0xcc4   : > { %v5646_v51 = vpop.f32.mrf.mxu1 }
 0xcc5   : > { %2315 = vadd.xlane.f32.xlu0 %v2314_v6 }
 0xd42   : > { %v1835_v48 = vpop.xlane.xlu1 %1834 }
 0xd46   : > { %v2068_v15 = vpop.xlane.xlu1 %2067 }
 0xd47   : > { %v2070_v18 = vmul.f32 0.0625, %v2068_v15 }
 0xd49   : > { %v2072_v2 = vsub.f32 %v2060_v26, %v2070_v18 }
 0xd4a   : > { %v2077_v32 = vpop.xlane.xlu0 %2076 }
 0xd4b   : > { %v2074_v57 = vmul.f32 %v2072_v2, %v2072_v2  ;;  %v2081_v3 = vmul.f32 0.0625, %v2077_v32  ;;  %v7165_v32 = vld [vmem:[#allocation6_spill] sm:$0xff] }
 0xd4d   : > { %v2078_v29 = vsel %vm390_vm0, %v2074_v57, 0.0  ;;  %v2083_v5 = vadd.f32 1e-05, %v2081_v3  ;;  %v3009_v57 = vadd.f32 %v7165_v32, %v6630_v37 }
 0xd4e   : > { %v2316_v27 = vpop.xlane.xlu0 %2315  ;;  %2079 = vadd.xlane.f32.xlu1 %v2078_v29  ;;  %v1836_v29 = vmul.f32 0.0625, %v6939_v44 }
 0xd4f   : > { %v2320_v49 = vmul.f32 0.0625, %v2316_v27  ;;  %v1837_v27 = vmul.f32 0.0625, %v1835_v48 }
 0xd51   : > { %v6958_v52 = vsub.f32 %v2308_v58, %v2320_v49  ;;  %v1838_v49 = vadd.f32 1e-05, %v1836_v29 }
 0xd52   : > { %2318 = vadd.xlane.f32.xlu1 %v2317_v22  ;;  %v1839_v22 = vadd.f32 1e-05, %v1837_v27  ;;  %v3254_v27 = vadd.f32 %v6639_v16, %v6701_v55 }
 0xd53   : > { %v2324_v23 = vmul.f32 %v6958_v52, %v6958_v52 }
 0xd55   : > { %v2326_v56 = vsel %vm390_vm0, %v2324_v23, 0.0 }
 0xd56   : > { %2327 = vadd.xlane.f32.xlu0 %v2326_v56 }
 0xd5a   : > { %2565 = vadd.xlane.f32.xlu0 %v2564_v19 }
 0xdd7   : > { %v2080_v14 = vpop.xlane.xlu1 %2079 }
 0xdd8   : > { %v2082_v26 = vmul.f32 0.0625, %v2080_v14 }
 0xdda   : > { %v2084_v0 = vadd.f32 1e-05, %v2082_v26 }
 0xddb   : > { %v2319_v8 = vpop.xlane.xlu1 %2318 }
 0xddc   : > { %v2321_v25 = vmul.f32 0.0625, %v2319_v8  ;;  %5846 = vrsqrt.f32 %v2084_v0 }
 0xddd   : > { %5848 = vrsqrt.f32 %v2083_v5 }
 0xdde   : > { %v2323_v61 = vsub.f32 %v2311_v9, %v2321_v25  ;;  %v3015_v9 = vsel %vm390_vm0, %v3009_v57, 0.0  ;;  %5850 = vrsqrt.f32 %v1838_v49 }
 0xddf   : > { %v2328_v47 = vpop.xlane.xlu0 %2327  ;;  %5852 = vrsqrt.f32 %v1839_v22  ;;  %v3260_v22 = vsel %vm390_vm0, %v3254_v27, 0.0 }
 0xde0   : > { %v2325_v54 = vmul.f32 %v2323_v61, %v2323_v61  ;;  %v2332_v41 = vmul.f32 0.0625, %v2328_v47 }
 0xde2   : > { %v2329_v33 = vsel %vm390_vm0, %v2325_v54, 0.0 }
 0xde3   : > { %v2566_v24 = vpop.xlane.xlu0 %2565  ;;  %2330 = vadd.xlane.f32.xlu1 %v2329_v33 }
 0xde4   : > { %v2570_v4 = vmul.f32 0.0625, %v2566_v24 }
 0xde6   : > { %v6970_v12 = vsub.f32 %v2558_v11, %v2570_v4  ;;  %v2334_v11 = vadd.f32 1e-05, %v2332_v41 }
 0xde7   : > { %2568 = vadd.xlane.f32.xlu1 %v2567_v35 }
 0xde8   : > { %v2574_v58 = vmul.f32 %v6970_v12, %v6970_v12 }
 0xde9   : > { %v5847_v43 = vpop.eup %5846 }
 0xdea   : > { %v2576_v39 = vsel %vm390_vm0, %v2574_v58, 0.0  ;;  %v5849_v51 = vpop.eup %5848  ;;  %v2088_v6 = vmul.f32 %v5847_v43, %v2072_v2 }
 0xdeb   : > { %2577 = vadd.xlane.f32.xlu0 %v2576_v39  ;;  %v2087_v15 = vmul.f32 %v5849_v51, %v2071_v45  ;;  %v5851_v14 = vpop.eup %5850 }
 0xdec   : > { %v5853_v25 = vpop.eup %5852  ;;  %v1842_v54 = vmul.f32 %v5851_v14, %v6912_v62 }
 0xded   : > { %v5705_v18 = vpack.i.bf16 %v2088_v6, %v2087_v15  ;;  %v1843_v47 = vmul.f32 %v5853_v25, %v6937_v20 }
 0xe01   : > { %5706 = vrot.lane.b32.xlu0 %v5705_v18, %s5927_s12 }
 0xe20   : > { %3016 = vadd.xlane.f32.xlu0 %v3015_v9  ;;  %v7166_v9 = vld [vmem:[#allocation7_spill] sm:$0xff] }
 0xe21   : > { %v3012_v29 = vadd.f32 %v7166_v9, %v6632_v28 }
 0xe23   : > { %v3018_v49 = vsel %vm390_vm0, %v3012_v29, 0.0 }
 0xe6c   : > { %v2331_v23 = vpop.xlane.xlu1 %2330 }
 0xe6d   : > { %v2333_v2 = vmul.f32 0.0625, %v2331_v23 }
 0xe6f   : > { %v2335_v45 = vadd.f32 1e-05, %v2333_v2 }
 0xe70   : > { %v2569_v13 = vpop.xlane.xlu1 %2568 }
 0xe71   : > { %v2571_v56 = vmul.f32 0.0625, %v2569_v13  ;;  %5854 = vrsqrt.f32 %v2335_v45 }
 0xe72   : > { %5856 = vrsqrt.f32 %v2334_v11 }
 0xe73   : > { %v2573_v19 = vsub.f32 %v2561_v63, %v2571_v56 }
 0xe74   : > { %v2578_v37 = vpop.xlane.xlu0 %2577 }
 0xe75   : > { %v2575_v8 = vmul.f32 %v2573_v19, %v2573_v19  ;;  %v2582_v39 = vmul.f32 0.0625, %v2578_v37 }
 0xe77   : > { %v2579_v44 = vsel %vm390_vm0, %v2575_v8, 0.0  ;;  %v2584_v43 = vadd.f32 1e-05, %v2582_v39 }
 0xe78   : > { %v5707_v48 = vpop.permute.xlu0 %5706  ;;  %2580 = vadd.xlane.f32.xlu1 %v2579_v44 }
 0xe79   : > { %v5709_v50 = vunpack.i.h.bf16 %v5707_v48  ;;  %v5708_v59 = vunpack.i.l.bf16 %v5707_v48  ;;  %5858 = vrsqrt.f32 %v2584_v43 }
 0xe7b   : > { %v2690_v33 = vsel %vm390_vm0, %v1843_v47, %v5709_v50  ;;  %v2689_v26 = vsel %vm390_vm0, %v1842_v54, %v5708_v59  ;;  %v7167_v54 = vld [vmem:[#allocation8_spill] sm:$0xff] }
 0xe7c   : > { %v3257_v47 = vadd.f32 %v7167_v54, %v6703_v38 }
 0xe7e   : > { %v5855_v63 = vpop.eup %5854 }
 0xe7f   : > { %v5857_v24 = vpop.eup %5856  ;;  %v2339_v4 = vmul.f32 %v5855_v63, %v2323_v61 }
 0xe80   : > { %v2338_v3 = vmul.f32 %v5857_v24, %v6958_v52  ;;  %v3263_v24 = vsel %vm390_vm0, %v3257_v47, 0.0 }
 0xe82   : > { %v5710_v35 = vpack.i.bf16 %v2339_v4, %v2338_v3 }
 0xe86   : > { %v5859_v52 = vpop.eup %5858 }
 0xe87   : > { %v2588_v18 = vmul.f32 %v5859_v52, %v6970_v12 }
 0xe89   : > { %5711 = vrot.lane.b32.xlu1 %v5710_v35, %s5929_s14 }
 0xea9   : > { %v3017_v0 = vpop.xlane.xlu0 %3016 }
 0xeaa   : > { %v3021_v58 = vmul.f32 0.0625, %v3017_v0 }
 0xeac   : > { %v6988_v5 = vsub.f32 %v3009_v57, %v3021_v58 }
 0xeae   : > { %v3025_v62 = vmul.f32 %v6988_v5, %v6988_v5 }
 0xeb0   : > { %v3027_v20 = vsel %vm390_vm0, %v3025_v62, 0.0 }
 0xeb1   : > { %3028 = vadd.xlane.f32.xlu0 %v3027_v20 }
 0xf01   : > { %v2581_v51 = vpop.xlane.xlu1 %2580 }
 0xf02   : > { %v2583_v6 = vmul.f32 0.0625, %v2581_v51 }
 0xf04   : > { %v2585_v61 = vadd.f32 1e-05, %v2583_v6 }
 0xf05   : > { %v5712_v23 = vpop.permute.xlu1 %5711 }
 0xf06   : > { %5860 = vrsqrt.f32 %v2585_v61  ;;  %v5714_v12 = vunpack.i.h.bf16 %v5712_v23  ;;  %v5713_v41 = vunpack.i.l.bf16 %v5712_v23 }
 0xf08   : > { %v2692_v11 = vsel %vm1492_vm1, %v2690_v33, %v5714_v12  ;;  %v2691_v28 = vsel %vm1492_vm1, %v2689_v26, %v5713_v41  ;;  %v7168_v26 = vld [vmem:[#allocation9_spill] sm:$0xff] }
 0xf09   : > { %v3505_v63 = vadd.f32 %v7168_v26, %v6710_v36  ;;  %v7169_v36 = vld [vmem:[#allocation10_spill] sm:$0xff] }
 0xf0a   : > { %v3508_v6 = vadd.f32 %v7169_v36, %v6714_v34 }
 0xf0b   : > { %v3511_v3 = vsel %vm390_vm0, %v3505_v63, 0.0 }
 0xf0c   : > { %v3514_v9 = vsel %vm390_vm0, %v3508_v6, 0.0 }
 0xf13   : > { %v5861_v15 = vpop.eup %5860 }
 0xf14   : > { %v2589_v32 = vmul.f32 %v5861_v15, %v2573_v19 }
 0xf16   : > { %v5715_v57 = vpack.i.bf16 %v2589_v32, %v2588_v18  ;;  %v7170_v18 = vld [vmem:[#allocation13_spill] sm:$0xff]  ;;  %v7171_v32 = vld [vmem:[#allocation11_spill] sm:$0xff] }
 0xf18   : > { %5716 = vrot.lane.b32.xlu1 %v5715_v57, %s5930_s15  ;;  %v3755_v57 = vadd.f32 %v7171_v32, %v7170_v18 }
 0xf3a   : > { %v7021_v35 = vpop.xlane.xlu0 %3028 }
 0xf3c   : > { %3019 = vadd.xlane.f32.xlu1 %v3018_v49 }
 0xf40   : > { %3261 = vadd.xlane.f32.xlu1 %v3260_v22 }
 0xf8a   : > { %v5717_v2 = vpop.permute.xlu1 %5716 }
 0xf8b   : > { %v5719_v45 = vunpack.i.h.bf16 %v5717_v2  ;;  %v5718_v13 = vunpack.i.l.bf16 %v5717_v2 }
 0xf8d   : > { %v2693_v16 = vsel %vm1495_vm6, %v2691_v28, %v5718_v13  ;;  %v2694_v55 = vsel %vm1495_vm6, %v2692_v11, %v5719_v45  ;;  %v7172_v11 = vld [vmem:[#allocation12_spill] sm:$0xff] }
 0xf8e   : > { %v5066_v56 = vpack.c.bf16 %v2693_v16, %v2693_v16  ;;  %v5067_v19 = vpack.c.bf16 %v2694_v55, %v2694_v55  ;;  %v3758_v28 = vadd.f32 %v7172_v11, %v6723_v17 }
 0xf90   : > { %4997 = vst.msk [vmem:[%s6925_s22 + $0x8] sm:$0xf] %vm1506_vm7, %v5066_v56  ;;  %4998 = vst.msk [vmem:[%s6925_s22 + $0xc] sm:$0xf] %vm1506_vm7, %v5067_v19  ;;  %v3764_v55 = vsel %vm390_vm0, %v3758_v28, 0.0 }
 0xfc5   : > { %v3020_v37 = vpop.xlane.xlu1 %3019 }
 0xfc6   : > { %v3022_v14 = vmul.f32 0.0625, %v3020_v37 }
 0xfc8   : > { %v7009_v8 = vsub.f32 %v3012_v29, %v3022_v14 }
 0xfc9   : > { %v3262_v25 = vpop.xlane.xlu1 %3261 }
 0xfca   : > { %v3266_v44 = vmul.f32 0.0625, %v3262_v25  ;;  %v3026_v48 = vmul.f32 %v7009_v8, %v7009_v8 }
 0xfcc   : > { %v3268_v50 = vsub.f32 %v3254_v27, %v3266_v44  ;;  %v3030_v59 = vsel %vm390_vm0, %v3026_v48, 0.0  ;;  %v3761_v27 = vsel %vm390_vm0, %v3755_v57, 0.0 }
 0xfcd   : > { %3031 = vadd.xlane.f32.xlu0 %v3030_v59  ;;  %v4193_v59 = vadd.f32 %v6743_v40, %v6793_v42 }
 0xfce   : > { %v3270_v33 = vmul.f32 %v3268_v50, %v3268_v50 }
 0xfd0   : > { %v3272_v4 = vsel %vm390_vm0, %v3270_v33, 0.0 }
 0xfd1   : > { %3264 = vadd.xlane.f32.xlu0 %v3263_v24  ;;  %3273 = vadd.xlane.f32.xlu1 %v3272_v4 }
 0xfd5   : > { %3512 = vadd.xlane.f32.xlu1 %v3511_v3 }
0x1056   : > { %v3032_v38 = vpop.xlane.xlu0 %3031 }
0x1057   : > { %v3034_v26 = vmul.f32 0.0625, %v3032_v38 }
0x105a   : > { %v3265_v0 = vpop.xlane.xlu0 %3264  ;;  %v3274_v58 = vpop.xlane.xlu1 %3273 }
0x105b   : > { %v3267_v62 = vmul.f32 0.0625, %v3265_v0  ;;  %v3278_v49 = vmul.f32 0.0625, %v3274_v58 }
0x105d   : > { %v3269_v20 = vsub.f32 %v3257_v47, %v3267_v62  ;;  %v3280_v22 = vadd.f32 1e-05, %v3278_v49 }
0x105e   : > { %v3513_v39 = vpop.xlane.xlu1 %3512 }
0x105f   : > { %v3517_v43 = vmul.f32 0.0625, %v3513_v39  ;;  %v3271_v51 = vmul.f32 %v3269_v20, %v3269_v20  ;;  %5862 = vrsqrt.f32 %v3280_v22 }
0x1061   : > { %v3519_v61 = vsub.f32 %v3505_v63, %v3517_v43  ;;  %v3275_v52 = vsel %vm390_vm0, %v3271_v51, 0.0  ;;  %v3036_v63 = vadd.f32 1e-05, %v3034_v26  ;;  %v4545_v26 = vadd.f32 %v6933_v1, %v6866_v53  ;;  %v7174_v1 = vld [vmem:[#allocation16_spill] sm:$0xff] }
0x1062   : > { %3276 = vadd.xlane.f32.xlu0 %v3275_v52 }
0x1063   : > { %v3521_v15 = vmul.f32 %v3519_v61, %v3519_v61 }
0x1065   : > { %v3523_v29 = vsel %vm390_vm0, %v3521_v15, 0.0 }
0x1066   : > { %3515 = vadd.xlane.f32.xlu0 %v3514_v9  ;;  %3524 = vadd.xlane.f32.xlu1 %v3523_v29  ;;  %v7173_v29 = vld [vmem:[#allocation14_spill] sm:$0xff] }
0x106a   : > { %3762 = vadd.xlane.f32.xlu1 %v3761_v27  ;;  %v4196_v27 = vadd.f32 %v7173_v29, %v6795_v31  ;;  %v3033_v31 = vmul.f32 0.0625, %v7021_v35  ;;  %v4726_v29 = vsel %vm390_vm0, %v6947_v7, 0.0 }
0x106c   : > { %v5863_v56 = vpop.eup %5862 }
0x106d   : > { %v3284_v37 = vmul.f32 %v5863_v56, %v3268_v50  ;;  %v4199_v50 = vsel %vm390_vm0, %v4193_v59, 0.0 }
0x10eb   : > { %v3277_v34 = vpop.xlane.xlu0 %3276 }
0x10ec   : > { %v3279_v23 = vmul.f32 0.0625, %v3277_v34 }
0x10ee   : > { %v3281_v12 = vadd.f32 1e-05, %v3279_v23  ;;  %v4370_v23 = vadd.f32 %v6811_v30, %v6831_v60 }
0x10ef   : > { %v3516_v41 = vpop.xlane.xlu0 %3515  ;;  %v3525_v44 = vpop.xlane.xlu1 %3524 }
0x10f0   : > { %5864 = vrsqrt.f32 %v3281_v12  ;;  %v3518_v2 = vmul.f32 0.0625, %v3516_v41  ;;  %v3529_v62 = vmul.f32 0.0625, %v3525_v44  ;;  %v4376_v41 = vsel %vm390_vm0, %v4370_v23, 0.0 }
0x10f1   : > { %5866 = vrsqrt.f32 %v3036_v63 }
0x10f2   : > { %v3520_v45 = vsub.f32 %v3508_v6, %v3518_v2  ;;  %v3035_v2 = vadd.f32 1e-05, %v3033_v31 }
0x10f3   : > { %v3763_v48 = vpop.xlane.xlu1 %3762 }
0x10f4   : > { %v3522_v13 = vmul.f32 %v3520_v45, %v3520_v45  ;;  %v3767_v54 = vmul.f32 0.0625, %v3763_v48 }
0x10f6   : > { %v3526_v16 = vsel %vm390_vm0, %v3522_v13, 0.0  ;;  %v7036_v47 = vsub.f32 %v3755_v57, %v3767_v54 }
0x10f7   : > { %3527 = vadd.xlane.f32.xlu0 %v3526_v16 }
0x10f8   : > { %v3771_v17 = vmul.f32 %v7036_v47, %v7036_v47 }
0x10fa   : > { %v3773_v33 = vsel %vm390_vm0, %v3771_v17, 0.0 }
0x10fb   : > { %3765 = vadd.xlane.f32.xlu0 %v3764_v55 }
0x10fd   : > { %v5865_v19 = vpop.eup %5864 }
0x10fe   : > { %v3285_v14 = vmul.f32 %v5865_v19, %v3269_v20  ;;  %v5867_v24 = vpop.eup %5866  ;;  %v3531_v20 = vadd.f32 1e-05, %v3529_v62 }
0x10ff   : > { %v3040_v3 = vmul.f32 %v5867_v24, %v7009_v8 }
0x1100   : > { %v5720_v25 = vpack.i.bf16 %v3285_v14, %v3284_v37  ;;  %5868 = vrsqrt.f32 %v3531_v20  ;;  %v7175_v20 = vld [vmem:[#allocation15_spill] sm:$0xff] }
0x1102   : > { %5721 = vrot.lane.b32.xlu1 %v5720_v25, %s5927_s12 }
0x110d   : > { %v5869_v43 = vpop.eup %5868 }
0x110e   : > { %v3535_v36 = vmul.f32 %v5869_v43, %v3519_v61  ;;  %v4202_v61 = vsel %vm390_vm0, %v4196_v27, 0.0 }
0x1126   : > { %3774 = vadd.xlane.f32.xlu1 %v3773_v33 }
0x112a   : > { %4200 = vadd.xlane.f32.xlu1 %v4199_v50 }
0x1174   : > { %v5722_v4 = vpop.permute.xlu1 %5721 }
0x1175   : > { %v5724_v0 = vunpack.i.h.bf16 %v5722_v4  ;;  %v5723_v13 = vunpack.i.l.bf16 %v5722_v4 }
0x1177   : > { %v3887_v58 = vsel %vm390_vm0, %v3040_v3, %v5724_v0  ;;  %v4551_v0 = vsel %vm390_vm0, %v4545_v26, 0.0 }
0x1180   : > { %v3528_v39 = vpop.xlane.xlu0 %3527 }
0x1181   : > { %v3530_v40 = vmul.f32 0.0625, %v3528_v39  ;;  %v4373_v39 = vadd.f32 %v7175_v20, %v7174_v1 }
0x1183   : > { %v3532_v42 = vadd.f32 1e-05, %v3530_v40  ;;  %v4379_v40 = vsel %vm390_vm0, %v4373_v39, 0.0 }
0x1184   : > { %v3766_v52 = vpop.xlane.xlu0 %3765 }
0x1185   : > { %5870 = vrsqrt.f32 %v3532_v42  ;;  %v3768_v15 = vmul.f32 0.0625, %v3766_v52 }
0x1186   : > { %5872 = vrsqrt.f32 %v3035_v2 }
0x1187   : > { %v3770_v8 = vsub.f32 %v3758_v28, %v3768_v15 }
0x1189   : > { %v3772_v32 = vmul.f32 %v3770_v8, %v3770_v8 }
0x118b   : > { %v3776_v49 = vsel %vm390_vm0, %v3772_v32, 0.0 }
0x1192   : > { %v5871_v51 = vpop.eup %5870 }
0x1193   : > { %v3536_v38 = vmul.f32 %v5871_v51, %v3520_v45  ;;  %v5873_v45 = vpop.eup %5872 }
0x1194   : > { %v3039_v11 = vmul.f32 %v5873_v45, %v6988_v5 }
0x1195   : > { %v5725_v6 = vpack.i.bf16 %v3536_v38, %v3535_v36 }
0x1196   : > { %v3886_v56 = vsel %vm390_vm0, %v3039_v11, %v5723_v13 }
0x1197   : > { %5726 = vrot.lane.b32.xlu0 %v5725_v6, %s5929_s14 }
0x11af   : > { %v3775_v18 = vpop.xlane.xlu1 %3774 }
0x11b0   : > { %v3779_v19 = vmul.f32 0.0625, %v3775_v18 }
0x11b2   : > { %v3781_v37 = vadd.f32 1e-05, %v3779_v19 }
0x11b3   : > { %v4201_v57 = vpop.xlane.xlu1 %4200 }
0x11b4   : > { %v4205_v9 = vmul.f32 0.0625, %v4201_v57  ;;  %5874 = vrsqrt.f32 %v3781_v37 }
0x11b6   : > { %v7050_v22 = vsub.f32 %v4193_v59, %v4205_v9  ;;  %3777 = vadd.xlane.f32.xlu0 %v3776_v49 }
0x11b8   : > { %v4209_v34 = vmul.f32 %v7050_v22, %v7050_v22 }
0x11ba   : > { %4203 = vadd.xlane.f32.xlu0 %v4202_v61  ;;  %v4211_v12 = vsel %vm390_vm0, %v4209_v34, 0.0 }
0x11be   : > { %4212 = vadd.xlane.f32.xlu0 %v4211_v12  ;;  %v4548_v12 = vadd.f32 %v6935_v46, %v6868_v21 }
0x11c0   : > { %v4554_v31 = vsel %vm390_vm0, %v4548_v12, 0.0 }
0x11c1   : > { %v5875_v59 = vpop.eup %5874 }
0x11c2   : > { %4377 = vadd.xlane.f32.xlu0 %v4376_v41  ;;  %v3785_v24 = vmul.f32 %v5875_v59, %v7036_v47 }
0x1209   : > { %v5727_v28 = vpop.permute.xlu0 %5726 }
0x120a   : > { %v5729_v16 = vunpack.i.h.bf16 %v5727_v28  ;;  %v5728_v55 = vunpack.i.l.bf16 %v5727_v28 }
0x120c   : > { %v3888_v30 = vsel %vm1492_vm1, %v3886_v56, %v5728_v55  ;;  %v3889_v60 = vsel %vm1492_vm1, %v3887_v58, %v5729_v16 }
0x123f   : > { %v3778_v14 = vpop.xlane.xlu0 %3777 }
0x1240   : > { %v3780_v25 = vmul.f32 0.0625, %v3778_v14 }
0x1242   : > { %v3782_v35 = vadd.f32 1e-05, %v3780_v25 }
0x1243   : > { %v4204_v44 = vpop.xlane.xlu0 %4203 }
0x1244   : > { %5876 = vrsqrt.f32 %v3782_v35  ;;  %v4206_v58 = vmul.f32 0.0625, %v4204_v44 }
0x1246   : > { %v7076_v62 = vsub.f32 %v4196_v27, %v4206_v58 }
0x1247   : > { %v7064_v48 = vpop.xlane.xlu0 %4212 }
0x1248   : > { %v4210_v53 = vmul.f32 %v7076_v62, %v7076_v62 }
0x124a   : > { %v4214_v47 = vsel %vm390_vm0, %v4210_v53, 0.0 }
0x124b   : > { %v4378_v5 = vpop.xlane.xlu0 %4377 }
0x124c   : > { %v4382_v54 = vmul.f32 0.0625, %v4378_v5 }
0x124e   : > { %v7066_v17 = vsub.f32 %v4370_v23, %v4382_v54 }
0x1250   : > { %v4386_v33 = vmul.f32 %v7066_v17, %v7066_v17 }
0x1251   : > { %v5877_v50 = vpop.eup %5876 }
0x1252   : > { %v4388_v63 = vsel %vm390_vm0, %v4386_v33, 0.0  ;;  %v3786_v4 = vmul.f32 %v5877_v50, %v3770_v8 }
0x1253   : > { %4389 = vadd.xlane.f32.xlu0 %v4388_v63 }
0x1254   : > { %v5730_v3 = vpack.i.bf16 %v3786_v4, %v3785_v24 }
0x1256   : > { %5731 = vrot.lane.b32.xlu1 %v5730_v3, %s5930_s15 }
0x1257   : > { %4552 = vadd.xlane.f32.xlu0 %v4551_v0 }
0x127a   : > { %4215 = vadd.xlane.f32.xlu1 %v4214_v47 }
0x127e   : > { %4380 = vadd.xlane.f32.xlu1 %v4379_v40 }
0x12c8   : > { %v5732_v42 = vpop.permute.xlu1 %5731 }
0x12c9   : > { %v5734_v43 = vunpack.i.h.bf16 %v5732_v42  ;;  %v5733_v51 = vunpack.i.l.bf16 %v5732_v42 }
0x12cb   : > { %v3891_v36 = vsel %vm1495_vm6, %v3889_v60, %v5734_v43  ;;  %v3890_v38 = vsel %vm1495_vm6, %v3888_v30, %v5733_v51 }
0x12cc   : > { %v5069_v6 = vpack.c.bf16 %v3891_v36, %v3891_v36  ;;  %v5068_v52 = vpack.c.bf16 %v3890_v38, %v3890_v38 }
0x12ce   : > { %5029 = vst.msk [vmem:[%s6925_s22 + $0x14] sm:$0xf] %vm1506_vm7, %v5069_v6  ;;  %5028 = vst.msk [vmem:[%s6925_s22 + $0x10] sm:$0xf] %vm1506_vm7, %v5068_v52 }
0x12dc   : > { %v4390_v15 = vpop.xlane.xlu0 %4389 }
0x12dd   : > { %v4394_v55 = vmul.f32 0.0625, %v4390_v15 }
0x12df   : > { %v4396_v56 = vadd.f32 1e-05, %v4394_v55 }
0x12e0   : > { %v4553_v8 = vpop.xlane.xlu0 %4552 }
0x12e1   : > { %v4557_v18 = vmul.f32 0.0625, %v4553_v8  ;;  %5878 = vrsqrt.f32 %v4396_v56 }
0x12e3   : > { %v4559_v32 = vsub.f32 %v4545_v26, %v4557_v18  ;;  %v4217_v18 = vmul.f32 0.0625, %v7064_v48 }
0x12e5   : > { %v4561_v57 = vmul.f32 %v4559_v32, %v4559_v32 }
0x12e7   : > { %v4563_v9 = vsel %vm390_vm0, %v4561_v57, 0.0  ;;  %v4219_v57 = vadd.f32 1e-05, %v4217_v18 }
0x12e8   : > { %4564 = vadd.xlane.f32.xlu0 %v4563_v9 }
0x12ec   : > { %4727 = vadd.xlane.f32.xlu0 %v4726_v29 }
0x12ee   : > { %v5879_v35 = vpop.eup %5878 }
0x12ef   : > { %v4400_v5 = vmul.f32 %v5879_v35, %v7066_v17 }
0x1303   : > { %v7093_v27 = vpop.xlane.xlu1 %4215 }
0x1307   : > { %v4381_v49 = vpop.xlane.xlu1 %4380 }
0x1308   : > { %v4383_v61 = vmul.f32 0.0625, %v4381_v49 }
0x130a   : > { %v4385_v34 = vsub.f32 %v4373_v39, %v4383_v61 }
0x130c   : > { %v4387_v23 = vmul.f32 %v4385_v34, %v4385_v34 }
0x130e   : > { %v4391_v41 = vsel %vm390_vm0, %v4387_v23, 0.0 }
0x130f   : > { %4392 = vadd.xlane.f32.xlu1 %v4391_v41 }
0x1313   : > { %4555 = vadd.xlane.f32.xlu1 %v4554_v31 }
0x1371   : > { %v4565_v2 = vpop.xlane.xlu0 %4564 }
0x1372   : > { %v4569_v50 = vmul.f32 0.0625, %v4565_v2 }
0x1374   : > { %v4571_v4 = vadd.f32 1e-05, %v4569_v50 }
0x1375   : > { %v4728_v45 = vpop.xlane.xlu0 %4727 }
0x1376   : > { %v4732_v13 = vmul.f32 0.0625, %v4728_v45 }
0x1378   : > { %v4734_v11 = vsub.f32 %v6947_v7, %v4732_v13  ;;  %v4729_v7 = vsel %vm390_vm0, %v6952_v10, 0.0 }
0x137a   : > { %v4736_v28 = vmul.f32 %v4734_v11, %v4734_v11 }
0x137c   : > { %v4738_v16 = vsel %vm390_vm0, %v4736_v28, 0.0 }
0x137d   : > { %4739 = vadd.xlane.f32.xlu0 %v4738_v16 }
0x1398   : > { %v4393_v30 = vpop.xlane.xlu1 %4392 }
0x1399   : > { %v4395_v60 = vmul.f32 0.0625, %v4393_v30 }
0x139b   : > { %v4397_v21 = vadd.f32 1e-05, %v4395_v60 }
0x139c   : > { %v4556_v46 = vpop.xlane.xlu1 %4555 }
0x139d   : > { %5880 = vrsqrt.f32 %v4397_v21  ;;  %v4558_v19 = vmul.f32 0.0625, %v4556_v46 }
0x139f   : > { %v4560_v37 = vsub.f32 %v4548_v12, %v4558_v19 }
0x13a1   : > { %v4562_v14 = vmul.f32 %v4560_v37, %v4560_v37 }
0x13a3   : > { %v4566_v25 = vsel %vm390_vm0, %v4562_v14, 0.0 }
0x13a4   : > { %4567 = vadd.xlane.f32.xlu1 %v4566_v25 }
0x13a8   : > { %4730 = vadd.xlane.f32.xlu1 %v4729_v7 }
0x13aa   : > { %v5881_v44 = vpop.eup %5880 }
0x13ab   : > { %v4401_v54 = vmul.f32 %v5881_v44, %v4385_v34 }
0x13ad   : > { %v5735_v59 = vpack.i.bf16 %v4401_v54, %v4400_v5 }
0x13af   : > { %5736 = vrot.lane.b32.xlu0 %v5735_v59, %s5927_s12 }
0x1406   : > { %v4740_v40 = vpop.xlane.xlu0 %4739 }
0x1407   : > { %v4744_v42 = vmul.f32 0.0625, %v4740_v40 }
0x1409   : > { %v4746_v43 = vadd.f32 1e-05, %v4744_v42 }
0x1421   : > { %v5737_v29 = vpop.permute.xlu0 %5736 }
0x1422   : > { %v5739_v23 = vunpack.i.h.bf16 %v5737_v29  ;;  %v5738_v12 = vunpack.i.l.bf16 %v5737_v29 }
0x142d   : > { %v4568_v33 = vpop.xlane.xlu1 %4567 }
0x142e   : > { %v4570_v26 = vmul.f32 0.0625, %v4568_v33 }
0x1430   : > { %v4572_v63 = vadd.f32 1e-05, %v4570_v26 }
0x1431   : > { %v4731_v24 = vpop.xlane.xlu1 %4730 }
0x1432   : > { %v4733_v3 = vmul.f32 0.0625, %v4731_v24  ;;  %5882 = vrsqrt.f32 %v4572_v63 }
0x1433   : > { %5884 = vrsqrt.f32 %v4571_v4 }
0x1434   : > { %v4735_v0 = vsub.f32 %v6952_v10, %v4733_v3  ;;  %5886 = vrsqrt.f32 %v4746_v43 }
0x1436   : > { %v4737_v58 = vmul.f32 %v4735_v0, %v4735_v0 }
0x1438   : > { %v4741_v53 = vsel %vm390_vm0, %v4737_v58, 0.0 }
0x1439   : > { %4742 = vadd.xlane.f32.xlu1 %v4741_v53 }
0x143f   : > { %v5883_v17 = vpop.eup %5882 }
0x1440   : > { %v5885_v1 = vpop.eup %5884  ;;  %v4576_v20 = vmul.f32 %v5883_v17, %v4560_v37 }
0x1441   : > { %v4575_v39 = vmul.f32 %v5885_v1, %v4559_v32  ;;  %v5887_v10 = vpop.eup %5886  ;;  %v4218_v32 = vmul.f32 0.0625, %v7093_v27 }
0x1442   : > { %v4750_v52 = vmul.f32 %v5887_v10, %v4734_v11 }
0x1443   : > { %v5740_v47 = vpack.i.bf16 %v4576_v20, %v4575_v39  ;;  %v4220_v9 = vadd.f32 1e-05, %v4218_v32 }
0x144a   : > { %5741 = vrot.lane.b32.xlu1 %v5740_v47, %s5929_s14 }
0x14c2   : > { %v4743_v51 = vpop.xlane.xlu1 %4742 }
0x14c3   : > { %v4745_v36 = vmul.f32 0.0625, %v4743_v51 }
0x14c5   : > { %v4747_v38 = vadd.f32 1e-05, %v4745_v36 }
0x14c6   : > { %v5742_v61 = vpop.permute.xlu1 %5741 }
0x14c7   : > { %5888 = vrsqrt.f32 %v4747_v38  ;;  %v5744_v41 = vunpack.i.h.bf16 %v5742_v61  ;;  %v5743_v31 = vunpack.i.l.bf16 %v5742_v61 }
0x14c8   : > { %5890 = vrsqrt.f32 %v4219_v57 }
0x14c9   : > { %5892 = vrsqrt.f32 %v4220_v9 }
0x14d4   : > { %v5889_v6 = vpop.eup %5888 }
0x14d5   : > { %v4751_v15 = vmul.f32 %v5889_v6, %v4735_v0  ;;  %v5891_v49 = vpop.eup %5890 }
0x14d6   : > { %v5893_v34 = vpop.eup %5892  ;;  %v4223_v2 = vmul.f32 %v5891_v49, %v7050_v22 }
0x14d7   : > { %v5745_v8 = vpack.i.bf16 %v4751_v15, %v4750_v52  ;;  %v4224_v48 = vmul.f32 %v5893_v34, %v7076_v62 }
0x14d8   : > { %v4776_v13 = vsel %vm390_vm0, %v4223_v2, %v5738_v12 }
0x14d9   : > { %5746 = vrot.lane.b32.xlu1 %v5745_v8, %s5930_s15  ;;  %v4777_v27 = vsel %vm390_vm0, %v4224_v48, %v5739_v23  ;;  %v4778_v55 = vsel %vm1492_vm1, %v4776_v13, %v5743_v31 }
0x14da   : > { %v4779_v16 = vsel %vm1492_vm1, %v4777_v27, %v5744_v41 }
0x154b   : > { %v5747_v45 = vpop.permute.xlu1 %5746 }
0x154c   : > { %v5749_v11 = vunpack.i.h.bf16 %v5747_v45  ;;  %v5748_v28 = vunpack.i.l.bf16 %v5747_v45 }
0x154e   : > { %v4780_v56 = vsel %vm1495_vm6, %v4778_v55, %v5748_v28  ;;  %v4781_v30 = vsel %vm1495_vm6, %v4779_v16, %v5749_v11 }
0x154f   : > { %v5070_v60 = vpack.c.bf16 %v4780_v56, %v4780_v56  ;;  %v5071_v21 = vpack.c.bf16 %v4781_v30, %v4781_v30 }
0x1551   : > { %5055 = vst.msk [vmem:[%s6925_s22 + $0x18] sm:$0xf] %vm1506_vm7, %v5070_v60  ;;  %5056 = vst.msk [vmem:[%s6925_s22 + $0x1c] sm:$0xf] %vm1506_vm7, %v5071_v21 }
0x1552 PF: > { %s14_s17 = sadd.s32 1, %s5916_s17   ;;  %s7176_s15 = smov %s5912_s16 }
0x1553   : > { %p11_p5 = scmp.ge.s32.totalorder %s14_s17, 4   ;;  %s7177_s16 = smov %s7179_s18 }
0x1555   :  { %13 = sbr.rel (!%p11_p5) target bundleno = 2 (0x2), region = 90 }

</bundles_post_ra>
